<compile_context>
chip_gen: v7x
topology: tpu7x:2x2x1
jax: 0.10.0
libtpu: 0.0.40
codegen_flags: <defaults>
</compile_context>

<pallas_src>
import jax
import jax.numpy as jnp
from jax.experimental import pallas as pl
from jax.experimental.pallas import tpu as pltpu


# ---------------- packed-slab layout constants ----------------
# big (bf16) slab: width 1024, sigmoid half at lane 0, gate half at lane 512:
GATE_OFF = 512
BIG_E1, BIG_D1, BIG_D2, BIG_ROWS, BIG_COLS = 0, 784, 848, 1248, 1024
# small (bf16) slab: width 128, 16-aligned row segments (bf16 sublane tile = 16):
SM_E2, SM_T1Z, SM_T1C, SM_T2, SM_T3, SM_K1C, SM_K2, SM_K3, SM_ROWS = (
    0, 400, 464, 480, 544, 608, 624, 656, 688)
SM_COLS = 128
# bias slab rows (each row holds one fused bias; big rows use the 0/512 layout):
B_E1, B_E2, B_T1, B_T2, B_T3, B_D1, B_D2, B_K1, B_K2, B_K3 = range(10)
BIAS_COLS = 1024
# lane where similarity is stored in the packed (B, 128) z/sim output:
SIM_LANE = 64


def vae_kernel(x_ref, c_ref, wbig_ref, wsm_ref, b_ref, xrec_ref, zs_ref):
    x = x_ref[...]                      # (Bt, 784) bf16
    c = c_ref[...]                      # (Bt, 10)  f32
    Bt = x.shape[0]

    def glu_big(y, cout):
        # big-slab fused result: sigmoid half at [0:cout), gate half at [512:512+cout)
        return jax.nn.sigmoid(y[:, :cout]) * jnp.maximum(
            y[:, GATE_OFF:GATE_OFF + cout], 0.0)

    def glu_small(y, cout):
        # small-slab fused result: [s_pre | g_pre] packed contiguously
        return jax.nn.sigmoid(y[:, :cout]) * jnp.maximum(y[:, cout:2 * cout], 0.0)

    def dot_small(h, row0, cin):
        # bf16 x bf16 matmul over the full 128-lane small slab (zero cols ignored)
        w = wsm_ref[row0:row0 + cin, :]                          # (cin, 128) bf16
        return jnp.dot(h.astype(jnp.bfloat16), w,
                       preferred_element_type=jnp.float32)

    def bias_small(row):
        return b_ref[row:row + 1, 0:SM_COLS]                     # (1, 128) f32

    def l2norm(v):
        # torch F.normalize(x, dim=1):  x / max(||x||, eps),  eps = 1e-12
        nsq = jnp.sum(v * v, axis=1, keepdims=True)
        return v * jax.lax.rsqrt(jnp.maximum(nsq, 1e-24))

    # ---------------- Encoder:  GLU(784,400) -> GLU(400,50) -> L2 norm ----------------
    w_e1 = wbig_ref[BIG_E1:BIG_E1 + 784, :]                      # (784, 1024) bf16
    y = jnp.dot(x, w_e1, preferred_element_type=jnp.float32) + b_ref[B_E1:B_E1 + 1, :]
    h = glu_big(y, 400)
    y = dot_small(h, SM_E2, 400) + bias_small(B_E2)
    z = l2norm(glu_small(y, 50))                                 # (Bt, 50)

    # ---------------- Transform on cat(z, c):  GLU(60,60) x2 -> GLU(60,50) -> norm ----
    # cat(z,c) @ W  ==  z @ W[:50] + c @ W[50:]   (input-split stored in the slab)
    y = dot_small(z, SM_T1Z, 50) + dot_small(c, SM_T1C, 10) + bias_small(B_T1)
    h = glu_small(y, 60)
    y = dot_small(h, SM_T2, 60) + bias_small(B_T2)
    h = glu_small(y, 60)
    y = dot_small(h, SM_T3, 60) + bias_small(B_T3)
    z_t = l2norm(glu_small(y, 50))                               # (Bt, 50)

    # ---------------- Decoder:  GLU(50,400) -> Linear(400,784) -> sigmoid ----------------
    w_d1 = wbig_ref[BIG_D1:BIG_D1 + 50, :]                       # (50, 1024) bf16
    y = (jnp.dot(z_t.astype(jnp.bfloat16), w_d1, preferred_element_type=jnp.float32)
         + b_ref[B_D1:B_D1 + 1, :])
    h = glu_big(y, 400)
    w_d2 = wbig_ref[BIG_D2:BIG_D2 + 400, :]                      # (400, 1024) bf16, cols>=784 zero
    y = jnp.dot(h.astype(jnp.bfloat16), w_d2, preferred_element_type=jnp.float32)
    x_rec = jax.nn.sigmoid(y[:, :784] + b_ref[B_D2:B_D2 + 1, 0:784])
    xrec_ref[...] = x_rec

    # ---------------- Key on cat(ones, c):  ones-rows folded into the bias ----------------
    y = dot_small(c, SM_K1C, 10) + bias_small(B_K1)              # bias holds ones@W[:10]
    h = glu_small(y, 20)
    y = dot_small(h, SM_K2, 20) + bias_small(B_K2)
    h = glu_small(y, 20)
    y = dot_small(h, SM_K3, 20) + bias_small(B_K3)
    z_k = l2norm(glu_small(y, 50))                               # (Bt, 50)

    # ---------------- similarity + lane-dense packed (Bt, 128) output ----------------
    sim = jnp.sum(z_t * z_k, axis=1, keepdims=True)              # (Bt, 1)
    z_pad = jnp.concatenate(
        [z, jnp.zeros((Bt, 128 - 50), jnp.float32)], axis=1)     # (Bt, 128)
    lane = jax.lax.broadcasted_iota(jnp.int32, (Bt, 128), 1)
    zs_ref[...] = jnp.where(lane == SIM_LANE, sim, z_pad)        # single unmasked store


# ---------------- parameter construction & packing ----------------
def init_params(key):
    """Raw, PyTorch-Linear-style params (already laid out as (in, out))."""
    keys = iter(jax.random.split(key, 40))

    def lin(cin, cout):
        k1, k2 = next(keys), next(keys)
        bound = 1.0 / (cin ** 0.5)
        w = jax.random.uniform(k1, (cin, cout), jnp.float32, -bound, bound)
        b = jax.random.uniform(k2, (cout,), jnp.float32, -bound, bound)
        return w, b

    def glu(cin, cout):
        ws, bs = lin(cin, cout)
        wg, bg = lin(cin, cout)
        return dict(ws=ws, bs=bs, wg=wg, bg=bg)

    d2_w, d2_b = lin(400, 784)
    return dict(
        e1=glu(784, 400), e2=glu(400, 50),
        t1=glu(60, 60), t2=glu(60, 60), t3=glu(60, 50),
        d1=glu(50, 400), d2=dict(w=d2_w, b=d2_b),
        k1=glu(20, 20), k2=glu(20, 20), k3=glu(20, 50),
    )


def pack_params(p):
    """Fuse/fold/pack raw params into the three slabs the kernel consumes."""
    def fuse_w(l):
        return jnp.concatenate([l["ws"], l["wg"]], axis=1)       # (cin, 2*cout)

    def fuse_b(l):
        return jnp.concatenate([l["bs"], l["bg"]], axis=0)       # (2*cout,)

    # --- big slab (bf16, 128-lane-aligned GLU halves: s @ 0, g @ 512) ---
    wbig = jnp.zeros((BIG_ROWS, BIG_COLS), jnp.float32)
    wbig = wbig.at[BIG_E1:BIG_E1 + 784, 0:400].set(p["e1"]["ws"])
    wbig = wbig.at[BIG_E1:BIG_E1 + 784, GATE_OFF:GATE_OFF + 400].set(p["e1"]["wg"])
    wbig = wbig.at[BIG_D1:BIG_D1 + 50, 0:400].set(p["d1"]["ws"])
    wbig = wbig.at[BIG_D1:BIG_D1 + 50, GATE_OFF:GATE_OFF + 400].set(p["d1"]["wg"])
    wbig = wbig.at[BIG_D2:BIG_D2 + 400, 0:784].set(p["d2"]["w"])
    wbig = wbig.astype(jnp.bfloat16)

    # --- small slab (bf16, lane width 128, 16-aligned row segments) ---
    t1w = fuse_w(p["t1"])    # (60, 120): rows 0:50 act on z, rows 50:60 act on c
    k1w = fuse_w(p["k1"])    # (20,  40): rows 0:10 act on ones, rows 10:20 act on c
    wsm = jnp.zeros((SM_ROWS, SM_COLS), jnp.float32)
    wsm = wsm.at[SM_E2:SM_E2 + 400, 0:100].set(fuse_w(p["e2"]))
    wsm = wsm.at[SM_T1Z:SM_T1Z + 50, 0:120].set(t1w[:50])
    wsm = wsm.at[SM_T1C:SM_T1C + 10, 0:120].set(t1w[50:])
    wsm = wsm.at[SM_T2:SM_T2 + 60, 0:120].set(fuse_w(p["t2"]))
    wsm = wsm.at[SM_T3:SM_T3 + 60, 0:100].set(fuse_w(p["t3"]))
    wsm = wsm.at[SM_K1C:SM_K1C + 10, 0:40].set(k1w[10:])
    wsm = wsm.at[SM_K2:SM_K2 + 20, 0:40].set(fuse_w(p["k2"]))
    wsm = wsm.at[SM_K3:SM_K3 + 20, 0:100].set(fuse_w(p["k3"]))
    wsm = wsm.astype(jnp.bfloat16)

    # --- bias slab (f32); big rows use the 0/512 layout; Key fc1 'ones' rows folded ---
    bias = jnp.zeros((10, BIAS_COLS), jnp.float32)
    bias = bias.at[B_E1, 0:400].set(p["e1"]["bs"])
    bias = bias.at[B_E1, GATE_OFF:GATE_OFF + 400].set(p["e1"]["bg"])
    bias = bias.at[B_D1, 0:400].set(p["d1"]["bs"])
    bias = bias.at[B_D1, GATE_OFF:GATE_OFF + 400].set(p["d1"]["bg"])
    bias = bias.at[B_D2, 0:784].set(p["d2"]["b"])
    bias = bias.at[B_E2, 0:100].set(fuse_b(p["e2"]))
    bias = bias.at[B_T1, 0:120].set(fuse_b(p["t1"]))
    bias = bias.at[B_T2, 0:120].set(fuse_b(p["t2"]))
    bias = bias.at[B_T3, 0:100].set(fuse_b(p["t3"]))
    bias = bias.at[B_K1, 0:40].set(fuse_b(p["k1"]) + jnp.sum(k1w[:10], axis=0))
    bias = bias.at[B_K2, 0:40].set(fuse_b(p["k2"]))
    bias = bias.at[B_K3, 0:100].set(fuse_b(p["k3"]))

    return wbig, wsm, bias


# ---------------- wrapper ----------------
def vae_forward(x_img, c, packed, batch_tile=None):
    wbig, wsm, bias = packed
    B = x_img.shape[0]
    # per-sample HBM traffic halved: x travels in bf16 (weights are bf16 anyway)
    x = x_img.reshape(B, 784).astype(jnp.bfloat16)
    c = c.astype(jnp.float32)

    # Batch tiling:
    #   - always pad the batch to a multiple of 8 (native sublane tile),
    #   - whole batch in one tile up to 256 rows,
    #   - otherwise up to 512-row tiles, keeping >= 2 grid steps so v7x's two
    #     TensorCores both get work (costs nothing on single-TC v5e/v6e).
    Bp8 = -(-B // 8) * 8
    if batch_tile is None:
        if Bp8 <= 256:
            batch_tile = Bp8
        else:
            batch_tile = min(512, -(-(Bp8 // 2) // 8) * 8)
    Bp = -(-Bp8 // batch_tile) * batch_tile
    if Bp != B:
        x = jnp.pad(x, ((0, Bp - B), (0, 0)))
        c = jnp.pad(c, ((0, Bp - B), (0, 0)))
    grid = (Bp // batch_tile,)

    fn = pl.pallas_call(
        vae_kernel,
        out_shape=(
            jax.ShapeDtypeStruct((Bp, 784), jnp.float32),   # reconstruction
            jax.ShapeDtypeStruct((Bp, 128), jnp.float32),   # packed [z | sim] (lane-dense)
        ),
        grid=grid,
        in_specs=[
            pl.BlockSpec((batch_tile, 784), lambda i: (i, 0)),
            pl.BlockSpec((batch_tile, 10), lambda i: (i, 0)),
            pl.BlockSpec(wbig.shape, lambda i: (0, 0)),     # weights stay resident
            pl.BlockSpec(wsm.shape, lambda i: (0, 0)),
            pl.BlockSpec(bias.shape, lambda i: (0, 0)),
        ],
        out_specs=(
            pl.BlockSpec((batch_tile, 784), lambda i: (i, 0)),
            pl.BlockSpec((batch_tile, 128), lambda i: (i, 0)),
        ),
        compiler_params=pltpu.CompilerParams(
            dimension_semantics=("parallel",),
            vmem_limit_bytes=48 * 1024 * 1024),
    )
    x_rec, zs = fn(x, c, wbig, wsm, bias)
    return x_rec[:B], zs[:B, :50], zs[:B, SIM_LANE]


# ---------------- pure-JAX reference (mirrors the PyTorch forward) ----------------
def vae_reference(x_img, c, p):
    def glu(x, l):
        return (jax.nn.sigmoid(x @ l["ws"] + l["bs"])
                * jnp.maximum(x @ l["wg"] + l["bg"], 0.0))

    def norm(x):
        return x / jnp.maximum(jnp.linalg.norm(x, axis=1, keepdims=True), 1e-12)

    B = x_img.shape[0]
    x = x_img.reshape(B, 784)
    z = norm(glu(glu(x, p["e1"]), p["e2"]))
    zc = jnp.concatenate([z, c], axis=1)
    z_t = norm(glu(glu(glu(zc, p["t1"]), p["t2"]), p["t3"]))
    x_rec = jax.nn.sigmoid(glu(z_t, p["d1"]) @ p["d2"]["w"] + p["d2"]["b"])
    v = jnp.concatenate([jnp.ones_like(c), c], axis=1)
    z_k = norm(glu(glu(glu(v, p["k1"]), p["k2"]), p["k3"]))
    sim = jnp.sum(z_t * z_k, axis=1)
    return x_rec, z, sim


if __name__ == "__main__":
    key = jax.random.PRNGKey(0)
    kp, kx, kc = jax.random.split(key, 3)
    raw_params = init_params(kp)
    packed = pack_params(raw_params)

    B = 4
    x = jax.random.uniform(kx, (B, 1, 28, 28), dtype=jnp.float32)   # NCHW, MNIST-like
    c = jax.random.uniform(kc, (B, 10), dtype=jnp.float32)

    x_rec, z, sim = vae_forward(x, c, packed)
    jax.block_until_ready((x_rec, z, sim))

    # sanity check vs. f32 reference (tolerance absorbs bf16 weights/acts + MXU precision)
    xr_ref, z_ref, sim_ref = vae_reference(x, c, raw_params)
    assert x_rec.shape == (B, 784) and z.shape == (B, 50) and sim.shape == (B,)
    assert jnp.allclose(x_rec, xr_ref, atol=2e-2), "x_rec mismatch"
    assert jnp.allclose(z, z_ref, atol=2e-2), "z mismatch"
    assert jnp.allclose(sim, sim_ref, atol=3e-2), "similarity mismatch"

    print("KERNEL_OK")
</pallas_src>

<mosaic_0001>
module attributes {stable_mosaic.version = 11 : i64} {
  func.func @vae_kernel(%arg0: i32, %arg1: memref<8x784xbf16, #tpu.memory_space<vmem>>, %arg2: memref<8x10xf32, #tpu.memory_space<vmem>>, %arg3: memref<1248x1024xbf16, #tpu.memory_space<vmem>>, %arg4: memref<688x128xbf16, #tpu.memory_space<vmem>>, %arg5: memref<10x1024xf32, #tpu.memory_space<vmem>>, %arg6: memref<8x784xf32, #tpu.memory_space<vmem>>, %arg7: memref<8x128xf32, #tpu.memory_space<vmem>>) attributes {dimension_semantics = [#tpu.dimension_semantics<parallel>], iteration_bounds = array<i64: 1>, scalar_prefetch = 0 : i64, scratch_operands = 0 : i64, tpu.core_type = #tpu.core_type<tc>, window_params = [{transform_indices = @transform_0, window_bounds = array<i64: 8, 784>}, {transform_indices = @transform_1, window_bounds = array<i64: 8, 10>}, {pipeline_mode = #tpu.pipeline_mode<synchronous>, transform_indices = @transform_2, window_bounds = array<i64: 1248, 1024>}, {pipeline_mode = #tpu.pipeline_mode<synchronous>, transform_indices = @transform_3, window_bounds = array<i64: 688, 128>}, {pipeline_mode = #tpu.pipeline_mode<synchronous>, transform_indices = @transform_4, window_bounds = array<i64: 10, 1024>}, {transform_indices = @transform_5, window_bounds = array<i64: 8, 784>}, {transform_indices = @transform_6, window_bounds = array<i64: 8, 128>}]} {
    %c0 = arith.constant 0 : index
    %c0_0 = arith.constant 0 : index
    %0 = vector.load %arg1[%c0, %c0_0] : memref<8x784xbf16, #tpu.memory_space<vmem>>, vector<8x784xbf16>
    %c0_1 = arith.constant 0 : index
    %c0_2 = arith.constant 0 : index
    %1 = vector.load %arg2[%c0_1, %c0_2] : memref<8x10xf32, #tpu.memory_space<vmem>>, vector<8x10xf32>
    %c0_3 = arith.constant 0 : index
    %c0_4 = arith.constant 0 : index
    %2 = vector.load %arg3[%c0_3, %c0_4] : memref<1248x1024xbf16, #tpu.memory_space<vmem>>, vector<784x1024xbf16>
    %cst = arith.constant dense<0.000000e+00> : vector<8x1024xf32>
    %3 = tpu.matmul %0, %2, %cst {dimension_numbers = #tpu.dot_dimension_numbers<[1], [0], [0], [1], [0, 0, 1, 1], [], []>} : vector<8x784xbf16>, vector<784x1024xbf16>, vector<8x1024xf32> -> vector<8x1024xf32>
    %c0_5 = arith.constant 0 : index
    %c0_6 = arith.constant 0 : index
    %4 = vector.load %arg5[%c0_5, %c0_6] : memref<10x1024xf32, #tpu.memory_space<vmem>>, vector<1x1024xf32>
    %5 = vector.broadcast %4 : vector<1x1024xf32> to vector<8x1024xf32>
    %6 = arith.addf %3, %5 : vector<8x1024xf32>
    %7 = vector.extract_strided_slice %6 {offsets = [0, 0], sizes = [8, 400], strides = [1, 1]} : vector<8x1024xf32> to vector<8x400xf32>
    %8 = arith.negf %7 : vector<8x400xf32>
    %9 = math.exp %8 : vector<8x400xf32>
    %cst_7 = arith.constant 1.000000e+00 : f32
    %10 = vector.broadcast %cst_7 : f32 to vector<8x400xf32>
    %11 = arith.addf %10, %9 : vector<8x400xf32>
    %12 = arith.divf %10, %11 : vector<8x400xf32>
    %13 = vector.extract_strided_slice %6 {offsets = [0, 512], sizes = [8, 400], strides = [1, 1]} : vector<8x1024xf32> to vector<8x400xf32>
    %cst_8 = arith.constant 0.000000e+00 : f32
    %14 = vector.broadcast %cst_8 : f32 to vector<8x400xf32>
    %15 = arith.maximumf %13, %14 : vector<8x400xf32>
    %16 = arith.mulf %12, %15 : vector<8x400xf32>
    %c0_9 = arith.constant 0 : index
    %c0_10 = arith.constant 0 : index
    %17 = vector.load %arg4[%c0_9, %c0_10] : memref<688x128xbf16, #tpu.memory_space<vmem>>, vector<400x128xbf16>
    %18 = arith.truncf %16 : vector<8x400xf32> to vector<8x400xbf16>
    %cst_11 = arith.constant dense<0.000000e+00> : vector<8x128xf32>
    %19 = tpu.matmul %18, %17, %cst_11 {dimension_numbers = #tpu.dot_dimension_numbers<[1], [0], [0], [1], [0, 0, 1, 1], [], []>} : vector<8x400xbf16>, vector<400x128xbf16>, vector<8x128xf32> -> vector<8x128xf32>
    %c1 = arith.constant 1 : index
    %c0_12 = arith.constant 0 : index
    %20 = vector.load %arg5[%c1, %c0_12] : memref<10x1024xf32, #tpu.memory_space<vmem>>, vector<1x128xf32>
    %21 = vector.broadcast %20 : vector<1x128xf32> to vector<8x128xf32>
    %22 = arith.addf %19, %21 : vector<8x128xf32>
    %23 = vector.extract_strided_slice %22 {offsets = [0, 0], sizes = [8, 50], strides = [1, 1]} : vector<8x128xf32> to vector<8x50xf32>
    %24 = arith.negf %23 : vector<8x50xf32>
    %25 = math.exp %24 : vector<8x50xf32>
    %cst_13 = arith.constant 1.000000e+00 : f32
    %26 = vector.broadcast %cst_13 : f32 to vector<8x50xf32>
    %27 = arith.addf %26, %25 : vector<8x50xf32>
    %28 = arith.divf %26, %27 : vector<8x50xf32>
    %29 = vector.extract_strided_slice %22 {offsets = [0, 50], sizes = [8, 50], strides = [1, 1]} : vector<8x128xf32> to vector<8x50xf32>
    %cst_14 = arith.constant 0.000000e+00 : f32
    %30 = vector.broadcast %cst_14 : f32 to vector<8x50xf32>
    %31 = arith.maximumf %29, %30 : vector<8x50xf32>
    %32 = arith.mulf %28, %31 : vector<8x50xf32>
    %33 = arith.mulf %32, %32 : vector<8x50xf32>
    %cst_15 = arith.constant dense<0.000000e+00> : vector<8xf32>
    %34 = vector.multi_reduction <add>, %33, %cst_15 [1] : vector<8x50xf32> to vector<8xf32>
    %35 = vector.shape_cast %34 : vector<8xf32> to vector<8x1xf32>
    %cst_16 = arith.constant 1.000000e-24 : f32
    %36 = vector.broadcast %cst_16 : f32 to vector<8x1xf32>
    %37 = arith.maximumf %35, %36 : vector<8x1xf32>
    %38 = math.rsqrt %37 : vector<8x1xf32>
    %39 = vector.broadcast %38 : vector<8x1xf32> to vector<8x50xf32>
    %40 = arith.mulf %32, %39 : vector<8x50xf32>
    %c400 = arith.constant 400 : index
    %c0_17 = arith.constant 0 : index
    %41 = vector.load %arg4[%c400, %c0_17] : memref<688x128xbf16, #tpu.memory_space<vmem>>, vector<50x128xbf16>
    %42 = arith.truncf %40 : vector<8x50xf32> to vector<8x50xbf16>
    %cst_18 = arith.constant dense<0.000000e+00> : vector<8x128xf32>
    %43 = tpu.matmul %42, %41, %cst_18 {dimension_numbers = #tpu.dot_dimension_numbers<[1], [0], [0], [1], [0, 0, 1, 1], [], []>} : vector<8x50xbf16>, vector<50x128xbf16>, vector<8x128xf32> -> vector<8x128xf32>
    %c464 = arith.constant 464 : index
    %c0_19 = arith.constant 0 : index
    %44 = vector.load %arg4[%c464, %c0_19] : memref<688x128xbf16, #tpu.memory_space<vmem>>, vector<10x128xbf16>
    %45 = arith.truncf %1 : vector<8x10xf32> to vector<8x10xbf16>
    %cst_20 = arith.constant dense<0.000000e+00> : vector<8x128xf32>
    %46 = tpu.matmul %45, %44, %cst_20 {dimension_numbers = #tpu.dot_dimension_numbers<[1], [0], [0], [1], [0, 0, 1, 1], [], []>} : vector<8x10xbf16>, vector<10x128xbf16>, vector<8x128xf32> -> vector<8x128xf32>
    %47 = arith.addf %43, %46 : vector<8x128xf32>
    %c2 = arith.constant 2 : index
    %c0_21 = arith.constant 0 : index
    %48 = vector.load %arg5[%c2, %c0_21] : memref<10x1024xf32, #tpu.memory_space<vmem>>, vector<1x128xf32>
    %49 = vector.broadcast %48 : vector<1x128xf32> to vector<8x128xf32>
    %50 = arith.addf %47, %49 : vector<8x128xf32>
    %51 = vector.extract_strided_slice %50 {offsets = [0, 0], sizes = [8, 60], strides = [1, 1]} : vector<8x128xf32> to vector<8x60xf32>
    %52 = arith.negf %51 : vector<8x60xf32>
    %53 = math.exp %52 : vector<8x60xf32>
    %cst_22 = arith.constant 1.000000e+00 : f32
    %54 = vector.broadcast %cst_22 : f32 to vector<8x60xf32>
    %55 = arith.addf %54, %53 : vector<8x60xf32>
    %56 = arith.divf %54, %55 : vector<8x60xf32>
    %57 = vector.extract_strided_slice %50 {offsets = [0, 60], sizes = [8, 60], strides = [1, 1]} : vector<8x128xf32> to vector<8x60xf32>
    %cst_23 = arith.constant 0.000000e+00 : f32
    %58 = vector.broadcast %cst_23 : f32 to vector<8x60xf32>
    %59 = arith.maximumf %57, %58 : vector<8x60xf32>
    %60 = arith.mulf %56, %59 : vector<8x60xf32>
    %c480 = arith.constant 480 : index
    %c0_24 = arith.constant 0 : index
    %61 = vector.load %arg4[%c480, %c0_24] : memref<688x128xbf16, #tpu.memory_space<vmem>>, vector<60x128xbf16>
    %62 = arith.truncf %60 : vector<8x60xf32> to vector<8x60xbf16>
    %cst_25 = arith.constant dense<0.000000e+00> : vector<8x128xf32>
    %63 = tpu.matmul %62, %61, %cst_25 {dimension_numbers = #tpu.dot_dimension_numbers<[1], [0], [0], [1], [0, 0, 1, 1], [], []>} : vector<8x60xbf16>, vector<60x128xbf16>, vector<8x128xf32> -> vector<8x128xf32>
    %c3 = arith.constant 3 : index
    %c0_26 = arith.constant 0 : index
    %64 = vector.load %arg5[%c3, %c0_26] : memref<10x1024xf32, #tpu.memory_space<vmem>>, vector<1x128xf32>
    %65 = vector.broadcast %64 : vector<1x128xf32> to vector<8x128xf32>
    %66 = arith.addf %63, %65 : vector<8x128xf32>
    %67 = vector.extract_strided_slice %66 {offsets = [0, 0], sizes = [8, 60], strides = [1, 1]} : vector<8x128xf32> to vector<8x60xf32>
    %68 = arith.negf %67 : vector<8x60xf32>
    %69 = math.exp %68 : vector<8x60xf32>
    %cst_27 = arith.constant 1.000000e+00 : f32
    %70 = vector.broadcast %cst_27 : f32 to vector<8x60xf32>
    %71 = arith.addf %70, %69 : vector<8x60xf32>
    %72 = arith.divf %70, %71 : vector<8x60xf32>
    %73 = vector.extract_strided_slice %66 {offsets = [0, 60], sizes = [8, 60], strides = [1, 1]} : vector<8x128xf32> to vector<8x60xf32>
    %cst_28 = arith.constant 0.000000e+00 : f32
    %74 = vector.broadcast %cst_28 : f32 to vector<8x60xf32>
    %75 = arith.maximumf %73, %74 : vector<8x60xf32>
    %76 = arith.mulf %72, %75 : vector<8x60xf32>
    %c544 = arith.constant 544 : index
    %c0_29 = arith.constant 0 : index
    %77 = vector.load %arg4[%c544, %c0_29] : memref<688x128xbf16, #tpu.memory_space<vmem>>, vector<60x128xbf16>
    %78 = arith.truncf %76 : vector<8x60xf32> to vector<8x60xbf16>
    %cst_30 = arith.constant dense<0.000000e+00> : vector<8x128xf32>
    %79 = tpu.matmul %78, %77, %cst_30 {dimension_numbers = #tpu.dot_dimension_numbers<[1], [0], [0], [1], [0, 0, 1, 1], [], []>} : vector<8x60xbf16>, vector<60x128xbf16>, vector<8x128xf32> -> vector<8x128xf32>
    %c4 = arith.constant 4 : index
    %c0_31 = arith.constant 0 : index
    %80 = vector.load %arg5[%c4, %c0_31] : memref<10x1024xf32, #tpu.memory_space<vmem>>, vector<1x128xf32>
    %81 = vector.broadcast %80 : vector<1x128xf32> to vector<8x128xf32>
    %82 = arith.addf %79, %81 : vector<8x128xf32>
    %83 = vector.extract_strided_slice %82 {offsets = [0, 0], sizes = [8, 50], strides = [1, 1]} : vector<8x128xf32> to vector<8x50xf32>
    %84 = arith.negf %83 : vector<8x50xf32>
    %85 = math.exp %84 : vector<8x50xf32>
    %cst_32 = arith.constant 1.000000e+00 : f32
    %86 = vector.broadcast %cst_32 : f32 to vector<8x50xf32>
    %87 = arith.addf %86, %85 : vector<8x50xf32>
    %88 = arith.divf %86, %87 : vector<8x50xf32>
    %89 = vector.extract_strided_slice %82 {offsets = [0, 50], sizes = [8, 50], strides = [1, 1]} : vector<8x128xf32> to vector<8x50xf32>
    %cst_33 = arith.constant 0.000000e+00 : f32
    %90 = vector.broadcast %cst_33 : f32 to vector<8x50xf32>
    %91 = arith.maximumf %89, %90 : vector<8x50xf32>
    %92 = arith.mulf %88, %91 : vector<8x50xf32>
    %93 = arith.mulf %92, %92 : vector<8x50xf32>
    %cst_34 = arith.constant dense<0.000000e+00> : vector<8xf32>
    %94 = vector.multi_reduction <add>, %93, %cst_34 [1] : vector<8x50xf32> to vector<8xf32>
    %95 = vector.shape_cast %94 : vector<8xf32> to vector<8x1xf32>
    %cst_35 = arith.constant 1.000000e-24 : f32
    %96 = vector.broadcast %cst_35 : f32 to vector<8x1xf32>
    %97 = arith.maximumf %95, %96 : vector<8x1xf32>
    %98 = math.rsqrt %97 : vector<8x1xf32>
    %99 = vector.broadcast %98 : vector<8x1xf32> to vector<8x50xf32>
    %100 = arith.mulf %92, %99 : vector<8x50xf32>
    %c784 = arith.constant 784 : index
    %c0_36 = arith.constant 0 : index
    %101 = vector.load %arg3[%c784, %c0_36] : memref<1248x1024xbf16, #tpu.memory_space<vmem>>, vector<50x1024xbf16>
    %102 = arith.truncf %100 : vector<8x50xf32> to vector<8x50xbf16>
    %cst_37 = arith.constant dense<0.000000e+00> : vector<8x1024xf32>
    %103 = tpu.matmul %102, %101, %cst_37 {dimension_numbers = #tpu.dot_dimension_numbers<[1], [0], [0], [1], [0, 0, 1, 1], [], []>} : vector<8x50xbf16>, vector<50x1024xbf16>, vector<8x1024xf32> -> vector<8x1024xf32>
    %c5 = arith.constant 5 : index
    %c0_38 = arith.constant 0 : index
    %104 = vector.load %arg5[%c5, %c0_38] : memref<10x1024xf32, #tpu.memory_space<vmem>>, vector<1x1024xf32>
    %105 = vector.broadcast %104 : vector<1x1024xf32> to vector<8x1024xf32>
    %106 = arith.addf %103, %105 : vector<8x1024xf32>
    %107 = vector.extract_strided_slice %106 {offsets = [0, 0], sizes = [8, 400], strides = [1, 1]} : vector<8x1024xf32> to vector<8x400xf32>
    %108 = arith.negf %107 : vector<8x400xf32>
    %109 = math.exp %108 : vector<8x400xf32>
    %cst_39 = arith.constant 1.000000e+00 : f32
    %110 = vector.broadcast %cst_39 : f32 to vector<8x400xf32>
    %111 = arith.addf %110, %109 : vector<8x400xf32>
    %112 = arith.divf %110, %111 : vector<8x400xf32>
    %113 = vector.extract_strided_slice %106 {offsets = [0, 512], sizes = [8, 400], strides = [1, 1]} : vector<8x1024xf32> to vector<8x400xf32>
    %cst_40 = arith.constant 0.000000e+00 : f32
    %114 = vector.broadcast %cst_40 : f32 to vector<8x400xf32>
    %115 = arith.maximumf %113, %114 : vector<8x400xf32>
    %116 = arith.mulf %112, %115 : vector<8x400xf32>
    %c848 = arith.constant 848 : index
    %c0_41 = arith.constant 0 : index
    %117 = vector.load %arg3[%c848, %c0_41] : memref<1248x1024xbf16, #tpu.memory_space<vmem>>, vector<400x1024xbf16>
    %118 = arith.truncf %116 : vector<8x400xf32> to vector<8x400xbf16>
    %cst_42 = arith.constant dense<0.000000e+00> : vector<8x1024xf32>
    %119 = tpu.matmul %118, %117, %cst_42 {dimension_numbers = #tpu.dot_dimension_numbers<[1], [0], [0], [1], [0, 0, 1, 1], [], []>} : vector<8x400xbf16>, vector<400x1024xbf16>, vector<8x1024xf32> -> vector<8x1024xf32>
    %120 = vector.extract_strided_slice %119 {offsets = [0, 0], sizes = [8, 784], strides = [1, 1]} : vector<8x1024xf32> to vector<8x784xf32>
    %c6 = arith.constant 6 : index
    %c0_43 = arith.constant 0 : index
    %121 = vector.load %arg5[%c6, %c0_43] : memref<10x1024xf32, #tpu.memory_space<vmem>>, vector<1x784xf32>
    %122 = vector.broadcast %121 : vector<1x784xf32> to vector<8x784xf32>
    %123 = arith.addf %120, %122 : vector<8x784xf32>
    %124 = arith.negf %123 : vector<8x784xf32>
    %125 = math.exp %124 : vector<8x784xf32>
    %cst_44 = arith.constant 1.000000e+00 : f32
    %126 = vector.broadcast %cst_44 : f32 to vector<8x784xf32>
    %127 = arith.addf %126, %125 : vector<8x784xf32>
    %128 = arith.divf %126, %127 : vector<8x784xf32>
    %c0_45 = arith.constant 0 : index
    %c0_46 = arith.constant 0 : index
    %129 = vector.load %arg6[%c0_45, %c0_46] : memref<8x784xf32, #tpu.memory_space<vmem>>, vector<8x784xf32>
    tpu.vector_store %arg6[%c0_45, %c0_46], %128 {strides = array<i32>} : memref<8x784xf32, #tpu.memory_space<vmem>>, vector<8x784xf32>,
    %c608 = arith.constant 608 : index
    %c0_47 = arith.constant 0 : index
    %130 = vector.load %arg4[%c608, %c0_47] : memref<688x128xbf16, #tpu.memory_space<vmem>>, vector<10x128xbf16>
    %131 = arith.truncf %1 : vector<8x10xf32> to vector<8x10xbf16>
    %cst_48 = arith.constant dense<0.000000e+00> : vector<8x128xf32>
    %132 = tpu.matmul %131, %130, %cst_48 {dimension_numbers = #tpu.dot_dimension_numbers<[1], [0], [0], [1], [0, 0, 1, 1], [], []>} : vector<8x10xbf16>, vector<10x128xbf16>, vector<8x128xf32> -> vector<8x128xf32>
    %c7 = arith.constant 7 : index
    %c0_49 = arith.constant 0 : index
    %133 = vector.load %arg5[%c7, %c0_49] : memref<10x1024xf32, #tpu.memory_space<vmem>>, vector<1x128xf32>
    %134 = vector.broadcast %133 : vector<1x128xf32> to vector<8x128xf32>
    %135 = arith.addf %132, %134 : vector<8x128xf32>
    %136 = vector.extract_strided_slice %135 {offsets = [0, 0], sizes = [8, 20], strides = [1, 1]} : vector<8x128xf32> to vector<8x20xf32>
    %137 = arith.negf %136 : vector<8x20xf32>
    %138 = math.exp %137 : vector<8x20xf32>
    %cst_50 = arith.constant 1.000000e+00 : f32
    %139 = vector.broadcast %cst_50 : f32 to vector<8x20xf32>
    %140 = arith.addf %139, %138 : vector<8x20xf32>
    %141 = arith.divf %139, %140 : vector<8x20xf32>
    %142 = vector.extract_strided_slice %135 {offsets = [0, 20], sizes = [8, 20], strides = [1, 1]} : vector<8x128xf32> to vector<8x20xf32>
    %cst_51 = arith.constant 0.000000e+00 : f32
    %143 = vector.broadcast %cst_51 : f32 to vector<8x20xf32>
    %144 = arith.maximumf %142, %143 : vector<8x20xf32>
    %145 = arith.mulf %141, %144 : vector<8x20xf32>
    %c624 = arith.constant 624 : index
    %c0_52 = arith.constant 0 : index
    %146 = vector.load %arg4[%c624, %c0_52] : memref<688x128xbf16, #tpu.memory_space<vmem>>, vector<20x128xbf16>
    %147 = arith.truncf %145 : vector<8x20xf32> to vector<8x20xbf16>
    %cst_53 = arith.constant dense<0.000000e+00> : vector<8x128xf32>
    %148 = tpu.matmul %147, %146, %cst_53 {dimension_numbers = #tpu.dot_dimension_numbers<[1], [0], [0], [1], [0, 0, 1, 1], [], []>} : vector<8x20xbf16>, vector<20x128xbf16>, vector<8x128xf32> -> vector<8x128xf32>
    %c8 = arith.constant 8 : index
    %c0_54 = arith.constant 0 : index
    %149 = vector.load %arg5[%c8, %c0_54] : memref<10x1024xf32, #tpu.memory_space<vmem>>, vector<1x128xf32>
    %150 = vector.broadcast %149 : vector<1x128xf32> to vector<8x128xf32>
    %151 = arith.addf %148, %150 : vector<8x128xf32>
    %152 = vector.extract_strided_slice %151 {offsets = [0, 0], sizes = [8, 20], strides = [1, 1]} : vector<8x128xf32> to vector<8x20xf32>
    %153 = arith.negf %152 : vector<8x20xf32>
    %154 = math.exp %153 : vector<8x20xf32>
    %cst_55 = arith.constant 1.000000e+00 : f32
    %155 = vector.broadcast %cst_55 : f32 to vector<8x20xf32>
    %156 = arith.addf %155, %154 : vector<8x20xf32>
    %157 = arith.divf %155, %156 : vector<8x20xf32>
    %158 = vector.extract_strided_slice %151 {offsets = [0, 20], sizes = [8, 20], strides = [1, 1]} : vector<8x128xf32> to vector<8x20xf32>
    %cst_56 = arith.constant 0.000000e+00 : f32
    %159 = vector.broadcast %cst_56 : f32 to vector<8x20xf32>
    %160 = arith.maximumf %158, %159 : vector<8x20xf32>
    %161 = arith.mulf %157, %160 : vector<8x20xf32>
    %c656 = arith.constant 656 : index
    %c0_57 = arith.constant 0 : index
    %162 = vector.load %arg4[%c656, %c0_57] : memref<688x128xbf16, #tpu.memory_space<vmem>>, vector<20x128xbf16>
    %163 = arith.truncf %161 : vector<8x20xf32> to vector<8x20xbf16>
    %cst_58 = arith.constant dense<0.000000e+00> : vector<8x128xf32>
    %164 = tpu.matmul %163, %162, %cst_58 {dimension_numbers = #tpu.dot_dimension_numbers<[1], [0], [0], [1], [0, 0, 1, 1], [], []>} : vector<8x20xbf16>, vector<20x128xbf16>, vector<8x128xf32> -> vector<8x128xf32>
    %c9 = arith.constant 9 : index
    %c0_59 = arith.constant 0 : index
    %165 = vector.load %arg5[%c9, %c0_59] : memref<10x1024xf32, #tpu.memory_space<vmem>>, vector<1x128xf32>
    %166 = vector.broadcast %165 : vector<1x128xf32> to vector<8x128xf32>
    %167 = arith.addf %164, %166 : vector<8x128xf32>
    %168 = vector.extract_strided_slice %167 {offsets = [0, 0], sizes = [8, 50], strides = [1, 1]} : vector<8x128xf32> to vector<8x50xf32>
    %169 = arith.negf %168 : vector<8x50xf32>
    %170 = math.exp %169 : vector<8x50xf32>
    %cst_60 = arith.constant 1.000000e+00 : f32
    %171 = vector.broadcast %cst_60 : f32 to vector<8x50xf32>
    %172 = arith.addf %171, %170 : vector<8x50xf32>
    %173 = arith.divf %171, %172 : vector<8x50xf32>
    %174 = vector.extract_strided_slice %167 {offsets = [0, 50], sizes = [8, 50], strides = [1, 1]} : vector<8x128xf32> to vector<8x50xf32>
    %cst_61 = arith.constant 0.000000e+00 : f32
    %175 = vector.broadcast %cst_61 : f32 to vector<8x50xf32>
    %176 = arith.maximumf %174, %175 : vector<8x50xf32>
    %177 = arith.mulf %173, %176 : vector<8x50xf32>
    %178 = arith.mulf %177, %177 : vector<8x50xf32>
    %cst_62 = arith.constant dense<0.000000e+00> : vector<8xf32>
    %179 = vector.multi_reduction <add>, %178, %cst_62 [1] : vector<8x50xf32> to vector<8xf32>
    %180 = vector.shape_cast %179 : vector<8xf32> to vector<8x1xf32>
    %cst_63 = arith.constant 1.000000e-24 : f32
    %181 = vector.broadcast %cst_63 : f32 to vector<8x1xf32>
    %182 = arith.maximumf %180, %181 : vector<8x1xf32>
    %183 = math.rsqrt %182 : vector<8x1xf32>
    %184 = vector.broadcast %183 : vector<8x1xf32> to vector<8x50xf32>
    %185 = arith.mulf %177, %184 : vector<8x50xf32>
    %186 = arith.mulf %100, %185 : vector<8x50xf32>
    %cst_64 = arith.constant dense<0.000000e+00> : vector<8xf32>
    %187 = vector.multi_reduction <add>, %186, %cst_64 [1] : vector<8x50xf32> to vector<8xf32>
    %188 = vector.shape_cast %187 : vector<8xf32> to vector<8x1xf32>
    %cst_65 = arith.constant 0.000000e+00 : f32
    %189 = vector.broadcast %cst_65 : f32 to vector<8x78xf32>
    %190 = tpu.concatenate %40, %189 in 1 : vector<8x50xf32>, vector<8x78xf32> -> vector<8x128xf32>
    %191 = tpu.iota {dimensions = array<i32: 1>} : vector<8x128xi32>
    %c64_i32 = arith.constant 64 : i32
    %192 = vector.broadcast %c64_i32 : i32 to vector<8x128xi32>
    %193 = arith.cmpi eq, %191, %192 : vector<8x128xi32>
    %194 = vector.shape_cast %188 : vector<8x1xf32> to vector<8x1xf32>
    %195 = vector.broadcast %194 : vector<8x1xf32> to vector<8x128xf32>
    %196 = arith.select %193, %195, %190 : vector<8x128xi1>, vector<8x128xf32>
    %c0_66 = arith.constant 0 : index
    %c0_67 = arith.constant 0 : index
    %197 = vector.load %arg7[%c0_66, %c0_67] : memref<8x128xf32, #tpu.memory_space<vmem>>, vector<8x128xf32>
    tpu.vector_store %arg7[%c0_66, %c0_67], %196 {strides = array<i32>} : memref<8x128xf32, #tpu.memory_space<vmem>>, vector<8x128xf32>,
    return
  }
  func.func @transform_0(%arg0: i32) -> (i32, i32) {
    %c0_i32 = arith.constant 0 : i32
    %c0_i32_0 = arith.constant 0 : i32
    return %arg0, %c0_i32 : i32, i32
  }
  func.func @transform_1(%arg0: i32) -> (i32, i32) {
    %c0_i32 = arith.constant 0 : i32
    %c0_i32_0 = arith.constant 0 : i32
    return %arg0, %c0_i32 : i32, i32
  }
  func.func @transform_2(%arg0: i32) -> (i32, i32) {
    %c0_i32 = arith.constant 0 : i32
    %c0_i32_0 = arith.constant 0 : i32
    %c0_i32_1 = arith.constant 0 : i32
    return %c0_i32, %c0_i32_0 : i32, i32
  }
  func.func @transform_3(%arg0: i32) -> (i32, i32) {
    %c0_i32 = arith.constant 0 : i32
    %c0_i32_0 = arith.constant 0 : i32
    %c0_i32_1 = arith.constant 0 : i32
    return %c0_i32, %c0_i32_0 : i32, i32
  }
  func.func @transform_4(%arg0: i32) -> (i32, i32) {
    %c0_i32 = arith.constant 0 : i32
    %c0_i32_0 = arith.constant 0 : i32
    %c0_i32_1 = arith.constant 0 : i32
    return %c0_i32, %c0_i32_0 : i32, i32
  }
  func.func @transform_5(%arg0: i32) -> (i32, i32) {
    %c0_i32 = arith.constant 0 : i32
    %c0_i32_0 = arith.constant 0 : i32
    return %arg0, %c0_i32 : i32, i32
  }
  func.func @transform_6(%arg0: i32) -> (i32, i32) {
    %c0_i32 = arith.constant 0 : i32
    %c0_i32_0 = arith.constant 0 : i32
    return %arg0, %c0_i32 : i32, i32
  }
}

</mosaic_0001>

<bundles_post_ra>
// kernel: tpu_custom_call.1
= control target key start
LH: loop header
LB: loop body
LE: loop exit
PB: predicated region body
PF: predicated region fallthrough
CT: control target
= control target key end

     0   :  { %12 = vsyncpa [#allocation3], 0  ;;  %s7826_s0 = inlined_call_operand.hbm [shape: bf16[8,784], index: 0, kind: input, shape index: {}]   ;;  %s7827_s1 = inlined_call_operand.hbm [shape: f32[8,10], index: 1, kind: input, shape index: {}]   ;;  %s7828_s2 = inlined_call_operand.hbm [shape: bf16[1248,1024], index: 2, kind: input, shape index: {}]   ;;  %s7829_s3 = inlined_call_operand.hbm [shape: bf16[688,128], index: 3, kind: input, shape index: {}]   ;;  %s7830_s4 = inlined_call_operand.hbm [shape: f32[10,1024], index: 4, kind: input, shape index: {}]   ;;  %s7831_s5 = inlined_call_operand.hbm [shape: f32[8,784], index: 5, kind: output, shape index: {0}]   ;;  %s7832_s6 = inlined_call_operand.hbm [shape: f32[8,128], index: 6, kind: output, shape index: {1}]  }
   0x1   :  { %13 = vsyncpa [#allocation6], 0 }
   0x2   :  { %14 = vsyncpa [#allocation9], 0 }
   0x3   :  { %15 = vsyncpa [#allocation4], 0 }
   0x4   :  { %16 = vsyncpa [#allocation13], 0  ;;  %s7396_s21 = smov [#allocation5]   ;;  %s7397_s23 = smov [#allocation8]  }
   0x5   :  { %s33_s22 = sshll.u32 %s7396_s21, 4  ;;  %s54_s24 = sshll.u32 %s7397_s23, 4  ;;  %s34_s22 = int_to_ptr.vmem [resolvable:$true] %s33_s22  ;;  %s7449_s24 = int_to_ptr.vmem [resolvable:$true] %s54_s24 }
   0x6   :  { %s7232_s27 = scalar_lea.hbm %s7827_s1, 128 }
   0x7   :  { %p7233_p0 = scmp.ne.s32.totalorder %s7827_s1, %s7232_s27  ;;  %p7236_p1 = scmp.lt.u32.totalorder %s7232_s27, %s7827_s1 }
   0x9   :  { %p7238_p2 = pnand %p7236_p1, %p7233_p0 }
   0xb   :  { %7241 = shalt.err (!%p7238_p2)
}
   0xc   :  { %s7242_s8 = scalar_lea.vmem %s34_s22, 128  ;;  %p7247_p4 = scmp.lt.s32.totalorder %s34_s22, %s34_s22 }
   0xd   :  { %p7243_p3 = scmp.ne.s32.totalorder %s34_s22, %s7242_s8  ;;  %p7248_p5 = scmp.lt.s32.totalorder %s7242_s8, %s7242_s8 }
   0xf   :  { %p7249_p6 = por %p7248_p5, %p7247_p4 }
  0x11   :  { %p7250_p7 = pnand %p7249_p6, %p7243_p3 }
  0x13   :  { %7253 = shalt.err (!%p7250_p7)
}
  0x14   :  { %36 = dma.hbm_to_vmem [thread:$0]  %s7827_s1, 128, %s34_s22, [#allocation6]  }
  0x15   :  { %s7254_s13 = scalar_lea.hbm %s7829_s3, 5504 }
  0x16   :  { %p7255_p8 = scmp.ne.s32.totalorder %s7829_s3, %s7254_s13  ;;  %p7258_p9 = scmp.lt.u32.totalorder %s7254_s13, %s7829_s3 }
  0x18   :  { %p7260_p10 = pnand %p7258_p9, %p7255_p8 }
  0x1a   :  { %7263 = shalt.err (!%p7260_p10)
}
  0x1b   :  { %s7264_s18 = scalar_lea.vmem %s7449_s24, 5504  ;;  %p7269_p12 = scmp.lt.s32.totalorder %s7449_s24, %s7449_s24 }
  0x1c   :  { %p7265_p11 = scmp.ne.s32.totalorder %s7449_s24, %s7264_s18  ;;  %p7270_p13 = scmp.lt.s32.totalorder %s7264_s18, %s7264_s18 }
  0x1e   :  { %p7271_p0 = por %p7270_p13, %p7269_p12 }
  0x20   :  { %p7272_p1 = pnand %p7271_p0, %p7265_p11 }
  0x22   :  { %7275 = shalt.err (!%p7272_p1)
}
  0x23   :  { %s7398_s1 = smov 64   ;;  %s7399_s19 = smov 4  }
  0x24   :  { %60 = dma.hbm_to_vmem [thread:$0]  %s7829_s3, 5504, %s7449_s24, [#allocation9], %s7398_s1, %s7398_s1, %s7399_s19  }
  0x25   :  { %s7400_s22 = smov [#allocation2]   ;;  %s7401_s25 = smov [#allocation7]  }
  0x26   :  { %s23_s23 = sshll.u32 %s7400_s22, 4  ;;  %s42_s26 = sshll.u32 %s7401_s25, 4  ;;  %s24_s23 = int_to_ptr.vmem [resolvable:$true] %s23_s23  ;;  %s7482_s26 = int_to_ptr.vmem [resolvable:$true] %s42_s26 }
  0x27   :  { %s7276_s29 = scalar_lea.hbm %s7826_s0, 448 }
  0x28   :  { %p7277_p2 = scmp.ne.s32.totalorder %s7826_s0, %s7276_s29  ;;  %p7280_p3 = scmp.lt.u32.totalorder %s7276_s29, %s7826_s0 }
  0x2a   :  { %p7282_p4 = pnand %p7280_p3, %p7277_p2 }
  0x2c   :  { %7285 = shalt.err (!%p7282_p4)
}
  0x2d   :  { %s7286_s3 = scalar_lea.vmem %s24_s23, 448  ;;  %p7291_p6 = scmp.lt.s32.totalorder %s24_s23, %s24_s23 }
  0x2e   :  { %p7287_p5 = scmp.ne.s32.totalorder %s24_s23, %s7286_s3  ;;  %p7292_p7 = scmp.lt.s32.totalorder %s7286_s3, %s7286_s3 }
  0x30   :  { %p7293_p8 = por %p7292_p7, %p7291_p6 }
  0x32   :  { %p7294_p9 = pnand %p7293_p8, %p7287_p5 }
  0x34   :  { %7297 = shalt.err (!%p7294_p9)
}
  0x35   :  { %26 = dma.hbm_to_vmem [thread:$0]  %s7826_s0, 448, %s24_s23, [#allocation3]  }
  0x36   :  { %s7298_s13 = scalar_lea.hbm %s7828_s2, 79872 }
  0x37   :  { %p7299_p10 = scmp.ne.s32.totalorder %s7828_s2, %s7298_s13  ;;  %p7302_p11 = scmp.lt.u32.totalorder %s7298_s13, %s7828_s2 }
  0x39   :  { %p7304_p12 = pnand %p7302_p11, %p7299_p10 }
  0x3b   :  { %7307 = shalt.err (!%p7304_p12)
}
  0x3c   :  { %s7308_s18 = scalar_lea.vmem %s7482_s26, 79872  ;;  %p7313_p0 = scmp.lt.s32.totalorder %s7482_s26, %s7482_s26 }
  0x3d   :  { %p7309_p13 = scmp.ne.s32.totalorder %s7482_s26, %s7308_s18  ;;  %p7314_p1 = scmp.lt.s32.totalorder %s7308_s18, %s7308_s18 }
  0x3f   :  { %p7315_p2 = por %p7314_p1, %p7313_p0 }
  0x41   :  { %p7316_p3 = pnand %p7315_p2, %p7309_p13 }
  0x43   :  { %7319 = shalt.err (!%p7316_p3)
}
  0x44   :  { %s7402_s0 = smov 512   ;;  %s7403_s19 = smov 32  }
  0x45   :  { %48 = dma.hbm_to_vmem [thread:$0]  %s7828_s2, 79872, %s7482_s26, [#allocation6], %s7402_s0, %s7402_s0, %s7403_s19  }
  0x46   :  { %s7404_s22 = smov [#allocation10]   ;;  %s7320_s28 = scalar_lea.hbm %s7830_s4, 2048 }
  0x47   :  { %s66_s23 = sshll.u32 %s7404_s22, 4  ;;  %p7321_p4 = scmp.ne.s32.totalorder %s7830_s4, %s7320_s28  ;;  %s67_s23 = int_to_ptr.vmem [resolvable:$true] %s66_s23 }
  0x48   :  { %p7324_p5 = scmp.lt.u32.totalorder %s7320_s28, %s7830_s4 }
  0x4a   :  { %p7326_p6 = pnand %p7324_p5, %p7321_p4 }
  0x4c   :  { %7329 = shalt.err (!%p7326_p6)
}
  0x4d   :  { %s7330_s9 = scalar_lea.vmem %s67_s23, 2048  ;;  %p7335_p8 = scmp.lt.s32.totalorder %s67_s23, %s67_s23 }
  0x4e   :  { %p7331_p7 = scmp.ne.s32.totalorder %s67_s23, %s7330_s9  ;;  %p7336_p9 = scmp.lt.s32.totalorder %s7330_s9, %s7330_s9 }
  0x50   :  { %p7337_p10 = por %p7336_p9, %p7335_p8 }
  0x52   :  { %p7338_p11 = pnand %p7337_p10, %p7331_p7 }
  0x54   :  { %7341 = shalt.err (!%p7338_p11)
}
  0x55   :  { %s7405_s2 = smov 1024  }
  0x56   :  { %72 = dma.hbm_to_vmem [thread:$0]  %s7830_s4, 2048, %s67_s23, [#allocation9], %s7405_s2, %s7405_s2, %s7398_s1  }
  0x57   :  { %7386 = dma.done.wait [#allocation3], 448  }
  0x58   :  { %7387 = vsyncadd [#allocation3], 4294966848 }
  0x59   :  { %7388 = dma.done.wait [#allocation6], 80000  }
  0x5a   :  { %7389 = vsyncadd [#allocation6], 4294887296 }
  0x5b   :  { %7390 = dma.done.wait [#allocation9], 7552  }
  0x5c   :  { %7391 = vsyncadd [#allocation9], 4294959744  ;;  %v94_v0 = vld [vmem:[#allocation7] sm:$0xff]  ;;  %v95_v2 = vld [vmem:[#allocation7 + $0x8] sm:$0xff]  ;;  %vm2514_vm0 = vcmask 130048   ;;  %s7407_s4 = smov 78  }
  0x5d   :  { %v98_v1 = vld [vmem:[#allocation7 + $0x20] sm:$0xff]  ;;  %v99_v4 = vld [vmem:[#allocation7 + $0x28] sm:$0xff]  ;;  %vm3507_vm1 = vcmask 408576   ;;  %vm3534_vm2 = vcmask 1044480   ;;  %vm3530_vm3 = vcmask 80896   ;;  %vm3602_vm4 = vcmask 1040384  }
  0x5e   :  { %v6182_v3 = vcombine.high %v94_v0, %v98_v1  ;;  %v6181_v5 = vcombine.low %v94_v0, %v98_v1  ;;  %v102_v6 = vld [vmem:[#allocation7 + $0x40] sm:$0xff]  ;;  %v6184_v8 = vcombine.high %v95_v2, %v99_v4  ;;  %v6183_v9 = vcombine.low %v95_v2, %v99_v4  ;;  %v103_v11 = vld [vmem:[#allocation7 + $0x48] sm:$0xff]  ;;  %s7410_s1 = smov 68   ;;  %s7411_s24 = smov 108  }
  0x5f   :  { %v106_v7 = vld [vmem:[#allocation7 + $0x60] sm:$0xff]  ;;  %v107_v12 = vld [vmem:[#allocation7 + $0x68] sm:$0xff]  ;;  %vm7409_vm5 = vmmov 0   ;;  %vm3697_vm6 = vcmask 1045504   ;;  %vm3693_vm7 = vcmask 490496   ;;  %vm5998_vm8 = vcmask 1041408  }
  0x60   :  { %v6190_v10 = vcombine.high %v102_v6, %v106_v7  ;;  %v110_v13 = vld [vmem:[#allocation7 + $0x80] sm:$0xff]  ;;  %2518 = vmatprep.subr.bf16.mxu0 %v6182_v3  ;;  %v6192_v14 = vcombine.high %v103_v11, %v107_v12  ;;  %v111_v16 = vld [vmem:[#allocation7 + $0x88] sm:$0xff]  ;;  %2682 = vmatprep.subr.bf16.mxu1 %v6184_v8  ;;  %v6189_v18 = vcombine.low %v102_v6, %v106_v7  ;;  %vm5994_vm9 = vcmask 162816   ;;  %s7412_s10 = smov [#allocation11]  }
  0x61   :  { %v114_v15 = vld [vmem:[#allocation7 + $0xa0] sm:$0xff]  ;;  %v115_v17 = vld [vmem:[#allocation7 + $0xa8] sm:$0xff]  ;;  %2519 = vmatpush1.bf16.msra.mxu0 %v6181_v5  ;;  %2683 = vmatpush1.bf16.msra.mxu1 %v6183_v9  ;;  %v6191_v19 = vcombine.low %v103_v11, %v107_v12  ;;  %s6149_s11 = sshll.u32 %s7412_s10, 4  ;;  %s6150_s11 = int_to_ptr.vmem [resolvable:$true] %s6149_s11 }
  0x62   :  { %2520 = vmatprep.subr.bf16.mxu0 %v6190_v10  ;;  %v6198_v20 = vcombine.high %v110_v13, %v114_v15  ;;  %2684 = vmatprep.subr.bf16.mxu1 %v6192_v14  ;;  %v6200_v21 = vcombine.high %v111_v16, %v115_v17  ;;  %v118_v22 = vld [vmem:[#allocation7 + $0xc0] sm:$0xff]  ;;  %v119_v24 = vld [vmem:[#allocation7 + $0xc8] sm:$0xff]  ;;  %v6197_v26 = vcombine.low %v110_v13, %v114_v15  ;;  %s7342_s12 = scalar_lea.vmem %s6150_s11, 896  ;;  %p7347_p13 = scmp.lt.s32.totalorder %s6150_s11, %s6150_s11 }
  0x63   :  { %v122_v23 = vld [vmem:[#allocation7 + $0xe0] sm:$0xff]  ;;  %v123_v25 = vld [vmem:[#allocation7 + $0xe8] sm:$0xff]  ;;  %v6199_v27 = vcombine.low %v111_v16, %v115_v17  ;;  %p7343_p12 = scmp.ne.s32.totalorder %s6150_s11, %s7342_s12  ;;  %p7348_p0 = scmp.lt.s32.totalorder %s7342_s12, %s7342_s12 }
  0x64   :  { %v6206_v28 = vcombine.high %v118_v22, %v122_v23  ;;  %v6208_v29 = vcombine.high %v119_v24, %v123_v25  ;;  %v126_v30 = vld [vmem:[#allocation7 + $0x100] sm:$0xff]  ;;  %v127_v32 = vld [vmem:[#allocation7 + $0x108] sm:$0xff]  ;;  %v6205_v34 = vcombine.low %v118_v22, %v122_v23  ;;  %v6207_v35 = vcombine.low %v119_v24, %v123_v25 }
  0x65   :  { %2521 = vmatpush1.bf16.msra.mxu0 %v6189_v18  ;;  %2685 = vmatpush1.bf16.msra.mxu1 %v6191_v19  ;;  %v130_v31 = vld [vmem:[#allocation7 + $0x120] sm:$0xff]  ;;  %v131_v33 = vld [vmem:[#allocation7 + $0x128] sm:$0xff]  ;;  %p7349_p1 = por %p7348_p0, %p7347_p13 }
  0x66   :  { %2522 = vmatprep.subr.bf16.mxu0 %v6198_v20  ;;  %2686 = vmatprep.subr.bf16.mxu1 %v6200_v21  ;;  %v6214_v36 = vcombine.high %v126_v30, %v130_v31  ;;  %v6216_v37 = vcombine.high %v127_v32, %v131_v33  ;;  %v134_v38 = vld [vmem:[#allocation7 + $0x140] sm:$0xff]  ;;  %v135_v40 = vld [vmem:[#allocation7 + $0x148] sm:$0xff]  ;;  %v6213_v42 = vcombine.low %v126_v30, %v130_v31 }
  0x67   :  { %v138_v39 = vld [vmem:[#allocation7 + $0x160] sm:$0xff]  ;;  %v139_v41 = vld [vmem:[#allocation7 + $0x168] sm:$0xff]  ;;  %v6215_v43 = vcombine.low %v127_v32, %v131_v33  ;;  %p7350_p2 = pnand %p7349_p1, %p7343_p12 }
  0x68   :  { %v6222_v44 = vcombine.high %v134_v38, %v138_v39  ;;  %v6224_v45 = vcombine.high %v135_v40, %v139_v41  ;;  %v142_v46 = vld [vmem:[#allocation7 + $0x180] sm:$0xff]  ;;  %v143_v48 = vld [vmem:[#allocation7 + $0x188] sm:$0xff]  ;;  %v6221_v50 = vcombine.low %v134_v38, %v138_v39  ;;  %v6223_v51 = vcombine.low %v135_v40, %v139_v41 }
  0x69   :  { %2523 = vmatpush1.bf16.msra.mxu0 %v6197_v26  ;;  %2687 = vmatpush1.bf16.msra.mxu1 %v6199_v27  ;;  %v146_v47 = vld [vmem:[#allocation7 + $0x1a0] sm:$0xff]  ;;  %v147_v49 = vld [vmem:[#allocation7 + $0x1a8] sm:$0xff] }
  0x6a   :  { %2524 = vmatprep.subr.bf16.mxu0 %v6206_v28  ;;  %2688 = vmatprep.subr.bf16.mxu1 %v6208_v29  ;;  %v6230_v52 = vcombine.high %v142_v46, %v146_v47  ;;  %v7526_v53 = vld [vmem:[#allocation2] sm:$0xff]  ;;  %v6232_v54 = vcombine.high %v143_v48, %v147_v49  ;;  %v151_v58 = vld [vmem:[#allocation7 + $0x1c8] sm:$0xff]  ;;  %v6229_v60 = vcombine.low %v142_v46, %v146_v47 }
  0x6b   :  { %v150_v55 = vld [vmem:[#allocation7 + $0x1c0] sm:$0xff]  ;;  %v7530_v57 = vcombine.high %v7526_v53, %v7526_v53  ;;  %v155_v59 = vld [vmem:[#allocation7 + $0x1e8] sm:$0xff]  ;;  %v6231_v61 = vcombine.low %v143_v48, %v147_v49 }
  0x6c   :  { %v154_v56 = vld [vmem:[#allocation7 + $0x1e0] sm:$0xff]  ;;  %v6240_v63 = vcombine.high %v151_v58, %v155_v59  ;;  %v159_v2 = vld [vmem:[#allocation7 + $0x208] sm:$0xff]  ;;  %v6239_v5 = vcombine.low %v151_v58, %v155_v59 }
  0x6d   :  { %2525 = vmatpush1.bf16.msra.mxu0 %v6205_v34  ;;  %2689 = vmatpush1.bf16.msra.mxu1 %v6207_v35  ;;  %v6238_v62 = vcombine.high %v150_v55, %v154_v56  ;;  %v158_v0 = vld [vmem:[#allocation7 + $0x200] sm:$0xff]  ;;  %v163_v3 = vld [vmem:[#allocation7 + $0x228] sm:$0xff]  ;;  %v6237_v4 = vcombine.low %v150_v55, %v154_v56 }
  0x6e   :  { %2526 = vmatprep.subr.bf16.mxu0 %v6214_v36  ;;  %2690 = vmatprep.subr.bf16.mxu1 %v6216_v37  ;;  %v162_v1 = vld [vmem:[#allocation7 + $0x220] sm:$0xff]  ;;  %v6248_v7 = vcombine.high %v159_v2, %v163_v3  ;;  %v167_v10 = vld [vmem:[#allocation7 + $0x248] sm:$0xff]  ;;  %v6247_v13 = vcombine.low %v159_v2, %v163_v3 }
  0x6f   :  { %2550 = vmatprep.mubr.bf16.mxu0 %v7530_v57  ;;  %2714 = vmatprep.mubr.bf16.mxu1 %v7530_v57  ;;  %v6246_v6 = vcombine.high %v158_v0, %v162_v1  ;;  %v166_v8 = vld [vmem:[#allocation7 + $0x240] sm:$0xff]  ;;  %v171_v11 = vld [vmem:[#allocation7 + $0x268] sm:$0xff]  ;;  %v6245_v12 = vcombine.low %v158_v0, %v162_v1 }
  0x70   :  { %v170_v9 = vld [vmem:[#allocation7 + $0x260] sm:$0xff]  ;;  %v6256_v15 = vcombine.high %v167_v10, %v171_v11  ;;  %v175_v18 = vld [vmem:[#allocation7 + $0x288] sm:$0xff]  ;;  %v6255_v21 = vcombine.low %v167_v10, %v171_v11 }
  0x71   :  { %2527 = vmatpush1.bf16.msra.mxu0 %v6213_v42  ;;  %2691 = vmatpush1.bf16.msra.mxu1 %v6215_v43  ;;  %v6254_v14 = vcombine.high %v166_v8, %v170_v9  ;;  %v174_v16 = vld [vmem:[#allocation7 + $0x280] sm:$0xff]  ;;  %v179_v19 = vld [vmem:[#allocation7 + $0x2a8] sm:$0xff]  ;;  %v6253_v20 = vcombine.low %v166_v8, %v170_v9 }
  0x72   :  { %2528 = vmatprep.subr.bf16.mxu0 %v6222_v44  ;;  %2692 = vmatprep.subr.bf16.mxu1 %v6224_v45  ;;  %v178_v17 = vld [vmem:[#allocation7 + $0x2a0] sm:$0xff]  ;;  %v6264_v23 = vcombine.high %v175_v18, %v179_v19  ;;  %v183_v26 = vld [vmem:[#allocation7 + $0x2c8] sm:$0xff]  ;;  %v6263_v29 = vcombine.low %v175_v18, %v179_v19 }
  0x73   :  { %v6262_v22 = vcombine.high %v174_v16, %v178_v17  ;;  %v182_v24 = vld [vmem:[#allocation7 + $0x2c0] sm:$0xff]  ;;  %v187_v27 = vld [vmem:[#allocation7 + $0x2e8] sm:$0xff]  ;;  %v6261_v28 = vcombine.low %v174_v16, %v178_v17 }
  0x74   :  { %v186_v25 = vld [vmem:[#allocation7 + $0x2e0] sm:$0xff]  ;;  %v6272_v31 = vcombine.high %v183_v26, %v187_v27  ;;  %v191_v34 = vld [vmem:[#allocation7 + $0x308] sm:$0xff]  ;;  %v6271_v37 = vcombine.low %v183_v26, %v187_v27 }
  0x75   :  { %2529 = vmatpush1.bf16.msra.mxu0 %v6221_v50  ;;  %2693 = vmatpush1.bf16.msra.mxu1 %v6223_v51  ;;  %v6270_v30 = vcombine.high %v182_v24, %v186_v25  ;;  %v190_v32 = vld [vmem:[#allocation7 + $0x300] sm:$0xff]  ;;  %v195_v35 = vld [vmem:[#allocation7 + $0x328] sm:$0xff]  ;;  %v6269_v36 = vcombine.low %v182_v24, %v186_v25 }
  0x76   :  { %2530 = vmatprep.subr.bf16.mxu0 %v6230_v52  ;;  %2694 = vmatprep.subr.bf16.mxu1 %v6232_v54  ;;  %v194_v33 = vld [vmem:[#allocation7 + $0x320] sm:$0xff]  ;;  %v6280_v39 = vcombine.high %v191_v34, %v195_v35  ;;  %v199_v42 = vld [vmem:[#allocation7 + $0x348] sm:$0xff]  ;;  %v6279_v45 = vcombine.low %v191_v34, %v195_v35 }
  0x77   :  { %v6278_v38 = vcombine.high %v190_v32, %v194_v33  ;;  %v198_v40 = vld [vmem:[#allocation7 + $0x340] sm:$0xff]  ;;  %v203_v43 = vld [vmem:[#allocation7 + $0x368] sm:$0xff]  ;;  %v6277_v44 = vcombine.low %v190_v32, %v194_v33 }
  0x78   :  { %v202_v41 = vld [vmem:[#allocation7 + $0x360] sm:$0xff]  ;;  %v6288_v47 = vcombine.high %v199_v42, %v203_v43  ;;  %v207_v50 = vld [vmem:[#allocation7 + $0x388] sm:$0xff]  ;;  %v6287_v54 = vcombine.low %v199_v42, %v203_v43 }
  0x79   :  { %2531 = vmatpush1.bf16.msra.mxu0 %v6229_v60  ;;  %2695 = vmatpush1.bf16.msra.mxu1 %v6231_v61  ;;  %v6286_v46 = vcombine.high %v198_v40, %v202_v41  ;;  %v206_v48 = vld [vmem:[#allocation7 + $0x380] sm:$0xff]  ;;  %v211_v51 = vld [vmem:[#allocation7 + $0x3a8] sm:$0xff]  ;;  %v6285_v52 = vcombine.low %v198_v40, %v202_v41 }
  0x7a   :  { %2532 = vmatprep.subr.bf16.mxu0 %v6238_v62  ;;  %2696 = vmatprep.subr.bf16.mxu1 %v6240_v63  ;;  %v210_v49 = vld [vmem:[#allocation7 + $0x3a0] sm:$0xff]  ;;  %v6296_v56 = vcombine.high %v207_v50, %v211_v51  ;;  %v215_v60 = vld [vmem:[#allocation7 + $0x3c8] sm:$0xff]  ;;  %v6295_v63 = vcombine.low %v207_v50, %v211_v51 }
  0x7b   :  { %v6294_v55 = vcombine.high %v206_v48, %v210_v49  ;;  %v214_v58 = vld [vmem:[#allocation7 + $0x3c0] sm:$0xff]  ;;  %v219_v61 = vld [vmem:[#allocation7 + $0x3e8] sm:$0xff]  ;;  %v6293_v62 = vcombine.low %v206_v48, %v210_v49 }
  0x7c   :  { %v218_v59 = vld [vmem:[#allocation7 + $0x3e0] sm:$0xff]  ;;  %v6304_v1 = vcombine.high %v215_v60, %v219_v61 }
  0x7d   :  { %2533 = vmatpush1.bf16.msra.mxu0 %v6237_v4  ;;  %2697 = vmatpush1.bf16.msra.mxu1 %v6239_v5  ;;  %v6302_v0 = vcombine.high %v214_v58, %v218_v59  ;;  %v222_v2 = vld [vmem:[#allocation7 + $0x400] sm:$0xff]  ;;  %v223_v4 = vld [vmem:[#allocation7 + $0x408] sm:$0xff] }
  0x7e   :  { %2534 = vmatprep.subr.bf16.mxu0 %v6246_v6  ;;  %2698 = vmatprep.subr.bf16.mxu1 %v6248_v7  ;;  %v226_v3 = vld [vmem:[#allocation7 + $0x420] sm:$0xff]  ;;  %v227_v5 = vld [vmem:[#allocation7 + $0x428] sm:$0xff]  ;;  %v6301_v6 = vcombine.low %v214_v58, %v218_v59  ;;  %v6303_v7 = vcombine.low %v215_v60, %v219_v61 }
  0x7f   :  { %v6310_v8 = vcombine.high %v222_v2, %v226_v3  ;;  %v6312_v9 = vcombine.high %v223_v4, %v227_v5  ;;  %v230_v10 = vld [vmem:[#allocation7 + $0x440] sm:$0xff]  ;;  %v6309_v16 = vcombine.low %v222_v2, %v226_v3  ;;  %v6311_v19 = vcombine.low %v223_v4, %v227_v5 }
  0x80   :  { %v234_v11 = vld [vmem:[#allocation7 + $0x460] sm:$0xff] }
  0x81   :  { %2535 = vmatpush1.bf16.msra.mxu0 %v6245_v12  ;;  %2699 = vmatpush1.bf16.msra.mxu1 %v6247_v13  ;;  %v7536_v12 = vcombine.low %v7526_v53, %v7526_v53  ;;  %v231_v13 = vld [vmem:[#allocation7 + $0x448] sm:$0xff]  ;;  %v238_v17 = vld [vmem:[#allocation7 + $0x480] sm:$0xff]  ;;  %v6317_v24 = vcombine.low %v230_v10, %v234_v11 }
  0x82   :  { %2536 = vmatprep.subr.bf16.mxu0 %v6254_v14  ;;  %2700 = vmatprep.subr.bf16.mxu1 %v6256_v15  ;;  %v235_v14 = vld [vmem:[#allocation7 + $0x468] sm:$0xff]  ;;  %v242_v18 = vld [vmem:[#allocation7 + $0x4a0] sm:$0xff] }
  0x83   :  { %v7538_v15 = vld [vmem:[#allocation2 + $0x8] sm:$0xff]  ;;  %v6319_v25 = vcombine.low %v231_v13, %v235_v14  ;;  %v6326_v26 = vcombine.high %v238_v17, %v242_v18  ;;  %v6325_v32 = vcombine.low %v238_v17, %v242_v18 }
  0x84   :  { %v239_v53 = vld [vmem:[#allocation7 + $0x488] sm:$0xff]  ;;  %v254_v33 = vld [vmem:[#allocation7 + $0x500] sm:$0xff] }
  0x85   :  { %2537 = vmatpush1.bf16.msra.mxu0 %v6253_v20  ;;  %2701 = vmatpush1.bf16.msra.mxu1 %v6255_v21  ;;  %v6318_v20 = vcombine.high %v230_v10, %v234_v11  ;;  %v6320_v21 = vcombine.high %v231_v13, %v235_v14  ;;  %v258_v34 = vld [vmem:[#allocation7 + $0x520] sm:$0xff]  ;;  %v295_v17 = vld [vmem:[#allocation7 + $0x648] sm:$0xff] }
  0x86   :  { %2538 = vmatprep.subr.bf16.mxu0 %v6262_v22  ;;  %2702 = vmatprep.subr.bf16.mxu1 %v6264_v23  ;;  %v7542_v22 = vcombine.high %v7538_v15, %v7538_v15  ;;  %v243_v23 = vld [vmem:[#allocation7 + $0x4a8] sm:$0xff]  ;;  %v262_v41 = vld [vmem:[#allocation7 + $0x540] sm:$0xff]  ;;  %v6341_v48 = vcombine.low %v254_v33, %v258_v34 }
  0x87   :  { %v6328_v27 = vcombine.high %v239_v53, %v243_v23  ;;  %v6327_v35 = vcombine.low %v239_v53, %v243_v23  ;;  %v266_v42 = vld [vmem:[#allocation7 + $0x560] sm:$0xff] }
  0x88   :  { %v6350_v50 = vcombine.high %v262_v41, %v266_v42  ;;  %v270_v51 = vld [vmem:[#allocation7 + $0x580] sm:$0xff]  ;;  %v6349_v58 = vcombine.low %v262_v41, %v266_v42  ;;  %v319_v42 = vld [vmem:[#allocation7 + $0x708] sm:$0xff] }
  0x89   :  { %2539 = vmatpush1.bf16.msra.mxu0 %v6261_v28  ;;  %2703 = vmatpush1.bf16.msra.mxu1 %v6263_v29  ;;  %v246_v28 = vld [vmem:[#allocation7 + $0x4c0] sm:$0xff] }
  0x8a   :  { %2540 = vmatprep.subr.bf16.mxu0 %v6270_v30  ;;  %2704 = vmatprep.subr.bf16.mxu1 %v6272_v31  ;;  %v250_v29 = vld [vmem:[#allocation7 + $0x4e0] sm:$0xff]  ;;  %v247_v30 = vld [vmem:[#allocation7 + $0x4c8] sm:$0xff] }
  0x8b   :  { %v251_v31 = vld [vmem:[#allocation7 + $0x4e8] sm:$0xff]  ;;  %v6333_v40 = vcombine.low %v246_v28, %v250_v29  ;;  %v278_v61 = vld [vmem:[#allocation7 + $0x5c0] sm:$0xff] }
  0x8c   :  { %v6335_v43 = vcombine.low %v247_v30, %v251_v31  ;;  %v286_v5 = vld [vmem:[#allocation7 + $0x600] sm:$0xff] }
  0x8d   :  { %2541 = vmatpush1.bf16.msra.mxu0 %v6269_v36  ;;  %2705 = vmatpush1.bf16.msra.mxu1 %v6271_v37  ;;  %v6334_v36 = vcombine.high %v246_v28, %v250_v29  ;;  %v255_v37 = vld [vmem:[#allocation7 + $0x508] sm:$0xff]  ;;  %v294_v14 = vld [vmem:[#allocation7 + $0x640] sm:$0xff] }
  0x8e   :  { %2542 = vmatprep.subr.bf16.mxu0 %v6278_v38  ;;  %2706 = vmatprep.subr.bf16.mxu1 %v6280_v39  ;;  %v259_v38 = vld [vmem:[#allocation7 + $0x528] sm:$0xff]  ;;  %v6336_v39 = vcombine.high %v247_v30, %v251_v31  ;;  %v302_v23 = vld [vmem:[#allocation7 + $0x680] sm:$0xff] }
  0x8f   :  { %v6343_v49 = vcombine.low %v255_v37, %v259_v38  ;;  %v310_v31 = vld [vmem:[#allocation7 + $0x6c0] sm:$0xff] }
  0x90   :  { %v322_v41 = vld [vmem:[#allocation7 + $0x720] sm:$0xff] }
  0x91   :  { %2543 = vmatpush1.bf16.msra.mxu0 %v6277_v44  ;;  %2707 = vmatpush1.bf16.msra.mxu1 %v6279_v45  ;;  %v6342_v44 = vcombine.high %v254_v33, %v258_v34  ;;  %v263_v45 = vld [vmem:[#allocation7 + $0x548] sm:$0xff] }
  0x92   :  { %2544 = vmatprep.subr.bf16.mxu0 %v6286_v46  ;;  %2708 = vmatprep.subr.bf16.mxu1 %v6288_v47  ;;  %v267_v46 = vld [vmem:[#allocation7 + $0x568] sm:$0xff]  ;;  %v6344_v47 = vcombine.high %v255_v37, %v259_v38 }
  0x93   :  { %v6351_v59 = vcombine.low %v263_v45, %v267_v46  ;;  %v311_v33 = vld [vmem:[#allocation7 + $0x6c8] sm:$0xff] }
  0x95   :  { %2545 = vmatpush1.bf16.msra.mxu0 %v6285_v52  ;;  %2709 = vmatpush1.bf16.msra.mxu1 %v6287_v54  ;;  %v274_v52 = vld [vmem:[#allocation7 + $0x5a0] sm:$0xff]  ;;  %v271_v54 = vld [vmem:[#allocation7 + $0x588] sm:$0xff] }
  0x96   :  { %2546 = vmatprep.subr.bf16.mxu0 %v6294_v55  ;;  %2710 = vmatprep.subr.bf16.mxu1 %v6296_v56  ;;  %v6352_v55 = vcombine.high %v263_v45, %v267_v46  ;;  %v275_v56 = vld [vmem:[#allocation7 + $0x5a8] sm:$0xff]  ;;  %v6358_v60 = vcombine.high %v270_v51, %v274_v52  ;;  %v6357_v2 = vcombine.low %v270_v51, %v274_v52 }
  0x97   :  { %v6359_v3 = vcombine.low %v271_v54, %v275_v56  ;;  %v331_v51 = vld [vmem:[#allocation7 + $0x768] sm:$0xff] }
  0x99   :  { %2547 = vmatpush1.bf16.msra.mxu0 %v6293_v62  ;;  %2711 = vmatpush1.bf16.msra.mxu1 %v6295_v63  ;;  %v282_v62 = vld [vmem:[#allocation7 + $0x5e0] sm:$0xff]  ;;  %v279_v63 = vld [vmem:[#allocation7 + $0x5c8] sm:$0xff] }
  0x9a   :  { %2548 = vmatprep.subr.bf16.mxu0 %v6302_v0  ;;  %2712 = vmatprep.subr.bf16.mxu1 %v6304_v1  ;;  %v6360_v0 = vcombine.high %v271_v54, %v275_v56  ;;  %v283_v1 = vld [vmem:[#allocation7 + $0x5e8] sm:$0xff]  ;;  %v6366_v4 = vcombine.high %v278_v61, %v282_v62  ;;  %v6365_v10 = vcombine.low %v278_v61, %v282_v62 }
  0x9b   :  { %v6367_v11 = vcombine.low %v279_v63, %v283_v1  ;;  %v339_v61 = vld [vmem:[#allocation7 + $0x7a8] sm:$0xff] }
  0x9d   :  { %2549 = vmatpush1.bf16.msra.mxu0 %v6301_v6  ;;  %2713 = vmatpush1.bf16.msra.mxu1 %v6303_v7  ;;  %v290_v6 = vld [vmem:[#allocation7 + $0x620] sm:$0xff]  ;;  %v287_v7 = vld [vmem:[#allocation7 + $0x608] sm:$0xff] }
  0x9e   :  { %2559 = vmatprep.subr.bf16.mxu0 %v6310_v8  ;;  %2723 = vmatprep.subr.bf16.mxu1 %v6312_v9  ;;  %v6368_v8 = vcombine.high %v279_v63, %v283_v1  ;;  %v291_v9 = vld [vmem:[#allocation7 + $0x628] sm:$0xff]  ;;  %v6374_v13 = vcombine.high %v286_v5, %v290_v6 }
  0x9f   :  { %v6376_v18 = vcombine.high %v287_v7, %v291_v9 }
  0xa0   :  { %2551 = vmatmul.mubr.bf16.vlgmr.msra.gmra.mrb[0].mxu0 %v7536_v12  ;;  %2715 = vmatmul.mubr.bf16.vlgmr.msra.gmra.mrb[0].mxu1 %v7536_v12 }
  0xa1   :  { %2560 = vmatpush1.bf16.msra.mxu0 %v6309_v16  ;;  %2724 = vmatpush1.bf16.msra.mxu1 %v6311_v19  ;;  %v298_v16 = vld [vmem:[#allocation7 + $0x660] sm:$0xff]  ;;  %v299_v19 = vld [vmem:[#allocation7 + $0x668] sm:$0xff] }
  0xa2   :  { %2561 = vmatprep.subr.bf16.mxu0 %v6318_v20  ;;  %2725 = vmatprep.subr.bf16.mxu1 %v6320_v21  ;;  %v6373_v20 = vcombine.low %v286_v5, %v290_v6  ;;  %v6375_v21 = vcombine.low %v287_v7, %v291_v9  ;;  %v6382_v53 = vcombine.high %v294_v14, %v298_v16  ;;  %v347_v5 = vld [vmem:[#allocation7 + $0x7e8] sm:$0xff] }
  0xa3   :  { %2591 = vmatprep.mubr.bf16.mxu0 %v7542_v22  ;;  %2755 = vmatprep.mubr.bf16.mxu1 %v7542_v22  ;;  %v6381_v28 = vcombine.low %v294_v14, %v298_v16  ;;  %v6383_v29 = vcombine.low %v295_v17, %v299_v19  ;;  %v355_v14 = vld [vmem:[#allocation7 + $0x828] sm:$0xff] }
  0xa5   :  { %2562 = vmatpush1.bf16.msra.mxu0 %v6317_v24  ;;  %2726 = vmatpush1.bf16.msra.mxu1 %v6319_v25  ;;  %v306_v24 = vld [vmem:[#allocation7 + $0x6a0] sm:$0xff]  ;;  %v303_v25 = vld [vmem:[#allocation7 + $0x688] sm:$0xff] }
  0xa6   :  { %2563 = vmatprep.subr.bf16.mxu0 %v6326_v26  ;;  %2727 = vmatprep.subr.bf16.mxu1 %v6328_v27  ;;  %v6384_v26 = vcombine.high %v295_v17, %v299_v19  ;;  %v307_v27 = vld [vmem:[#allocation7 + $0x6a8] sm:$0xff]  ;;  %v6390_v30 = vcombine.high %v302_v23, %v306_v24 }
  0xa7   :  { %v6392_v34 = vcombine.high %v303_v25, %v307_v27  ;;  %v6391_v37 = vcombine.low %v303_v25, %v307_v27  ;;  %v7552_v25 = vld [vmem:[#allocation2 + $0x10] sm:$0xff] }
  0xa9   :  { %2564 = vmatpush1.bf16.msra.mxu0 %v6325_v32  ;;  %2728 = vmatpush1.bf16.msra.mxu1 %v6327_v35  ;;  %v314_v32 = vld [vmem:[#allocation7 + $0x6e0] sm:$0xff]  ;;  %v315_v35 = vld [vmem:[#allocation7 + $0x6e8] sm:$0xff] }
  0xaa   :  { %2565 = vmatprep.subr.bf16.mxu0 %v6334_v36  ;;  %2729 = vmatprep.subr.bf16.mxu1 %v6336_v39  ;;  %v6389_v36 = vcombine.low %v302_v23, %v306_v24  ;;  %v6398_v38 = vcombine.high %v310_v31, %v314_v32  ;;  %v6400_v39 = vcombine.high %v311_v33, %v315_v35  ;;  %v359_v23 = vld [vmem:[#allocation7 + $0x848] sm:$0xff] }
  0xab   :  { %v6399_v45 = vcombine.low %v311_v33, %v315_v35  ;;  %v363_v24 = vld [vmem:[#allocation7 + $0x868] sm:$0xff] }
  0xac   :  { %v371_v33 = vld [vmem:[#allocation7 + $0x8a8] sm:$0xff]  ;;  %v6447_v35 = vcombine.low %v359_v23, %v363_v24 }
  0xad   :  { %2566 = vmatpush1.bf16.msra.mxu0 %v6333_v40  ;;  %2730 = vmatpush1.bf16.msra.mxu1 %v6335_v43  ;;  %v318_v40 = vld [vmem:[#allocation7 + $0x700] sm:$0xff]  ;;  %v323_v43 = vld [vmem:[#allocation7 + $0x728] sm:$0xff] }
  0xae   :  { %2567 = vmatprep.subr.bf16.mxu0 %v6342_v44  ;;  %2731 = vmatprep.subr.bf16.mxu1 %v6344_v47  ;;  %v6397_v44 = vcombine.low %v310_v31, %v314_v32  ;;  %v6406_v46 = vcombine.high %v318_v40, %v322_v41  ;;  %v6408_v47 = vcombine.high %v319_v42, %v323_v43  ;;  %v370_v31 = vld [vmem:[#allocation7 + $0x8a0] sm:$0xff] }
  0xaf   :  { %v6405_v52 = vcombine.low %v318_v40, %v322_v41  ;;  %v6407_v54 = vcombine.low %v319_v42, %v323_v43  ;;  %v7556_v32 = vcombine.high %v7552_v25, %v7552_v25  ;;  %v375_v40 = vld [vmem:[#allocation7 + $0x8c8] sm:$0xff] }
  0xb0   :  { %v379_v41 = vld [vmem:[#allocation7 + $0x8e8] sm:$0xff] }
  0xb1   :  { %2568 = vmatpush1.bf16.msra.mxu0 %v6341_v48  ;;  %2732 = vmatpush1.bf16.msra.mxu1 %v6343_v49  ;;  %v326_v48 = vld [vmem:[#allocation7 + $0x740] sm:$0xff] }
  0xb2   :  { %2569 = vmatprep.subr.bf16.mxu0 %v6350_v50  ;;  %2733 = vmatprep.subr.bf16.mxu1 %v6352_v55  ;;  %v330_v49 = vld [vmem:[#allocation7 + $0x760] sm:$0xff]  ;;  %v327_v50 = vld [vmem:[#allocation7 + $0x748] sm:$0xff] }
  0xb3   :  { %v6414_v55 = vcombine.high %v326_v48, %v330_v49  ;;  %v6416_v56 = vcombine.high %v327_v50, %v331_v51  ;;  %v6413_v62 = vcombine.low %v326_v48, %v330_v49  ;;  %v6415_v63 = vcombine.low %v327_v50, %v331_v51  ;;  %v383_v48 = vld [vmem:[#allocation7 + $0x908] sm:$0xff] }
  0xb4   :  { %v387_v49 = vld [vmem:[#allocation7 + $0x928] sm:$0xff]  ;;  %v6463_v51 = vcombine.low %v375_v40, %v379_v41 }
  0xb5   :  { %2570 = vmatpush1.bf16.msra.mxu0 %v6349_v58  ;;  %2734 = vmatpush1.bf16.msra.mxu1 %v6351_v59  ;;  %v334_v58 = vld [vmem:[#allocation7 + $0x780] sm:$0xff] }
  0xb6   :  { %2571 = vmatprep.subr.bf16.mxu0 %v6358_v60  ;;  %2735 = vmatprep.subr.bf16.mxu1 %v6360_v0  ;;  %v338_v59 = vld [vmem:[#allocation7 + $0x7a0] sm:$0xff]  ;;  %v335_v60 = vld [vmem:[#allocation7 + $0x788] sm:$0xff] }
  0xb7   :  { %v6422_v0 = vcombine.high %v334_v58, %v338_v59  ;;  %v6424_v1 = vcombine.high %v335_v60, %v339_v61  ;;  %v6421_v6 = vcombine.low %v334_v58, %v338_v59  ;;  %v6423_v7 = vcombine.low %v335_v60, %v339_v61  ;;  %v391_v58 = vld [vmem:[#allocation7 + $0x948] sm:$0xff] }
  0xb8   :  { %v395_v59 = vld [vmem:[#allocation7 + $0x968] sm:$0xff]  ;;  %v6471_v61 = vcombine.low %v383_v48, %v387_v49 }
  0xb9   :  { %2572 = vmatpush1.bf16.msra.mxu0 %v6357_v2  ;;  %2736 = vmatpush1.bf16.msra.mxu1 %v6359_v3  ;;  %v342_v2 = vld [vmem:[#allocation7 + $0x7c0] sm:$0xff] }
  0xba   :  { %2573 = vmatprep.subr.bf16.mxu0 %v6366_v4  ;;  %2737 = vmatprep.subr.bf16.mxu1 %v6368_v8  ;;  %v346_v3 = vld [vmem:[#allocation7 + $0x7e0] sm:$0xff]  ;;  %v343_v4 = vld [vmem:[#allocation7 + $0x7c8] sm:$0xff] }
  0xbb   :  { %v6430_v8 = vcombine.high %v342_v2, %v346_v3  ;;  %v6432_v9 = vcombine.high %v343_v4, %v347_v5  ;;  %v6429_v16 = vcombine.low %v342_v2, %v346_v3  ;;  %v6431_v17 = vcombine.low %v343_v4, %v347_v5  ;;  %v399_v2 = vld [vmem:[#allocation7 + $0x988] sm:$0xff] }
  0xbc   :  { %v403_v3 = vld [vmem:[#allocation7 + $0x9a8] sm:$0xff]  ;;  %v6479_v5 = vcombine.low %v391_v58, %v395_v59 }
  0xbd   :  { %2574 = vmatpush1.bf16.msra.mxu0 %v6365_v10  ;;  %2738 = vmatpush1.bf16.msra.mxu1 %v6367_v11  ;;  %v350_v10 = vld [vmem:[#allocation7 + $0x800] sm:$0xff] }
  0xbe   :  { %2575 = vmatprep.subr.bf16.mxu0 %v6374_v13  ;;  %2739 = vmatprep.subr.bf16.mxu1 %v6376_v18  ;;  %v354_v11 = vld [vmem:[#allocation7 + $0x820] sm:$0xff]  ;;  %v351_v13 = vld [vmem:[#allocation7 + $0x808] sm:$0xff] }
  0xbf   :  { %v6438_v18 = vcombine.high %v350_v10, %v354_v11  ;;  %v6440_v19 = vcombine.high %v351_v13, %v355_v14  ;;  %v6439_v27 = vcombine.low %v351_v13, %v355_v14  ;;  %v6487_v14 = vcombine.low %v399_v2, %v403_v3 }
  0xc1   :  { %2576 = vmatpush1.bf16.msra.mxu0 %v6373_v20  ;;  %2740 = vmatpush1.bf16.msra.mxu1 %v6375_v21  ;;  %v358_v20 = vld [vmem:[#allocation7 + $0x840] sm:$0xff] }
  0xc2   :  { %2577 = vmatprep.subr.bf16.mxu0 %v6382_v53  ;;  %2741 = vmatprep.subr.bf16.mxu1 %v6384_v26  ;;  %v362_v21 = vld [vmem:[#allocation7 + $0x860] sm:$0xff]  ;;  %v7550_v53 = vcombine.low %v7538_v15, %v7538_v15  ;;  %v6437_v26 = vcombine.low %v350_v10, %v354_v11  ;;  %v367_v15 = vld [vmem:[#allocation7 + $0x888] sm:$0xff] }
  0xc3   :  { %v6455_v43 = vcombine.low %v367_v15, %v371_v33  ;;  %v407_v10 = vld [vmem:[#allocation7 + $0x9c8] sm:$0xff] }
  0xc4   :  { %v411_v11 = vld [vmem:[#allocation7 + $0x9e8] sm:$0xff] }
  0xc5   :  { %2578 = vmatpush1.bf16.msra.mxu0 %v6381_v28  ;;  %2742 = vmatpush1.bf16.msra.mxu1 %v6383_v29  ;;  %v6446_v28 = vcombine.high %v358_v20, %v362_v21  ;;  %v6448_v29 = vcombine.high %v359_v23, %v363_v24  ;;  %v6495_v24 = vcombine.low %v407_v10, %v411_v11 }
  0xc6   :  { %2579 = vmatprep.subr.bf16.mxu0 %v6390_v30  ;;  %2743 = vmatprep.subr.bf16.mxu1 %v6392_v34  ;;  %v366_v30 = vld [vmem:[#allocation7 + $0x880] sm:$0xff]  ;;  %v6445_v34 = vcombine.low %v358_v20, %v362_v21  ;;  %v415_v20 = vld [vmem:[#allocation7 + $0xa08] sm:$0xff] }
  0xc7   :  { %v6453_v42 = vcombine.low %v366_v30, %v370_v31  ;;  %v419_v21 = vld [vmem:[#allocation7 + $0xa28] sm:$0xff] }
  0xc9   :  { %2580 = vmatpush1.bf16.msra.mxu0 %v6389_v36  ;;  %2744 = vmatpush1.bf16.msra.mxu1 %v6391_v37  ;;  %v6454_v36 = vcombine.high %v366_v30, %v370_v31  ;;  %v6456_v37 = vcombine.high %v367_v15, %v371_v33  ;;  %v423_v30 = vld [vmem:[#allocation7 + $0xa48] sm:$0xff]  ;;  %v6503_v33 = vcombine.low %v415_v20, %v419_v21 }
  0xca   :  { %2581 = vmatprep.subr.bf16.mxu0 %v6398_v38  ;;  %2745 = vmatprep.subr.bf16.mxu1 %v6400_v39  ;;  %v374_v38 = vld [vmem:[#allocation7 + $0x8c0] sm:$0xff]  ;;  %v427_v31 = vld [vmem:[#allocation7 + $0xa68] sm:$0xff] }
  0xcb   :  { %v378_v39 = vld [vmem:[#allocation7 + $0x8e0] sm:$0xff] }
  0xcc   :  { %v6461_v50 = vcombine.low %v374_v38, %v378_v39 }
  0xcd   :  { %2582 = vmatpush1.bf16.msra.mxu0 %v6397_v44  ;;  %2746 = vmatpush1.bf16.msra.mxu1 %v6399_v45  ;;  %v6462_v44 = vcombine.high %v374_v38, %v378_v39  ;;  %v6464_v45 = vcombine.high %v375_v40, %v379_v41  ;;  %v431_v38 = vld [vmem:[#allocation7 + $0xa88] sm:$0xff]  ;;  %v6511_v41 = vcombine.low %v423_v30, %v427_v31 }
  0xce   :  { %2583 = vmatprep.subr.bf16.mxu0 %v6406_v46  ;;  %2747 = vmatprep.subr.bf16.mxu1 %v6408_v47  ;;  %v382_v46 = vld [vmem:[#allocation7 + $0x900] sm:$0xff]  ;;  %v435_v39 = vld [vmem:[#allocation7 + $0xaa8] sm:$0xff] }
  0xcf   :  { %v386_v47 = vld [vmem:[#allocation7 + $0x920] sm:$0xff] }
  0xd0   :  { %v6469_v60 = vcombine.low %v382_v46, %v386_v47 }
  0xd1   :  { %2584 = vmatpush1.bf16.msra.mxu0 %v6405_v52  ;;  %2748 = vmatpush1.bf16.msra.mxu1 %v6407_v54  ;;  %v6470_v52 = vcombine.high %v382_v46, %v386_v47  ;;  %v6472_v54 = vcombine.high %v383_v48, %v387_v49  ;;  %v439_v46 = vld [vmem:[#allocation7 + $0xac8] sm:$0xff]  ;;  %v6519_v49 = vcombine.low %v431_v38, %v435_v39 }
  0xd2   :  { %2585 = vmatprep.subr.bf16.mxu0 %v6414_v55  ;;  %2749 = vmatprep.subr.bf16.mxu1 %v6416_v56  ;;  %v390_v55 = vld [vmem:[#allocation7 + $0x940] sm:$0xff]  ;;  %v443_v47 = vld [vmem:[#allocation7 + $0xae8] sm:$0xff] }
  0xd3   :  { %v394_v56 = vld [vmem:[#allocation7 + $0x960] sm:$0xff] }
  0xd4   :  { %v6477_v4 = vcombine.low %v390_v55, %v394_v56 }
  0xd5   :  { %2586 = vmatpush1.bf16.msra.mxu0 %v6413_v62  ;;  %2750 = vmatpush1.bf16.msra.mxu1 %v6415_v63  ;;  %v6478_v62 = vcombine.high %v390_v55, %v394_v56  ;;  %v6480_v63 = vcombine.high %v391_v58, %v395_v59  ;;  %v447_v55 = vld [vmem:[#allocation7 + $0xb08] sm:$0xff]  ;;  %v6527_v59 = vcombine.low %v439_v46, %v443_v47 }
  0xd6   :  { %2587 = vmatprep.subr.bf16.mxu0 %v6422_v0  ;;  %2751 = vmatprep.subr.bf16.mxu1 %v6424_v1  ;;  %v398_v0 = vld [vmem:[#allocation7 + $0x980] sm:$0xff]  ;;  %v451_v56 = vld [vmem:[#allocation7 + $0xb28] sm:$0xff] }
  0xd7   :  { %v402_v1 = vld [vmem:[#allocation7 + $0x9a0] sm:$0xff] }
  0xd8   :  { %v6485_v13 = vcombine.low %v398_v0, %v402_v1 }
  0xd9   :  { %2588 = vmatpush1.bf16.msra.mxu0 %v6421_v6  ;;  %2752 = vmatpush1.bf16.msra.mxu1 %v6423_v7  ;;  %v6486_v6 = vcombine.high %v398_v0, %v402_v1  ;;  %v6488_v7 = vcombine.high %v399_v2, %v403_v3  ;;  %v455_v0 = vld [vmem:[#allocation7 + $0xb48] sm:$0xff]  ;;  %v6535_v3 = vcombine.low %v447_v55, %v451_v56 }
  0xda   :  { %2589 = vmatprep.subr.bf16.mxu0 %v6430_v8  ;;  %2753 = vmatprep.subr.bf16.mxu1 %v6432_v9  ;;  %v406_v8 = vld [vmem:[#allocation7 + $0x9c0] sm:$0xff]  ;;  %v459_v1 = vld [vmem:[#allocation7 + $0xb68] sm:$0xff] }
  0xdb   :  { %v410_v9 = vld [vmem:[#allocation7 + $0x9e0] sm:$0xff] }
  0xdc   :  { %v6493_v23 = vcombine.low %v406_v8, %v410_v9 }
  0xdd   :  { %2590 = vmatpush1.bf16.msra.mxu0 %v6429_v16  ;;  %2754 = vmatpush1.bf16.msra.mxu1 %v6431_v17  ;;  %v6494_v16 = vcombine.high %v406_v8, %v410_v9  ;;  %v6496_v17 = vcombine.high %v407_v10, %v411_v11  ;;  %v463_v8 = vld [vmem:[#allocation7 + $0xb88] sm:$0xff]  ;;  %v6543_v11 = vcombine.low %v455_v0, %v459_v1 }
  0xde   :  { %2600 = vmatprep.subr.bf16.mxu0 %v6438_v18  ;;  %2764 = vmatprep.subr.bf16.mxu1 %v6440_v19  ;;  %v414_v18 = vld [vmem:[#allocation7 + $0xa00] sm:$0xff]  ;;  %v467_v9 = vld [vmem:[#allocation7 + $0xba8] sm:$0xff] }
  0xdf   :  { %v418_v19 = vld [vmem:[#allocation7 + $0xa20] sm:$0xff] }
  0xe0   :  { %2592 = vmatmul.mubr.bf16.vlgmr.msra.gmra.mrb[0].mxu0 %v7550_v53  ;;  %2756 = vmatmul.mubr.bf16.vlgmr.msra.gmra.mrb[0].mxu1 %v7550_v53  ;;  %v6501_v15 = vcombine.low %v414_v18, %v418_v19 }
  0xe1   :  { %2601 = vmatpush1.bf16.msra.mxu0 %v6437_v26  ;;  %2765 = vmatpush1.bf16.msra.mxu1 %v6439_v27  ;;  %v6502_v26 = vcombine.high %v414_v18, %v418_v19  ;;  %v6504_v27 = vcombine.high %v415_v20, %v419_v21  ;;  %v471_v18 = vld [vmem:[#allocation7 + $0xbc8] sm:$0xff]  ;;  %v6551_v21 = vcombine.low %v463_v8, %v467_v9 }
  0xe2   :  { %2602 = vmatprep.subr.bf16.mxu0 %v6446_v28  ;;  %2766 = vmatprep.subr.bf16.mxu1 %v6448_v29  ;;  %v422_v28 = vld [vmem:[#allocation7 + $0xa40] sm:$0xff]  ;;  %v475_v19 = vld [vmem:[#allocation7 + $0xbe8] sm:$0xff] }
  0xe3   :  { %2632 = vmatprep.mubr.bf16.mxu0 %v7556_v32  ;;  %2796 = vmatprep.mubr.bf16.mxu1 %v7556_v32  ;;  %v426_v29 = vld [vmem:[#allocation7 + $0xa60] sm:$0xff] }
  0xe4   :  { %v6509_v40 = vcombine.low %v422_v28, %v426_v29 }
  0xe5   :  { %2603 = vmatpush1.bf16.msra.mxu0 %v6445_v34  ;;  %2767 = vmatpush1.bf16.msra.mxu1 %v6447_v35  ;;  %v6510_v34 = vcombine.high %v422_v28, %v426_v29  ;;  %v6512_v35 = vcombine.high %v423_v30, %v427_v31  ;;  %v479_v28 = vld [vmem:[#allocation7 + $0xc08] sm:$0xff]  ;;  %v6559_v31 = vcombine.low %v471_v18, %v475_v19 }
  0xe6   :  { %2604 = vmatprep.subr.bf16.mxu0 %v6454_v36  ;;  %2768 = vmatprep.subr.bf16.mxu1 %v6456_v37  ;;  %v430_v36 = vld [vmem:[#allocation7 + $0xa80] sm:$0xff]  ;;  %v483_v29 = vld [vmem:[#allocation7 + $0xc28] sm:$0xff] }
  0xe7   :  { %v434_v37 = vld [vmem:[#allocation7 + $0xaa0] sm:$0xff] }
  0xe8   :  { %v6517_v48 = vcombine.low %v430_v36, %v434_v37 }
  0xe9   :  { %2605 = vmatpush1.bf16.msra.mxu0 %v6453_v42  ;;  %2769 = vmatpush1.bf16.msra.mxu1 %v6455_v43  ;;  %v6518_v42 = vcombine.high %v430_v36, %v434_v37  ;;  %v6520_v43 = vcombine.high %v431_v38, %v435_v39  ;;  %v100_v36 = vld [vmem:[#allocation7 + $0x30] sm:$0xff]  ;;  %v97_v38 = vld [vmem:[#allocation7 + $0x18] sm:$0xff] }
  0xea   :  { %2606 = vmatprep.subr.bf16.mxu0 %v6462_v44  ;;  %2770 = vmatprep.subr.bf16.mxu1 %v6464_v45  ;;  %v438_v44 = vld [vmem:[#allocation7 + $0xac0] sm:$0xff]  ;;  %v101_v39 = vld [vmem:[#allocation7 + $0x38] sm:$0xff] }
  0xeb   :  { %v442_v45 = vld [vmem:[#allocation7 + $0xae0] sm:$0xff] }
  0xec   :  { %v6525_v58 = vcombine.low %v438_v44, %v442_v45 }
  0xed   :  { %2607 = vmatpush1.bf16.msra.mxu0 %v6461_v50  ;;  %2771 = vmatpush1.bf16.msra.mxu1 %v6463_v51  ;;  %v6526_v50 = vcombine.high %v438_v44, %v442_v45  ;;  %v6528_v51 = vcombine.high %v439_v46, %v443_v47  ;;  %v108_v44 = vld [vmem:[#allocation7 + $0x70] sm:$0xff]  ;;  %v105_v46 = vld [vmem:[#allocation7 + $0x58] sm:$0xff] }
  0xee   :  { %2608 = vmatprep.subr.bf16.mxu0 %v6470_v52  ;;  %2772 = vmatprep.subr.bf16.mxu1 %v6472_v54  ;;  %v446_v52 = vld [vmem:[#allocation7 + $0xb00] sm:$0xff]  ;;  %v7085_v45 = vld [vmem:[#allocation2 + $0x18] ss:$0 sps:$4 sm:$0xff]   ;;  %v109_v47 = vld [vmem:[#allocation7 + $0x78] sm:$0xff] }
  0xef   :  { %v450_v54 = vld [vmem:[#allocation7 + $0xb20] sm:$0xff] }
  0xf0   :  { %v6533_v2 = vcombine.low %v446_v52, %v450_v54 }
  0xf1   :  { %2609 = vmatpush1.bf16.msra.mxu0 %v6469_v60  ;;  %2773 = vmatpush1.bf16.msra.mxu1 %v6471_v61  ;;  %v6534_v60 = vcombine.high %v446_v52, %v450_v54  ;;  %v6536_v61 = vcombine.high %v447_v55, %v451_v56  ;;  %v112_v52 = vld [vmem:[#allocation7 + $0x90] sm:$0xff]  ;;  %v113_v55 = vld [vmem:[#allocation7 + $0x98] sm:$0xff] }
  0xf2   :  { %2610 = vmatprep.subr.bf16.mxu0 %v6478_v62  ;;  %2774 = vmatprep.subr.bf16.mxu1 %v6480_v63  ;;  %v454_v62 = vld [vmem:[#allocation7 + $0xb40] sm:$0xff]  ;;  %v116_v54 = vld [vmem:[#allocation7 + $0xb0] sm:$0xff]  ;;  %v117_v56 = vld [vmem:[#allocation7 + $0xb8] sm:$0xff] }
  0xf3   :  { %v458_v63 = vld [vmem:[#allocation7 + $0xb60] sm:$0xff] }
  0xf4   :  { %v6541_v10 = vcombine.low %v454_v62, %v458_v63 }
  0xf5   :  { %2611 = vmatpush1.bf16.msra.mxu0 %v6477_v4  ;;  %2775 = vmatpush1.bf16.msra.mxu1 %v6479_v5  ;;  %v6542_v4 = vcombine.high %v454_v62, %v458_v63  ;;  %v6544_v5 = vcombine.high %v455_v0, %v459_v1  ;;  %v120_v62 = vld [vmem:[#allocation7 + $0xd0] sm:$0xff]  ;;  %v121_v0 = vld [vmem:[#allocation7 + $0xd8] sm:$0xff] }
  0xf6   :  { %2612 = vmatprep.subr.bf16.mxu0 %v6486_v6  ;;  %2776 = vmatprep.subr.bf16.mxu1 %v6488_v7  ;;  %v462_v6 = vld [vmem:[#allocation7 + $0xb80] sm:$0xff]  ;;  %v124_v63 = vld [vmem:[#allocation7 + $0xf0] sm:$0xff]  ;;  %v125_v1 = vld [vmem:[#allocation7 + $0xf8] sm:$0xff] }
  0xf7   :  { %v466_v7 = vld [vmem:[#allocation7 + $0xba0] sm:$0xff] }
  0xf8   :  { %v6549_v20 = vcombine.low %v462_v6, %v466_v7 }
  0xf9   :  { %2613 = vmatpush1.bf16.msra.mxu0 %v6485_v13  ;;  %2777 = vmatpush1.bf16.msra.mxu1 %v6487_v14  ;;  %v6550_v13 = vcombine.high %v462_v6, %v466_v7  ;;  %v6552_v14 = vcombine.high %v463_v8, %v467_v9  ;;  %v128_v6 = vld [vmem:[#allocation7 + $0x110] sm:$0xff]  ;;  %v129_v8 = vld [vmem:[#allocation7 + $0x118] sm:$0xff] }
  0xfa   :  { %2614 = vmatprep.subr.bf16.mxu0 %v6494_v16  ;;  %2778 = vmatprep.subr.bf16.mxu1 %v6496_v17  ;;  %v470_v16 = vld [vmem:[#allocation7 + $0xbc0] sm:$0xff]  ;;  %v132_v7 = vld [vmem:[#allocation7 + $0x130] sm:$0xff]  ;;  %v133_v9 = vld [vmem:[#allocation7 + $0x138] sm:$0xff] }
  0xfb   :  { %v474_v17 = vld [vmem:[#allocation7 + $0xbe0] sm:$0xff] }
  0xfc   :  { %v6557_v30 = vcombine.low %v470_v16, %v474_v17 }
  0xfd   :  { %2615 = vmatpush1.bf16.msra.mxu0 %v6493_v23  ;;  %2779 = vmatpush1.bf16.msra.mxu1 %v6495_v24  ;;  %v6558_v23 = vcombine.high %v470_v16, %v474_v17  ;;  %v6560_v24 = vcombine.high %v471_v18, %v475_v19  ;;  %v140_v16 = vld [vmem:[#allocation7 + $0x170] sm:$0xff]  ;;  %v137_v17 = vld [vmem:[#allocation7 + $0x158] sm:$0xff]  ;;  %v6217_v19 = vcombine.low %v128_v6, %v132_v7 }
  0xfe   :  { %2616 = vmatprep.subr.bf16.mxu0 %v6502_v26  ;;  %2780 = vmatprep.subr.bf16.mxu1 %v6504_v27  ;;  %v478_v26 = vld [vmem:[#allocation7 + $0xc00] sm:$0xff]  ;;  %v141_v18 = vld [vmem:[#allocation7 + $0x178] sm:$0xff] }
  0xff   :  { %v482_v27 = vld [vmem:[#allocation7 + $0xc20] sm:$0xff] }
 0x100   :  { %v6565_v37 = vcombine.low %v478_v26, %v482_v27 }
 0x101   :  { %2617 = vmatpush1.bf16.msra.mxu0 %v6501_v15  ;;  %2781 = vmatpush1.bf16.msra.mxu1 %v6503_v33  ;;  %v6566_v15 = vcombine.high %v478_v26, %v482_v27  ;;  %v6568_v33 = vcombine.high %v479_v28, %v483_v29  ;;  %v148_v26 = vld [vmem:[#allocation7 + $0x1b0] sm:$0xff]  ;;  %v145_v27 = vld [vmem:[#allocation7 + $0x198] sm:$0xff] }
 0x102   :  { %2618 = vmatprep.subr.bf16.mxu0 %v6510_v34  ;;  %2782 = vmatprep.subr.bf16.mxu1 %v6512_v35  ;;  %v7564_v34 = vcombine.low %v7552_v25, %v7552_v25  ;;  %v96_v35 = vld [vmem:[#allocation7 + $0x10] sm:$0xff]  ;;  %v7406_v25 = vmov 0  }
 0x105   :  { %2619 = vmatpush1.bf16.msra.mxu0 %v6509_v40  ;;  %2783 = vmatpush1.bf16.msra.mxu1 %v6511_v41  ;;  %v6567_v40 = vcombine.low %v479_v28, %v483_v29  ;;  %v6186_v41 = vcombine.high %v96_v35, %v100_v36  ;;  %v149_v28 = vld [vmem:[#allocation7 + $0x1b8] sm:$0xff] }
 0x106   :  { %2620 = vmatprep.subr.bf16.mxu0 %v6518_v42  ;;  %2784 = vmatprep.subr.bf16.mxu1 %v6520_v43  ;;  %v6188_v42 = vcombine.high %v97_v38, %v101_v39  ;;  %v104_v43 = vld [vmem:[#allocation7 + $0x50] sm:$0xff] }
 0x109   :  { %2621 = vmatpush1.bf16.msra.mxu0 %v6517_v48  ;;  %2785 = vmatpush1.bf16.msra.mxu1 %v6519_v49  ;;  %v6185_v48 = vcombine.low %v96_v35, %v100_v36  ;;  %v6187_v49 = vcombine.low %v97_v38, %v101_v39  ;;  %v156_v35 = vld [vmem:[#allocation7 + $0x1f0] sm:$0xff]  ;;  %v153_v36 = vld [vmem:[#allocation7 + $0x1d8] sm:$0xff]  ;;  %v6235_v39 = vcombine.low %v145_v27, %v149_v28 }
 0x10a   :  { %2622 = vmatprep.subr.bf16.mxu0 %v6526_v50  ;;  %2786 = vmatprep.subr.bf16.mxu1 %v6528_v51  ;;  %v6194_v50 = vcombine.high %v104_v43, %v108_v44  ;;  %v6196_v51 = vcombine.high %v105_v46, %v109_v47 }
 0x10d   :  { %2623 = vmatpush1.bf16.msra.mxu0 %v6525_v58  ;;  %2787 = vmatpush1.bf16.msra.mxu1 %v6527_v59  ;;  %v6193_v58 = vcombine.low %v104_v43, %v108_v44  ;;  %v6195_v59 = vcombine.low %v105_v46, %v109_v47  ;;  %v164_v43 = vld [vmem:[#allocation7 + $0x230] sm:$0xff]  ;;  %v161_v44 = vld [vmem:[#allocation7 + $0x218] sm:$0xff] }
 0x10e   :  { %2624 = vmatprep.subr.bf16.mxu0 %v6534_v60  ;;  %2788 = vmatprep.subr.bf16.mxu1 %v6536_v61  ;;  %v6202_v60 = vcombine.high %v112_v52, %v116_v54  ;;  %v6204_v61 = vcombine.high %v113_v55, %v117_v56 }
 0x111   :  { %2625 = vmatpush1.bf16.msra.mxu0 %v6533_v2  ;;  %2789 = vmatpush1.bf16.msra.mxu1 %v6535_v3  ;;  %v6201_v2 = vcombine.low %v112_v52, %v116_v54  ;;  %v6203_v3 = vcombine.low %v113_v55, %v117_v56  ;;  %v169_v52 = vld [vmem:[#allocation7 + $0x258] sm:$0xff] }
 0x112   :  { %2626 = vmatprep.subr.bf16.mxu0 %v6542_v4  ;;  %2790 = vmatprep.subr.bf16.mxu1 %v6544_v5  ;;  %v6210_v4 = vcombine.high %v120_v62, %v124_v63  ;;  %v6212_v5 = vcombine.high %v121_v0, %v125_v1  ;;  %v173_v54 = vld [vmem:[#allocation7 + $0x278] sm:$0xff] }
 0x115   :  { %2627 = vmatpush1.bf16.msra.mxu0 %v6541_v10  ;;  %2791 = vmatpush1.bf16.msra.mxu1 %v6543_v11  ;;  %v6209_v10 = vcombine.low %v120_v62, %v124_v63  ;;  %v6211_v11 = vcombine.low %v121_v0, %v125_v1  ;;  %v177_v62 = vld [vmem:[#allocation7 + $0x298] sm:$0xff]  ;;  %v6259_v1 = vcombine.low %v169_v52, %v173_v54 }
 0x116   :  { %2628 = vmatprep.subr.bf16.mxu0 %v6550_v13  ;;  %2792 = vmatprep.subr.bf16.mxu1 %v6552_v14  ;;  %v6218_v13 = vcombine.high %v128_v6, %v132_v7  ;;  %v136_v14 = vld [vmem:[#allocation7 + $0x150] sm:$0xff]  ;;  %v181_v63 = vld [vmem:[#allocation7 + $0x2b8] sm:$0xff] }
 0x117   :  { %v6225_v29 = vcombine.low %v136_v14, %v140_v16  ;;  %v185_v6 = vld [vmem:[#allocation7 + $0x2d8] sm:$0xff] }
 0x118   :  { %v189_v7 = vld [vmem:[#allocation7 + $0x2f8] sm:$0xff] }
 0x119   :  { %2629 = vmatpush1.bf16.msra.mxu0 %v6549_v20  ;;  %2793 = vmatpush1.bf16.msra.mxu1 %v6551_v21  ;;  %v6219_v20 = vcombine.low %v129_v8, %v133_v9  ;;  %v6226_v21 = vcombine.high %v136_v14, %v140_v16  ;;  %v193_v14 = vld [vmem:[#allocation7 + $0x318] sm:$0xff] }
 0x11a   :  { %2630 = vmatprep.subr.bf16.mxu0 %v6558_v23  ;;  %2794 = vmatprep.subr.bf16.mxu1 %v6560_v24  ;;  %v6228_v23 = vcombine.high %v137_v17, %v141_v18  ;;  %v144_v24 = vld [vmem:[#allocation7 + $0x190] sm:$0xff]  ;;  %v197_v16 = vld [vmem:[#allocation7 + $0x338] sm:$0xff] }
 0x11b   :  { %v6233_v38 = vcombine.low %v144_v24, %v148_v26 }
 0x11d   :  { %2631 = vmatpush1.bf16.msra.mxu0 %v6557_v30  ;;  %2795 = vmatpush1.bf16.msra.mxu1 %v6559_v31  ;;  %v6227_v30 = vcombine.low %v137_v17, %v141_v18  ;;  %v6234_v31 = vcombine.high %v144_v24, %v148_v26  ;;  %v6275_v18 = vcombine.low %v185_v6, %v189_v7  ;;  %v201_v24 = vld [vmem:[#allocation7 + $0x358] sm:$0xff] }
 0x11e   :  { %2641 = vmatprep.subr.bf16.mxu0 %v6566_v15  ;;  %2805 = vmatprep.subr.bf16.mxu1 %v6568_v33  ;;  %v6236_v15 = vcombine.high %v145_v27, %v149_v28  ;;  %v152_v33 = vld [vmem:[#allocation7 + $0x1d0] sm:$0xff]  ;;  %v205_v26 = vld [vmem:[#allocation7 + $0x378] sm:$0xff]  ;;  %v6283_v28 = vcombine.low %v193_v14, %v197_v16 }
 0x11f   :  { %v6241_v46 = vcombine.low %v152_v33, %v156_v35 }
 0x120   :  { %2633 = vmatmul.mubr.bf16.vlgmr.msra.gmra.mrb[0].mxu0 %v7564_v34  ;;  %2797 = vmatmul.mubr.bf16.vlgmr.msra.gmra.mrb[0].mxu1 %v7564_v34 }
 0x121   :  { %2642 = vmatpush1.bf16.msra.mxu0 %v6565_v37  ;;  %2806 = vmatpush1.bf16.msra.mxu1 %v6567_v40  ;;  %v157_v37 = vld [vmem:[#allocation7 + $0x1f8] sm:$0xff]  ;;  %v6242_v40 = vcombine.high %v152_v33, %v156_v35 }
 0x122   :  { %2673 = vmatprep.mubr.bf16.mxu0 %v7406_v25  ;;  %2837 = vmatprep.mubr.bf16.mxu1 %v7406_v25  ;;  %v6243_v47 = vcombine.low %v153_v36, %v157_v37  ;;  %v209_v33 = vld [vmem:[#allocation7 + $0x398] sm:$0xff] }
 0x123   :  { %2846 = vmatprep.subr.bf16.mxu0 %v6186_v41  ;;  %3010 = vmatprep.subr.bf16.mxu1 %v6188_v42  ;;  %v6244_v41 = vcombine.high %v153_v36, %v157_v37  ;;  %v160_v42 = vld [vmem:[#allocation7 + $0x210] sm:$0xff]  ;;  %v213_v35 = vld [vmem:[#allocation7 + $0x3b8] sm:$0xff]  ;;  %v6291_v37 = vcombine.low %v201_v24, %v205_v26 }
 0x124   :  { %v6249_v55 = vcombine.low %v160_v42, %v164_v43 }
 0x12c   :  { %6573 = vmatmul.mubr.msk.bf16.vlgmr.msra.gmra.mrb[0].mxu0 %vm2514_vm0, %v7085_v45  ;;  %6574 = vmatmul.mubr.msk.bf16.vlgmr.msra.gmra.mrb[0].mxu1 %vm2514_vm0, %v7085_v45  ;;  %v165_v45 = vld [vmem:[#allocation7 + $0x238] sm:$0xff] }
 0x12d   :  { %2847 = vmatpush1.bf16.msra.mxu0 %v6185_v48  ;;  %3011 = vmatpush1.bf16.msra.mxu1 %v6187_v49  ;;  %v6250_v48 = vcombine.high %v160_v42, %v164_v43  ;;  %v6252_v49 = vcombine.high %v161_v44, %v165_v45  ;;  %v6251_v56 = vcombine.low %v161_v44, %v165_v45  ;;  %v217_v42 = vld [vmem:[#allocation7 + $0x3d8] sm:$0xff] }
 0x12e   :  { %2848 = vmatprep.subr.bf16.mxu0 %v6194_v50  ;;  %3012 = vmatprep.subr.bf16.mxu1 %v6196_v51  ;;  %v168_v50 = vld [vmem:[#allocation7 + $0x250] sm:$0xff]  ;;  %v221_v43 = vld [vmem:[#allocation7 + $0x3f8] sm:$0xff]  ;;  %v6299_v45 = vcombine.low %v209_v33, %v213_v35 }
 0x12f   :  { %2878 = vmatprep.mubr.bf16.mxu0 %v7530_v57  ;;  %3042 = vmatprep.mubr.bf16.mxu1 %v7530_v57  ;;  %v6220_v57 = vcombine.high %v129_v8, %v133_v9  ;;  %v172_v51 = vld [vmem:[#allocation7 + $0x270] sm:$0xff]  ;;  %v6267_v9 = vcombine.low %v177_v62, %v181_v63 }
 0x130   :  { %v6257_v0 = vcombine.low %v168_v50, %v172_v51 }
 0x131   :  { %2849 = vmatpush1.bf16.msra.mxu0 %v6193_v58  ;;  %3013 = vmatpush1.bf16.msra.mxu1 %v6195_v59  ;;  %v6258_v58 = vcombine.high %v168_v50, %v172_v51  ;;  %v6260_v59 = vcombine.high %v169_v52, %v173_v54  ;;  %v225_v50 = vld [vmem:[#allocation7 + $0x418] sm:$0xff]  ;;  %v6307_v54 = vcombine.low %v217_v42, %v221_v43 }
 0x132   :  { %2850 = vmatprep.subr.bf16.mxu0 %v6202_v60  ;;  %3014 = vmatprep.subr.bf16.mxu1 %v6204_v61  ;;  %v176_v60 = vld [vmem:[#allocation7 + $0x290] sm:$0xff]  ;;  %v229_v51 = vld [vmem:[#allocation7 + $0x438] sm:$0xff] }
 0x133   :  { %v180_v61 = vld [vmem:[#allocation7 + $0x2b0] sm:$0xff] }
 0x134   :  { %v6265_v8 = vcombine.low %v176_v60, %v180_v61 }
 0x135   :  { %2851 = vmatpush1.bf16.msra.mxu0 %v6201_v2  ;;  %3015 = vmatpush1.bf16.msra.mxu1 %v6203_v3  ;;  %v6266_v2 = vcombine.high %v176_v60, %v180_v61  ;;  %v6268_v3 = vcombine.high %v177_v62, %v181_v63  ;;  %v233_v60 = vld [vmem:[#allocation7 + $0x458] sm:$0xff]  ;;  %v6315_v63 = vcombine.low %v225_v50, %v229_v51 }
 0x136   :  { %2852 = vmatprep.subr.bf16.mxu0 %v6210_v4  ;;  %3016 = vmatprep.subr.bf16.mxu1 %v6212_v5  ;;  %v184_v4 = vld [vmem:[#allocation7 + $0x2d0] sm:$0xff]  ;;  %v237_v61 = vld [vmem:[#allocation7 + $0x478] sm:$0xff] }
 0x137   :  { %v188_v5 = vld [vmem:[#allocation7 + $0x2f0] sm:$0xff] }
 0x138   :  { %v6273_v17 = vcombine.low %v184_v4, %v188_v5 }
 0x139   :  { %2853 = vmatpush1.bf16.msra.mxu0 %v6209_v10  ;;  %3017 = vmatpush1.bf16.msra.mxu1 %v6211_v11  ;;  %v6274_v10 = vcombine.high %v184_v4, %v188_v5  ;;  %v6276_v11 = vcombine.high %v185_v6, %v189_v7  ;;  %v241_v4 = vld [vmem:[#allocation7 + $0x498] sm:$0xff]  ;;  %v6323_v7 = vcombine.low %v233_v60, %v237_v61 }
 0x13a   :  { %2854 = vmatprep.subr.bf16.mxu0 %v6218_v13  ;;  %3018 = vmatprep.subr.bf16.mxu1 %v6220_v57  ;;  %v192_v13 = vld [vmem:[#allocation7 + $0x310] sm:$0xff]  ;;  %v245_v5 = vld [vmem:[#allocation7 + $0x4b8] sm:$0xff] }
 0x13b   :  { %v196_v57 = vld [vmem:[#allocation7 + $0x330] sm:$0xff] }
 0x13c   :  { %v6281_v27 = vcombine.low %v192_v13, %v196_v57 }
 0x13d   :  { %2855 = vmatpush1.bf16.msra.mxu0 %v6217_v19  ;;  %3019 = vmatpush1.bf16.msra.mxu1 %v6219_v20  ;;  %v6282_v19 = vcombine.high %v192_v13, %v196_v57  ;;  %v6284_v20 = vcombine.high %v193_v14, %v197_v16  ;;  %v249_v13 = vld [vmem:[#allocation7 + $0x4d8] sm:$0xff] }
 0x13e   :  { %2856 = vmatprep.subr.bf16.mxu0 %v6226_v21  ;;  %3020 = vmatprep.subr.bf16.mxu1 %v6228_v23  ;;  %v200_v21 = vld [vmem:[#allocation7 + $0x350] sm:$0xff]  ;;  %v253_v57 = vld [vmem:[#allocation7 + $0x4f8] sm:$0xff] }
 0x13f   :  { %v204_v23 = vld [vmem:[#allocation7 + $0x370] sm:$0xff] }
 0x140   :  { %v6289_v36 = vcombine.low %v200_v21, %v204_v23 }
 0x141   :  { %2857 = vmatpush1.bf16.msra.mxu0 %v6225_v29  ;;  %3021 = vmatpush1.bf16.msra.mxu1 %v6227_v30  ;;  %v6290_v29 = vcombine.high %v200_v21, %v204_v23  ;;  %v6292_v30 = vcombine.high %v201_v24, %v205_v26  ;;  %v261_v21 = vld [vmem:[#allocation7 + $0x538] sm:$0xff]  ;;  %v6339_v24 = vcombine.low %v249_v13, %v253_v57 }
 0x142   :  { %2858 = vmatprep.subr.bf16.mxu0 %v6234_v31  ;;  %3022 = vmatprep.subr.bf16.mxu1 %v6236_v15  ;;  %v208_v31 = vld [vmem:[#allocation7 + $0x390] sm:$0xff] }
 0x143   :  { %v212_v15 = vld [vmem:[#allocation7 + $0x3b0] sm:$0xff] }
 0x144   :  { %v6297_v44 = vcombine.low %v208_v31, %v212_v15 }
 0x145   :  { %2859 = vmatpush1.bf16.msra.mxu0 %v6233_v38  ;;  %3023 = vmatpush1.bf16.msra.mxu1 %v6235_v39  ;;  %v6298_v38 = vcombine.high %v208_v31, %v212_v15  ;;  %v6300_v39 = vcombine.high %v209_v33, %v213_v35 }
 0x146   :  { %2860 = vmatprep.subr.bf16.mxu0 %v6242_v40  ;;  %3024 = vmatprep.subr.bf16.mxu1 %v6244_v41  ;;  %v216_v40 = vld [vmem:[#allocation7 + $0x3d0] sm:$0xff] }
 0x147   :  { %v220_v41 = vld [vmem:[#allocation7 + $0x3f0] sm:$0xff] }
 0x148   :  { %v6305_v52 = vcombine.low %v216_v40, %v220_v41 }
 0x149   :  { %2861 = vmatpush1.bf16.msra.mxu0 %v6241_v46  ;;  %3025 = vmatpush1.bf16.msra.mxu1 %v6243_v47  ;;  %v6306_v46 = vcombine.high %v216_v40, %v220_v41  ;;  %v6308_v47 = vcombine.high %v217_v42, %v221_v43 }
 0x14a   :  { %2862 = vmatprep.subr.bf16.mxu0 %v6250_v48  ;;  %3026 = vmatprep.subr.bf16.mxu1 %v6252_v49  ;;  %v224_v48 = vld [vmem:[#allocation7 + $0x410] sm:$0xff] }
 0x14b   :  { %v228_v49 = vld [vmem:[#allocation7 + $0x430] sm:$0xff] }
 0x14c   :  { %v6313_v62 = vcombine.low %v224_v48, %v228_v49 }
 0x14d   :  { %2863 = vmatpush1.bf16.msra.mxu0 %v6249_v55  ;;  %3027 = vmatpush1.bf16.msra.mxu1 %v6251_v56  ;;  %v6314_v55 = vcombine.high %v224_v48, %v228_v49  ;;  %v6316_v56 = vcombine.high %v225_v50, %v229_v51 }
 0x14e   :  { %2864 = vmatprep.subr.bf16.mxu0 %v6258_v58  ;;  %3028 = vmatprep.subr.bf16.mxu1 %v6260_v59  ;;  %v232_v58 = vld [vmem:[#allocation7 + $0x450] sm:$0xff] }
 0x14f   :  { %v236_v59 = vld [vmem:[#allocation7 + $0x470] sm:$0xff] }
 0x150   :  { %v6321_v6 = vcombine.low %v232_v58, %v236_v59 }
 0x151   :  { %2865 = vmatpush1.bf16.msra.mxu0 %v6257_v0  ;;  %3029 = vmatpush1.bf16.msra.mxu1 %v6259_v1  ;;  %v6322_v0 = vcombine.high %v232_v58, %v236_v59  ;;  %v6324_v1 = vcombine.high %v233_v60, %v237_v61 }
 0x152   :  { %2866 = vmatprep.subr.bf16.mxu0 %v6266_v2  ;;  %3030 = vmatprep.subr.bf16.mxu1 %v6268_v3  ;;  %v240_v2 = vld [vmem:[#allocation7 + $0x490] sm:$0xff] }
 0x153   :  { %v244_v3 = vld [vmem:[#allocation7 + $0x4b0] sm:$0xff] }
 0x154   :  { %v6329_v14 = vcombine.low %v240_v2, %v244_v3 }
 0x155   :  { %2867 = vmatpush1.bf16.msra.mxu0 %v6265_v8  ;;  %3031 = vmatpush1.bf16.msra.mxu1 %v6267_v9  ;;  %v6330_v8 = vcombine.high %v240_v2, %v244_v3  ;;  %v6332_v9 = vcombine.high %v241_v4, %v245_v5 }
 0x156   :  { %2868 = vmatprep.subr.bf16.mxu0 %v6274_v10  ;;  %3032 = vmatprep.subr.bf16.mxu1 %v6276_v11  ;;  %v248_v10 = vld [vmem:[#allocation7 + $0x4d0] sm:$0xff] }
 0x157   :  { %v252_v11 = vld [vmem:[#allocation7 + $0x4f0] sm:$0xff] }
 0x158   :  { %v6338_v16 = vcombine.high %v248_v10, %v252_v11  ;;  %v6337_v23 = vcombine.low %v248_v10, %v252_v11 }
 0x159   :  { %2869 = vmatpush1.bf16.msra.mxu0 %v6273_v17  ;;  %3033 = vmatpush1.bf16.msra.mxu1 %v6275_v18  ;;  %v6340_v17 = vcombine.high %v249_v13, %v253_v57  ;;  %v256_v18 = vld [vmem:[#allocation7 + $0x510] sm:$0xff] }
 0x15a   :  { %2870 = vmatprep.subr.bf16.mxu0 %v6282_v19  ;;  %3034 = vmatprep.subr.bf16.mxu1 %v6284_v20  ;;  %v260_v19 = vld [vmem:[#allocation7 + $0x530] sm:$0xff]  ;;  %v257_v20 = vld [vmem:[#allocation7 + $0x518] sm:$0xff] }
 0x15b   :  { %v6346_v26 = vcombine.high %v256_v18, %v260_v19  ;;  %v6345_v31 = vcombine.low %v256_v18, %v260_v19  ;;  %v6347_v15 = vcombine.low %v257_v20, %v261_v21 }
 0x15d   :  { %2871 = vmatpush1.bf16.msra.mxu0 %v6281_v27  ;;  %3035 = vmatpush1.bf16.msra.mxu1 %v6283_v28  ;;  %v264_v27 = vld [vmem:[#allocation7 + $0x550] sm:$0xff] }
 0x15e   :  { %2872 = vmatprep.subr.bf16.mxu0 %v6290_v29  ;;  %3036 = vmatprep.subr.bf16.mxu1 %v6292_v30  ;;  %v268_v28 = vld [vmem:[#allocation7 + $0x570] sm:$0xff]  ;;  %v265_v29 = vld [vmem:[#allocation7 + $0x558] sm:$0xff] }
 0x15f   :  { %v269_v30 = vld [vmem:[#allocation7 + $0x578] sm:$0xff]  ;;  %v6354_v33 = vcombine.high %v264_v27, %v268_v28  ;;  %v6353_v40 = vcombine.low %v264_v27, %v268_v28 }
 0x160   :  { %v6356_v35 = vcombine.high %v265_v29, %v269_v30  ;;  %v6355_v41 = vcombine.low %v265_v29, %v269_v30 }
 0x161   :  { %2873 = vmatpush1.bf16.msra.mxu0 %v6289_v36  ;;  %3037 = vmatpush1.bf16.msra.mxu1 %v6291_v37  ;;  %v272_v36 = vld [vmem:[#allocation7 + $0x590] sm:$0xff] }
 0x162   :  { %2874 = vmatprep.subr.bf16.mxu0 %v6298_v38  ;;  %3038 = vmatprep.subr.bf16.mxu1 %v6300_v39  ;;  %v276_v37 = vld [vmem:[#allocation7 + $0x5b0] sm:$0xff]  ;;  %v273_v38 = vld [vmem:[#allocation7 + $0x598] sm:$0xff] }
 0x163   :  { %v277_v39 = vld [vmem:[#allocation7 + $0x5b8] sm:$0xff]  ;;  %v6362_v42 = vcombine.high %v272_v36, %v276_v37  ;;  %v6361_v48 = vcombine.low %v272_v36, %v276_v37 }
 0x164   :  { %v6364_v43 = vcombine.high %v273_v38, %v277_v39  ;;  %v6363_v49 = vcombine.low %v273_v38, %v277_v39 }
 0x165   :  { %2875 = vmatpush1.bf16.msra.mxu0 %v6297_v44  ;;  %3039 = vmatpush1.bf16.msra.mxu1 %v6299_v45  ;;  %v280_v44 = vld [vmem:[#allocation7 + $0x5d0] sm:$0xff] }
 0x166   :  { %2876 = vmatprep.subr.bf16.mxu0 %v6306_v46  ;;  %3040 = vmatprep.subr.bf16.mxu1 %v6308_v47  ;;  %v284_v45 = vld [vmem:[#allocation7 + $0x5f0] sm:$0xff]  ;;  %v281_v46 = vld [vmem:[#allocation7 + $0x5d8] sm:$0xff] }
 0x167   :  { %v285_v47 = vld [vmem:[#allocation7 + $0x5f8] sm:$0xff]  ;;  %v6370_v50 = vcombine.high %v280_v44, %v284_v45  ;;  %v6369_v58 = vcombine.low %v280_v44, %v284_v45 }
 0x168   :  { %v6372_v51 = vcombine.high %v281_v46, %v285_v47  ;;  %v6371_v59 = vcombine.low %v281_v46, %v285_v47 }
 0x169   :  { %2877 = vmatpush1.bf16.msra.mxu0 %v6305_v52  ;;  %3041 = vmatpush1.bf16.msra.mxu1 %v6307_v54  ;;  %v288_v52 = vld [vmem:[#allocation7 + $0x610] sm:$0xff] }
 0x16a   :  { %2887 = vmatprep.subr.bf16.mxu0 %v6314_v55  ;;  %3051 = vmatprep.subr.bf16.mxu1 %v6316_v56  ;;  %v292_v54 = vld [vmem:[#allocation7 + $0x630] sm:$0xff]  ;;  %v289_v55 = vld [vmem:[#allocation7 + $0x618] sm:$0xff] }
 0x16b   :  { %v293_v56 = vld [vmem:[#allocation7 + $0x638] sm:$0xff]  ;;  %v6378_v60 = vcombine.high %v288_v52, %v292_v54  ;;  %v6377_v2 = vcombine.low %v288_v52, %v292_v54 }
 0x16c   :  { %2879 = vmatmul.mubr.bf16.vlgmr.msra.gmra.mrb[4].mxu0 %v7536_v12  ;;  %3043 = vmatmul.mubr.bf16.vlgmr.msra.gmra.mrb[4].mxu1 %v7536_v12  ;;  %v6331_v12 = vcombine.low %v241_v4, %v245_v5  ;;  %v6380_v61 = vcombine.high %v289_v55, %v293_v56  ;;  %v6379_v3 = vcombine.low %v289_v55, %v293_v56 }
 0x16d   :  { %2888 = vmatpush1.bf16.msra.mxu0 %v6313_v62  ;;  %3052 = vmatpush1.bf16.msra.mxu1 %v6315_v63  ;;  %v296_v62 = vld [vmem:[#allocation7 + $0x650] sm:$0xff] }
 0x16e   :  { %2889 = vmatprep.subr.bf16.mxu0 %v6322_v0  ;;  %3053 = vmatprep.subr.bf16.mxu1 %v6324_v1  ;;  %v300_v63 = vld [vmem:[#allocation7 + $0x670] sm:$0xff]  ;;  %v297_v0 = vld [vmem:[#allocation7 + $0x658] sm:$0xff] }
 0x16f   :  { %2919 = vmatprep.mubr.bf16.mxu0 %v7542_v22  ;;  %3083 = vmatprep.mubr.bf16.mxu1 %v7542_v22  ;;  %v6348_v22 = vcombine.high %v257_v20, %v261_v21  ;;  %v301_v1 = vld [vmem:[#allocation7 + $0x678] sm:$0xff]  ;;  %v6386_v4 = vcombine.high %v296_v62, %v300_v63  ;;  %v6385_v10 = vcombine.low %v296_v62, %v300_v63 }
 0x170   :  { %v6388_v5 = vcombine.high %v297_v0, %v301_v1  ;;  %v6387_v11 = vcombine.low %v297_v0, %v301_v1 }
 0x171   :  { %2890 = vmatpush1.bf16.msra.mxu0 %v6321_v6  ;;  %3054 = vmatpush1.bf16.msra.mxu1 %v6323_v7  ;;  %v304_v6 = vld [vmem:[#allocation7 + $0x690] sm:$0xff] }
 0x172   :  { %2891 = vmatprep.subr.bf16.mxu0 %v6330_v8  ;;  %3055 = vmatprep.subr.bf16.mxu1 %v6332_v9  ;;  %v308_v7 = vld [vmem:[#allocation7 + $0x6b0] sm:$0xff]  ;;  %v305_v8 = vld [vmem:[#allocation7 + $0x698] sm:$0xff] }
 0x173   :  { %v309_v9 = vld [vmem:[#allocation7 + $0x6b8] sm:$0xff]  ;;  %v6394_v13 = vcombine.high %v304_v6, %v308_v7  ;;  %v6393_v18 = vcombine.low %v304_v6, %v308_v7 }
 0x174   :  { %v6396_v57 = vcombine.high %v305_v8, %v309_v9  ;;  %v6395_v19 = vcombine.low %v305_v8, %v309_v9 }
 0x175   :  { %2892 = vmatpush1.bf16.msra.mxu0 %v6329_v14  ;;  %3056 = vmatpush1.bf16.msra.mxu1 %v6331_v12  ;;  %v312_v14 = vld [vmem:[#allocation7 + $0x6d0] sm:$0xff] }
 0x176   :  { %2893 = vmatprep.subr.bf16.mxu0 %v6338_v16  ;;  %3057 = vmatprep.subr.bf16.mxu1 %v6340_v17  ;;  %v316_v12 = vld [vmem:[#allocation7 + $0x6f0] sm:$0xff]  ;;  %v313_v16 = vld [vmem:[#allocation7 + $0x6d8] sm:$0xff] }
 0x177   :  { %v317_v17 = vld [vmem:[#allocation7 + $0x6f8] sm:$0xff]  ;;  %v6402_v20 = vcombine.high %v312_v14, %v316_v12  ;;  %v6401_v27 = vcombine.low %v312_v14, %v316_v12 }
 0x178   :  { %v6404_v21 = vcombine.high %v313_v16, %v317_v17  ;;  %v6403_v28 = vcombine.low %v313_v16, %v317_v17 }
 0x179   :  { %2894 = vmatpush1.bf16.msra.mxu0 %v6337_v23  ;;  %3058 = vmatpush1.bf16.msra.mxu1 %v6339_v24  ;;  %v320_v23 = vld [vmem:[#allocation7 + $0x710] sm:$0xff] }
 0x17a   :  { %2895 = vmatprep.subr.bf16.mxu0 %v6346_v26  ;;  %3059 = vmatprep.subr.bf16.mxu1 %v6348_v22  ;;  %v324_v24 = vld [vmem:[#allocation7 + $0x730] sm:$0xff]  ;;  %v321_v26 = vld [vmem:[#allocation7 + $0x718] sm:$0xff] }
 0x17b   :  { %v325_v22 = vld [vmem:[#allocation7 + $0x738] sm:$0xff]  ;;  %v6410_v29 = vcombine.high %v320_v23, %v324_v24  ;;  %v6409_v36 = vcombine.low %v320_v23, %v324_v24 }
 0x17c   :  { %v6412_v30 = vcombine.high %v321_v26, %v325_v22  ;;  %v6411_v37 = vcombine.low %v321_v26, %v325_v22  ;;  %v384_v22 = vld [vmem:[#allocation7 + $0x910] sm:$0xff] }
 0x17d   :  { %2896 = vmatpush1.bf16.msra.mxu0 %v6345_v31  ;;  %3060 = vmatpush1.bf16.msra.mxu1 %v6347_v15  ;;  %v328_v31 = vld [vmem:[#allocation7 + $0x750] sm:$0xff] }
 0x17e   :  { %2897 = vmatprep.subr.bf16.mxu0 %v6354_v33  ;;  %3061 = vmatprep.subr.bf16.mxu1 %v6356_v35  ;;  %v332_v15 = vld [vmem:[#allocation7 + $0x770] sm:$0xff]  ;;  %v329_v33 = vld [vmem:[#allocation7 + $0x758] sm:$0xff] }
 0x17f   :  { %v333_v35 = vld [vmem:[#allocation7 + $0x778] sm:$0xff]  ;;  %v6418_v38 = vcombine.high %v328_v31, %v332_v15  ;;  %v6417_v44 = vcombine.low %v328_v31, %v332_v15 }
 0x180   :  { %v6420_v39 = vcombine.high %v329_v33, %v333_v35  ;;  %v6419_v45 = vcombine.low %v329_v33, %v333_v35  ;;  %v392_v33 = vld [vmem:[#allocation7 + $0x950] sm:$0xff] }
 0x181   :  { %2898 = vmatpush1.bf16.msra.mxu0 %v6353_v40  ;;  %3062 = vmatpush1.bf16.msra.mxu1 %v6355_v41  ;;  %v336_v40 = vld [vmem:[#allocation7 + $0x790] sm:$0xff] }
 0x182   :  { %2899 = vmatprep.subr.bf16.mxu0 %v6362_v42  ;;  %3063 = vmatprep.subr.bf16.mxu1 %v6364_v43  ;;  %v340_v41 = vld [vmem:[#allocation7 + $0x7b0] sm:$0xff]  ;;  %v337_v42 = vld [vmem:[#allocation7 + $0x798] sm:$0xff] }
 0x183   :  { %v341_v43 = vld [vmem:[#allocation7 + $0x7b8] sm:$0xff]  ;;  %v6426_v46 = vcombine.high %v336_v40, %v340_v41  ;;  %v6425_v52 = vcombine.low %v336_v40, %v340_v41  ;;  %v396_v35 = vld [vmem:[#allocation7 + $0x970] sm:$0xff] }
 0x184   :  { %v6428_v47 = vcombine.high %v337_v42, %v341_v43  ;;  %v6427_v54 = vcombine.low %v337_v42, %v341_v43  ;;  %v6482_v40 = vcombine.high %v392_v33, %v396_v35  ;;  %v400_v42 = vld [vmem:[#allocation7 + $0x990] sm:$0xff] }
 0x185   :  { %2900 = vmatpush1.bf16.msra.mxu0 %v6361_v48  ;;  %3064 = vmatpush1.bf16.msra.mxu1 %v6363_v49  ;;  %v344_v48 = vld [vmem:[#allocation7 + $0x7d0] sm:$0xff] }
 0x186   :  { %2901 = vmatprep.subr.bf16.mxu0 %v6370_v50  ;;  %3065 = vmatprep.subr.bf16.mxu1 %v6372_v51  ;;  %v348_v49 = vld [vmem:[#allocation7 + $0x7f0] sm:$0xff]  ;;  %v345_v50 = vld [vmem:[#allocation7 + $0x7d8] sm:$0xff] }
 0x187   :  { %v349_v51 = vld [vmem:[#allocation7 + $0x7f8] sm:$0xff]  ;;  %v6434_v55 = vcombine.high %v344_v48, %v348_v49  ;;  %v6433_v62 = vcombine.low %v344_v48, %v348_v49  ;;  %v404_v43 = vld [vmem:[#allocation7 + $0x9b0] sm:$0xff] }
 0x188   :  { %v6436_v56 = vcombine.high %v345_v50, %v349_v51  ;;  %v6435_v63 = vcombine.low %v345_v50, %v349_v51  ;;  %v6490_v48 = vcombine.high %v400_v42, %v404_v43  ;;  %v408_v50 = vld [vmem:[#allocation7 + $0x9d0] sm:$0xff] }
 0x189   :  { %2902 = vmatpush1.bf16.msra.mxu0 %v6369_v58  ;;  %3066 = vmatpush1.bf16.msra.mxu1 %v6371_v59  ;;  %v352_v58 = vld [vmem:[#allocation7 + $0x810] sm:$0xff] }
 0x18a   :  { %2903 = vmatprep.subr.bf16.mxu0 %v6378_v60  ;;  %3067 = vmatprep.subr.bf16.mxu1 %v6380_v61  ;;  %v356_v59 = vld [vmem:[#allocation7 + $0x830] sm:$0xff]  ;;  %v353_v60 = vld [vmem:[#allocation7 + $0x818] sm:$0xff] }
 0x18b   :  { %v357_v61 = vld [vmem:[#allocation7 + $0x838] sm:$0xff]  ;;  %v6442_v0 = vcombine.high %v352_v58, %v356_v59  ;;  %v6441_v6 = vcombine.low %v352_v58, %v356_v59  ;;  %v412_v51 = vld [vmem:[#allocation7 + $0x9f0] sm:$0xff] }
 0x18c   :  { %v6444_v1 = vcombine.high %v353_v60, %v357_v61  ;;  %v6443_v7 = vcombine.low %v353_v60, %v357_v61  ;;  %v6498_v58 = vcombine.high %v408_v50, %v412_v51  ;;  %v416_v60 = vld [vmem:[#allocation7 + $0xa10] sm:$0xff] }
 0x18d   :  { %2904 = vmatpush1.bf16.msra.mxu0 %v6377_v2  ;;  %3068 = vmatpush1.bf16.msra.mxu1 %v6379_v3  ;;  %v360_v2 = vld [vmem:[#allocation7 + $0x850] sm:$0xff] }
 0x18e   :  { %2905 = vmatprep.subr.bf16.mxu0 %v6386_v4  ;;  %3069 = vmatprep.subr.bf16.mxu1 %v6388_v5  ;;  %v364_v3 = vld [vmem:[#allocation7 + $0x870] sm:$0xff]  ;;  %v361_v4 = vld [vmem:[#allocation7 + $0x858] sm:$0xff] }
 0x18f   :  { %v365_v5 = vld [vmem:[#allocation7 + $0x878] sm:$0xff]  ;;  %v6450_v8 = vcombine.high %v360_v2, %v364_v3  ;;  %v6449_v14 = vcombine.low %v360_v2, %v364_v3  ;;  %v420_v61 = vld [vmem:[#allocation7 + $0xa30] sm:$0xff] }
 0x190   :  { %v6452_v9 = vcombine.high %v361_v4, %v365_v5  ;;  %v6451_v12 = vcombine.low %v361_v4, %v365_v5  ;;  %v6506_v2 = vcombine.high %v416_v60, %v420_v61  ;;  %v424_v4 = vld [vmem:[#allocation7 + $0xa50] sm:$0xff] }
 0x191   :  { %2906 = vmatpush1.bf16.msra.mxu0 %v6385_v10  ;;  %3070 = vmatpush1.bf16.msra.mxu1 %v6387_v11  ;;  %v368_v10 = vld [vmem:[#allocation7 + $0x890] sm:$0xff] }
 0x192   :  { %2907 = vmatprep.subr.bf16.mxu0 %v6394_v13  ;;  %3071 = vmatprep.subr.bf16.mxu1 %v6396_v57  ;;  %v372_v11 = vld [vmem:[#allocation7 + $0x8b0] sm:$0xff]  ;;  %v369_v13 = vld [vmem:[#allocation7 + $0x898] sm:$0xff] }
 0x193   :  { %v373_v57 = vld [vmem:[#allocation7 + $0x8b8] sm:$0xff]  ;;  %v6458_v16 = vcombine.high %v368_v10, %v372_v11  ;;  %v6457_v23 = vcombine.low %v368_v10, %v372_v11  ;;  %v428_v5 = vld [vmem:[#allocation7 + $0xa70] sm:$0xff] }
 0x194   :  { %v6460_v17 = vcombine.high %v369_v13, %v373_v57  ;;  %v6514_v10 = vcombine.high %v424_v4, %v428_v5 }
 0x195   :  { %2908 = vmatpush1.bf16.msra.mxu0 %v6393_v18  ;;  %3072 = vmatpush1.bf16.msra.mxu1 %v6395_v19  ;;  %v376_v18 = vld [vmem:[#allocation7 + $0x8d0] sm:$0xff] }
 0x196   :  { %2909 = vmatprep.subr.bf16.mxu0 %v6402_v20  ;;  %3073 = vmatprep.subr.bf16.mxu1 %v6404_v21  ;;  %v380_v19 = vld [vmem:[#allocation7 + $0x8f0] sm:$0xff]  ;;  %v377_v20 = vld [vmem:[#allocation7 + $0x8d8] sm:$0xff] }
 0x197   :  { %v381_v21 = vld [vmem:[#allocation7 + $0x8f8] sm:$0xff]  ;;  %v6466_v24 = vcombine.high %v376_v18, %v380_v19 }
 0x198   :  { %v6468_v26 = vcombine.high %v377_v20, %v381_v21  ;;  %v6467_v31 = vcombine.low %v377_v20, %v381_v21  ;;  %v440_v20 = vld [vmem:[#allocation7 + $0xad0] sm:$0xff] }
 0x199   :  { %2910 = vmatpush1.bf16.msra.mxu0 %v6401_v27  ;;  %3074 = vmatpush1.bf16.msra.mxu1 %v6403_v28  ;;  %v388_v27 = vld [vmem:[#allocation7 + $0x930] sm:$0xff]  ;;  %v385_v28 = vld [vmem:[#allocation7 + $0x918] sm:$0xff] }
 0x19a   :  { %2911 = vmatprep.subr.bf16.mxu0 %v6410_v29  ;;  %3075 = vmatprep.subr.bf16.mxu1 %v6412_v30  ;;  %v389_v29 = vld [vmem:[#allocation7 + $0x938] sm:$0xff]  ;;  %v6465_v30 = vcombine.low %v376_v18, %v380_v19  ;;  %v6474_v15 = vcombine.high %v384_v22, %v388_v27  ;;  %v444_v21 = vld [vmem:[#allocation7 + $0xaf0] sm:$0xff] }
 0x19d   :  { %2912 = vmatpush1.bf16.msra.mxu0 %v6409_v36  ;;  %3076 = vmatpush1.bf16.msra.mxu1 %v6411_v37  ;;  %v393_v36 = vld [vmem:[#allocation7 + $0x958] sm:$0xff] }
 0x19e   :  { %2913 = vmatprep.subr.bf16.mxu0 %v6418_v38  ;;  %3077 = vmatprep.subr.bf16.mxu1 %v6420_v39  ;;  %v397_v37 = vld [vmem:[#allocation7 + $0x978] sm:$0xff]  ;;  %v6473_v38 = vcombine.low %v384_v22, %v388_v27  ;;  %v6475_v39 = vcombine.low %v385_v28, %v389_v29  ;;  %v6530_v22 = vcombine.high %v440_v20, %v444_v21 }
 0x19f   :  { %v6484_v41 = vcombine.high %v393_v36, %v397_v37 }
 0x1a1   :  { %2914 = vmatpush1.bf16.msra.mxu0 %v6417_v44  ;;  %3078 = vmatpush1.bf16.msra.mxu1 %v6419_v45  ;;  %v401_v44 = vld [vmem:[#allocation7 + $0x998] sm:$0xff] }
 0x1a2   :  { %2915 = vmatprep.subr.bf16.mxu0 %v6426_v46  ;;  %3079 = vmatprep.subr.bf16.mxu1 %v6428_v47  ;;  %v405_v45 = vld [vmem:[#allocation7 + $0x9b8] sm:$0xff]  ;;  %v6481_v46 = vcombine.low %v392_v33, %v396_v35  ;;  %v6483_v47 = vcombine.low %v393_v36, %v397_v37  ;;  %v456_v36 = vld [vmem:[#allocation7 + $0xb50] sm:$0xff] }
 0x1a3   :  { %v6492_v49 = vcombine.high %v401_v44, %v405_v45  ;;  %v460_v37 = vld [vmem:[#allocation7 + $0xb70] sm:$0xff] }
 0x1a5   :  { %2916 = vmatpush1.bf16.msra.mxu0 %v6425_v52  ;;  %3080 = vmatpush1.bf16.msra.mxu1 %v6427_v54  ;;  %v409_v52 = vld [vmem:[#allocation7 + $0x9d8] sm:$0xff] }
 0x1a6   :  { %2917 = vmatprep.subr.bf16.mxu0 %v6434_v55  ;;  %3081 = vmatprep.subr.bf16.mxu1 %v6436_v56  ;;  %v413_v54 = vld [vmem:[#allocation7 + $0x9f8] sm:$0xff]  ;;  %v6489_v55 = vcombine.low %v400_v42, %v404_v43  ;;  %v6491_v56 = vcombine.low %v401_v44, %v405_v45  ;;  %v6546_v42 = vcombine.high %v456_v36, %v460_v37  ;;  %v464_v44 = vld [vmem:[#allocation7 + $0xb90] sm:$0xff] }
 0x1a7   :  { %v6500_v59 = vcombine.high %v409_v52, %v413_v54  ;;  %v468_v45 = vld [vmem:[#allocation7 + $0xbb0] sm:$0xff] }
 0x1a9   :  { %2918 = vmatpush1.bf16.msra.mxu0 %v6433_v62  ;;  %3082 = vmatpush1.bf16.msra.mxu1 %v6435_v63  ;;  %v417_v62 = vld [vmem:[#allocation7 + $0xa18] sm:$0xff] }
 0x1aa   :  { %2928 = vmatprep.subr.bf16.mxu0 %v6442_v0  ;;  %3092 = vmatprep.subr.bf16.mxu1 %v6444_v1  ;;  %v421_v63 = vld [vmem:[#allocation7 + $0xa38] sm:$0xff]  ;;  %v6497_v0 = vcombine.low %v408_v50, %v412_v51  ;;  %v6499_v1 = vcombine.low %v409_v52, %v413_v54  ;;  %v6554_v50 = vcombine.high %v464_v44, %v468_v45  ;;  %v472_v52 = vld [vmem:[#allocation7 + $0xbd0] sm:$0xff] }
 0x1ab   :  { %v6508_v3 = vcombine.high %v417_v62, %v421_v63  ;;  %v476_v54 = vld [vmem:[#allocation7 + $0xbf0] sm:$0xff] }
 0x1ac   :  { %2920 = vmatmul.mubr.bf16.vlgmr.msra.gmra.mrb[4].mxu0 %v7550_v53  ;;  %3084 = vmatmul.mubr.bf16.vlgmr.msra.gmra.mrb[4].mxu1 %v7550_v53  ;;  %v6459_v53 = vcombine.low %v369_v13, %v373_v57  ;;  %v432_v13 = vld [vmem:[#allocation7 + $0xa90] sm:$0xff] }
 0x1ad   :  { %2929 = vmatpush1.bf16.msra.mxu0 %v6441_v6  ;;  %3093 = vmatpush1.bf16.msra.mxu1 %v6443_v7  ;;  %v425_v6 = vld [vmem:[#allocation7 + $0xa58] sm:$0xff]  ;;  %v436_v57 = vld [vmem:[#allocation7 + $0xab0] sm:$0xff] }
 0x1ae   :  { %2930 = vmatprep.subr.bf16.mxu0 %v6450_v8  ;;  %3094 = vmatprep.subr.bf16.mxu1 %v6452_v9  ;;  %v429_v7 = vld [vmem:[#allocation7 + $0xa78] sm:$0xff]  ;;  %v6505_v8 = vcombine.low %v416_v60, %v420_v61  ;;  %v6507_v9 = vcombine.low %v417_v62, %v421_v63  ;;  %v6522_v18 = vcombine.high %v432_v13, %v436_v57  ;;  %v480_v62 = vld [vmem:[#allocation7 + $0xc10] sm:$0xff] }
 0x1af   :  { %2960 = vmatprep.mubr.bf16.mxu0 %v7556_v32  ;;  %3124 = vmatprep.mubr.bf16.mxu1 %v7556_v32  ;;  %v6476_v32 = vcombine.high %v385_v28, %v389_v29  ;;  %v6516_v11 = vcombine.high %v425_v6, %v429_v7  ;;  %v448_v28 = vld [vmem:[#allocation7 + $0xb10] sm:$0xff]  ;;  %v6562_v60 = vcombine.high %v472_v52, %v476_v54 }
 0x1b0   :  { %v452_v29 = vld [vmem:[#allocation7 + $0xb30] sm:$0xff] }
 0x1b1   :  { %2931 = vmatpush1.bf16.msra.mxu0 %v6449_v14  ;;  %3095 = vmatpush1.bf16.msra.mxu1 %v6451_v12  ;;  %v433_v14 = vld [vmem:[#allocation7 + $0xa98] sm:$0xff]  ;;  %v6538_v33 = vcombine.high %v448_v28, %v452_v29  ;;  %v484_v63 = vld [vmem:[#allocation7 + $0xc30] sm:$0xff] }
 0x1b2   :  { %2932 = vmatprep.subr.bf16.mxu0 %v6458_v16  ;;  %3096 = vmatprep.subr.bf16.mxu1 %v6460_v17  ;;  %v437_v12 = vld [vmem:[#allocation7 + $0xab8] sm:$0xff]  ;;  %v6513_v16 = vcombine.low %v424_v4, %v428_v5  ;;  %v6515_v17 = vcombine.low %v425_v6, %v429_v7  ;;  %v6570_v4 = vcombine.high %v480_v62, %v484_v63 }
 0x1b3   :  { %v6524_v19 = vcombine.high %v433_v14, %v437_v12  ;;  %v6569_v6 = vcombine.low %v480_v62, %v484_v63 }
 0x1b5   :  { %2933 = vmatpush1.bf16.msra.mxu0 %v6457_v23  ;;  %3097 = vmatpush1.bf16.msra.mxu1 %v6459_v53  ;;  %v441_v23 = vld [vmem:[#allocation7 + $0xad8] sm:$0xff] }
 0x1b6   :  { %2934 = vmatprep.subr.bf16.mxu0 %v6466_v24  ;;  %3098 = vmatprep.subr.bf16.mxu1 %v6468_v26  ;;  %v445_v53 = vld [vmem:[#allocation7 + $0xaf8] sm:$0xff]  ;;  %v6521_v24 = vcombine.low %v432_v13, %v436_v57  ;;  %v6523_v26 = vcombine.low %v433_v14, %v437_v12  ;;  %v7231_v13 = vld [vmem:[#allocation2 + $0x18] ss:$0 sps:$4 sm:$0xff]   ;;  %v7091_v57 = vld [vmem:[#allocation8 + $0x8] sm:$0xff]  }
 0x1b7   :  { %v6532_v27 = vcombine.high %v441_v23, %v445_v53  ;;  %v7093_v14 = vld [vmem:[#allocation8 + $0x50] sm:$0xff]  }
 0x1b8   :  { %v7094_v12 = vld [vmem:[#allocation8 + $0x10] sm:$0xff]  }
 0x1b9   :  { %2935 = vmatpush1.bf16.msra.mxu0 %v6465_v30  ;;  %3099 = vmatpush1.bf16.msra.mxu1 %v6467_v31  ;;  %v449_v30 = vld [vmem:[#allocation7 + $0xb18] sm:$0xff] }
 0x1ba   :  { %2936 = vmatprep.subr.bf16.mxu0 %v6474_v15  ;;  %3100 = vmatprep.subr.bf16.mxu1 %v6476_v32  ;;  %v453_v31 = vld [vmem:[#allocation7 + $0xb38] sm:$0xff]  ;;  %v6529_v15 = vcombine.low %v440_v20, %v444_v21  ;;  %v6531_v32 = vcombine.low %v441_v23, %v445_v53 }
 0x1bb   :  { %v6540_v35 = vcombine.high %v449_v30, %v453_v31  ;;  %v7097_v53 = vld [vmem:[#allocation8 + $0x18] sm:$0xff]  }
 0x1bd   :  { %2937 = vmatpush1.bf16.msra.mxu0 %v6473_v38  ;;  %3101 = vmatpush1.bf16.msra.mxu1 %v6475_v39  ;;  %v457_v38 = vld [vmem:[#allocation7 + $0xb58] sm:$0xff] }
 0x1be   :  { %2938 = vmatprep.subr.bf16.mxu0 %v6482_v40  ;;  %3102 = vmatprep.subr.bf16.mxu1 %v6484_v41  ;;  %v461_v39 = vld [vmem:[#allocation7 + $0xb78] sm:$0xff]  ;;  %v6537_v40 = vcombine.low %v448_v28, %v452_v29  ;;  %v6539_v41 = vcombine.low %v449_v30, %v453_v31  ;;  %v7100_v29 = vld [vmem:[#allocation8 + $0x20] sm:$0xff]   ;;  %v7102_v31 = vld [vmem:[#allocation8 + $0x68] sm:$0xff]  }
 0x1bf   :  { %v6548_v43 = vcombine.high %v457_v38, %v461_v39  ;;  %v7098_v30 = vld [vmem:[#allocation8 + $0xa0] sm:$0xff]  }
 0x1c1   :  { %2939 = vmatpush1.bf16.msra.mxu0 %v6481_v46  ;;  %3103 = vmatpush1.bf16.msra.mxu1 %v6483_v47  ;;  %v465_v46 = vld [vmem:[#allocation7 + $0xb98] sm:$0xff] }
 0x1c2   :  { %2940 = vmatprep.subr.bf16.mxu0 %v6490_v48  ;;  %3104 = vmatprep.subr.bf16.mxu1 %v6492_v49  ;;  %v469_v47 = vld [vmem:[#allocation7 + $0xbb8] sm:$0xff]  ;;  %v6545_v48 = vcombine.low %v456_v36, %v460_v37  ;;  %v6547_v49 = vcombine.low %v457_v38, %v461_v39  ;;  %v7106_v36 = vld [vmem:[#allocation8 + $0x30] sm:$0xff]  }
 0x1c3   :  { %v6556_v51 = vcombine.high %v465_v46, %v469_v47  ;;  %v7107_v37 = vld [vmem:[#allocation8 + $0xb8] sm:$0xff]  }
 0x1c4   :  { %v7108_v38 = vld [vmem:[#allocation8 + $0x78] sm:$0xff]  }
 0x1c5   :  { %2941 = vmatpush1.bf16.msra.mxu0 %v6489_v55  ;;  %3105 = vmatpush1.bf16.msra.mxu1 %v6491_v56  ;;  %v473_v55 = vld [vmem:[#allocation7 + $0xbd8] sm:$0xff] }
 0x1c6   :  { %2942 = vmatprep.subr.bf16.mxu0 %v6498_v58  ;;  %3106 = vmatprep.subr.bf16.mxu1 %v6500_v59  ;;  %v477_v56 = vld [vmem:[#allocation7 + $0xbf8] sm:$0xff]  ;;  %v6553_v58 = vcombine.low %v464_v44, %v468_v45  ;;  %v6555_v59 = vcombine.low %v465_v46, %v469_v47 }
 0x1c7   :  { %v6564_v61 = vcombine.high %v473_v55, %v477_v56  ;;  %v7109_v39 = vld [vmem:[#allocation8 + $0x38] sm:$0xff]  }
 0x1c8   :  { %v487_v44 = vld [vmem:[#allocation10] ss:$8 sm:$0xf0] }
 0x1c9   :  { %2943 = vmatpush1.bf16.msra.mxu0 %v6497_v0  ;;  %3107 = vmatpush1.bf16.msra.mxu1 %v6499_v1  ;;  %v481_v0 = vld [vmem:[#allocation7 + $0xc18] sm:$0xff] }
 0x1ca   :  { %2944 = vmatprep.subr.bf16.mxu0 %v6506_v2  ;;  %3108 = vmatprep.subr.bf16.mxu1 %v6508_v3  ;;  %v485_v1 = vld [vmem:[#allocation7 + $0xc38] sm:$0xff]  ;;  %v6561_v2 = vcombine.low %v472_v52, %v476_v54  ;;  %v6563_v3 = vcombine.low %v473_v55, %v477_v56 }
 0x1cb   :  { %v6572_v5 = vcombine.high %v481_v0, %v485_v1  ;;  %v6571_v7 = vcombine.low %v481_v0, %v485_v1 }
 0x1cd   :  { %2945 = vmatpush1.bf16.msra.mxu0 %v6505_v8  ;;  %3109 = vmatpush1.bf16.msra.mxu1 %v6507_v9  ;;  %v7087_v8 = vld [vmem:[#allocation8 + $0x40] sm:$0xff]  }
 0x1ce   :  { %2946 = vmatprep.subr.bf16.mxu0 %v6514_v10  ;;  %3110 = vmatprep.subr.bf16.mxu1 %v6516_v11  ;;  %v7088_v9 = vld [vmem:[#allocation8] sm:$0xff]   ;;  %v7090_v11 = vld [vmem:[#allocation8 + $0x48] sm:$0xff]  }
 0x1cf   :  { %v7086_v10 = vld [vmem:[#allocation8 + $0x80] sm:$0xff]  }
 0x1d1   :  { %2947 = vmatpush1.bf16.msra.mxu0 %v6513_v16  ;;  %3111 = vmatpush1.bf16.msra.mxu1 %v6515_v17  ;;  %v7092_v16 = vld [vmem:[#allocation8 + $0x90] sm:$0xff]   ;;  %v7096_v17 = vld [vmem:[#allocation8 + $0x58] sm:$0xff]  }
 0x1d2   :  { %2948 = vmatprep.subr.bf16.mxu0 %v6522_v18  ;;  %3112 = vmatprep.subr.bf16.mxu1 %v6524_v19 }
 0x1d5   :  { %2949 = vmatpush1.bf16.msra.mxu0 %v6521_v24  ;;  %3113 = vmatpush1.bf16.msra.mxu1 %v6523_v26 }
 0x1d6   :  { %2950 = vmatprep.subr.bf16.mxu0 %v6530_v22  ;;  %3114 = vmatprep.subr.bf16.mxu1 %v6532_v27  ;;  %v7095_v22 = vld [vmem:[#allocation8 + $0x98] sm:$0xff]   ;;  %v7099_v27 = vld [vmem:[#allocation8 + $0x60] sm:$0xff]  }
 0x1d9   :  { %2951 = vmatpush1.bf16.msra.mxu0 %v6529_v15  ;;  %3115 = vmatpush1.bf16.msra.mxu1 %v6531_v32  ;;  %v7101_v15 = vld [vmem:[#allocation8 + $0xa8] sm:$0xff]  }
 0x1da   :  { %2952 = vmatprep.subr.bf16.mxu0 %v6538_v33  ;;  %3116 = vmatprep.subr.bf16.mxu1 %v6540_v35  ;;  %v7103_v32 = vld [vmem:[#allocation8 + $0x28] sm:$0xff]   ;;  %v7104_v33 = vld [vmem:[#allocation8 + $0xb0] sm:$0xff]  }
 0x1db   :  { %v7105_v35 = vld [vmem:[#allocation8 + $0x70] sm:$0xff]  }
 0x1dd   :  { %2953 = vmatpush1.bf16.msra.mxu0 %v6537_v40  ;;  %3117 = vmatpush1.bf16.msra.mxu1 %v6539_v41  ;;  %v7110_v40 = vld [vmem:[#allocation8 + $0xc0] sm:$0xff]   ;;  %v490_v41 = vlaneseq }
 0x1de   :  { %2954 = vmatprep.subr.bf16.mxu0 %v6546_v42  ;;  %3118 = vmatprep.subr.bf16.mxu1 %v6548_v43  ;;  %v486_v43 = vld [vmem:[#allocation10] ss:$8 sm:$0xf] }
 0x1df   :  { %v7598_v42 = vshrl.u32 %v490_v41, 7  ;;  %v488_v45 = vor.u32 %v487_v44, %v486_v43 }
 0x1e1   :  { %2955 = vmatpush1.bf16.msra.mxu0 %v6545_v48  ;;  %3119 = vmatpush1.bf16.msra.mxu1 %v6547_v49  ;;  %v7601_v46 = vsub.s32 0, %v7598_v42  ;;  %v7604_v47 = vsub.s32 2, %v7598_v42  ;;  %v7607_v48 = vsub.s32 1, %v7598_v42  ;;  %v7610_v49 = vsub.s32 3, %v7598_v42 }
 0x1e2   :  { %2956 = vmatprep.subr.bf16.mxu0 %v6554_v50  ;;  %3120 = vmatprep.subr.bf16.mxu1 %v6556_v51 }
 0x1e3   :  { %v493_v50 = vrot.slane %v488_v45, %v7601_v46  ;;  %v501_v51 = vrot.slane %v488_v45, %v7604_v47  ;;  %v497_v52 = vrot.slane %v488_v45, %v7607_v48  ;;  %v505_v54 = vrot.slane %v488_v45, %v7610_v49 }
 0x1e5   :  { %2957 = vmatpush1.bf16.msra.mxu0 %v6553_v58  ;;  %3121 = vmatpush1.bf16.msra.mxu1 %v6555_v59 }
 0x1e6   :  { %2958 = vmatprep.subr.bf16.mxu0 %v6562_v60  ;;  %3122 = vmatprep.subr.bf16.mxu1 %v6564_v61 }
 0x1e9   :  { %2959 = vmatpush1.bf16.msra.mxu0 %v6561_v2  ;;  %3123 = vmatpush1.bf16.msra.mxu1 %v6563_v3 }
 0x1ea   :  { %2969 = vmatprep.subr.bf16.mxu0 %v6570_v4  ;;  %3133 = vmatprep.subr.bf16.mxu1 %v6572_v5 }
 0x1ec   :  { %2961 = vmatmul.mubr.bf16.vlgmr.msra.gmra.mrb[4].mxu0 %v7564_v34  ;;  %3125 = vmatmul.mubr.bf16.vlgmr.msra.gmra.mrb[4].mxu1 %v7564_v34  ;;  %v7089_v34 = vld [vmem:[#allocation8 + $0x88] sm:$0xff]  }
 0x1ed   :  { %2970 = vmatpush1.bf16.msra.mxu0 %v6569_v6  ;;  %3134 = vmatpush1.bf16.msra.mxu1 %v6571_v7 }
 0x1ee   :  { %3001 = vmatprep.mubr.bf16.mxu0 %v7406_v25  ;;  %3165 = vmatprep.mubr.bf16.mxu1 %v7406_v25 }
 0x1ef   :  { %3454 = vmatprep.subr.bf16.mxu1 %v7406_v25  ;;  %6894 = vmatprep.subr.bf16.mxu0 %v7087_v8  ;;  %v7617_v8 = vsub.s32 4, %v7598_v42 }
 0x1f8   :  { %6575 = vmatmul.mubr.msk.bf16.vlgmr.msra.gmra.mrb[4].mxu0 %vm2514_vm0, %v7231_v13  ;;  %6576 = vmatmul.mubr.msk.bf16.vlgmr.msra.gmra.mrb[4].mxu1 %vm2514_vm0, %v7231_v13  ;;  %v509_v13 = vrot.slane %v488_v45, %v7617_v8 }
 0x1f9   :  { %6895 = vmatpush3.bf16.msra.mxu0 %v7088_v9  ;;  %3455 = vmatpush1.bf16.msra.mxu1 %v7086_v10  ;;  %v7620_v9 = vsub.s32 6, %v7598_v42  ;;  %v7623_v10 = vsub.s32 5, %v7598_v42 }
 0x1fa   :  { %6896 = vmatprep.subr.bf16.mxu0 %v7090_v11  ;;  %3456 = vmatprep.subr.bf16.mxu1 %v7406_v25  ;;  %v520_v11 = vsub.s32 7, %v7598_v42 }
 0x1fd   :  { %6897 = vmatpush3.bf16.msra.mxu0 %v7091_v57  ;;  %3457 = vmatpush1.bf16.msra.mxu1 %v7089_v34  ;;  %v517_v57 = vrot.slane %v488_v45, %v7620_v9  ;;  %v513_v34 = vrot.slane %v488_v45, %v7623_v10 }
 0x1fe   :  { %6898 = vmatprep.subr.bf16.mxu0 %v7093_v14  ;;  %3458 = vmatprep.subr.bf16.mxu1 %v7406_v25  ;;  %v521_v14 = vrot.slane %v488_v45, %v520_v11 }
 0x1ff   :  { %v2675_v18 = vpop.f32.mrb[0].mxu0  ;;  %v2839_v19 = vpop.f32.mrb[0].mxu1 }
 0x200   :  { %v2677_v20 = vpop.f32.mrb[1].mxu0  ;;  %v2841_v21 = vpop.f32.mrb[1].mxu1  ;;  %v7005_v55 = vadd.f32 %v2675_v18, %v493_v50  ;;  %v7007_v56 = vadd.f32 %v2839_v19, %v501_v51  ;;  %v3260_v51 = vld [vmem:[#allocation10 + $0x1] ss:$0 sm:$0xff] }
 0x201   :  { %v2679_v23 = vpop.f32.mrb[2].mxu0  ;;  %6899 = vmatpush3.bf16.msra.mxu0 %v7094_v12  ;;  %v2843_v24 = vpop.f32.mrb[2].mxu1  ;;  %3459 = vmatpush1.bf16.msra.mxu1 %v7092_v16  ;;  %v7006_v58 = vadd.f32 %v2677_v20, %v497_v52  ;;  %v7008_v59 = vadd.f32 %v2841_v21, %v505_v54 }
 0x202   :  { %v2680_v26 = vpop.f32.mrb[3].mxu0  ;;  %6900 = vmatprep.subr.bf16.mxu0 %v7096_v17  ;;  %v2844_v28 = vpop.f32.mrb[3].mxu1  ;;  %3460 = vmatprep.subr.bf16.mxu1 %v7406_v25  ;;  %v6577_v60 = vmul.f32 -1.442695, %v7005_v55  ;;  %v6579_v61 = vmul.f32 -1.442695, %v7007_v56 }
 0x203   :  { %v6578_v62 = vmul.f32 -1.442695, %v7006_v58  ;;  %v6580_v63 = vmul.f32 -1.442695, %v7008_v59 }
 0x204   :  { %7137 = vpow2.f32 %v6577_v60 }
 0x205   :  { %6901 = vmatpush3.bf16.msra.mxu0 %v7097_v53  ;;  %3461 = vmatpush1.bf16.msra.mxu1 %v7095_v22  ;;  %7139 = vpow2.f32 %v6579_v61 }
 0x206   :  { %6902 = vmatprep.subr.bf16.mxu0 %v7099_v27  ;;  %3462 = vmatprep.subr.bf16.mxu1 %v7406_v25  ;;  %7141 = vpow2.f32 %v6578_v62 }
 0x207   :  { %7143 = vpow2.f32 %v6580_v63 }
 0x209   :  { %6903 = vmatpush3.bf16.msra.mxu0 %v7100_v29  ;;  %3463 = vmatpush1.bf16.msra.mxu1 %v7098_v30 }
 0x20a   :  { %6904 = vmatprep.subr.bf16.mxu0 %v7102_v31  ;;  %3464 = vmatprep.subr.bf16.mxu1 %v7406_v25 }
 0x20d   :  { %3465 = vmatpush1.bf16.msra.mxu1 %v7101_v15  ;;  %6905 = vmatpush3.bf16.msra.mxu0 %v7103_v32 }
 0x20e   :  { %3466 = vmatprep.subr.bf16.mxu1 %v7406_v25  ;;  %6906 = vmatprep.subr.bf16.mxu0 %v7105_v35  ;;  %v7138_v0 = vpop.eup %7137 }
 0x20f   :  { %v7140_v1 = vpop.eup %7139  ;;  %v3186_v4 = vadd.f32 1.0, %v7138_v0 }
 0x210   :  { %v7142_v2 = vpop.eup %7141  ;;  %v3188_v5 = vadd.f32 1.0, %v7140_v1 }
 0x211   :  { %3467 = vmatpush1.bf16.msra.mxu1 %v7104_v33  ;;  %6907 = vmatpush3.bf16.msra.mxu0 %v7106_v36  ;;  %v7144_v3 = vpop.eup %7143  ;;  %v3187_v6 = vadd.f32 1.0, %v7142_v2  ;;  %7145 = vrcp.f32 %v3186_v4 }
 0x212   :  { %3468 = vmatprep.subr.bf16.mxu1 %v7406_v25  ;;  %6908 = vmatprep.subr.bf16.mxu0 %v7108_v38  ;;  %v3189_v7 = vadd.f32 1.0, %v7144_v3  ;;  %7147 = vrcp.f32 %v3188_v5 }
 0x213   :  { %7149 = vrcp.f32 %v3187_v6 }
 0x214   :  { %7151 = vrcp.f32 %v3189_v7 }
 0x215   :  { %3469 = vmatpush1.bf16.msra.mxu1 %v7107_v37  ;;  %6909 = vmatpush3.bf16.msra.mxu0 %v7109_v39 }
 0x216   :  { %3470 = vmatprep.subr.bf16.mxu1 %v7406_v25 }
 0x219   :  { %3471 = vmatpush1.bf16.msra.mxu1 %v7110_v40 }
 0x21b   :  { %v7146_v53 = vpop.eup %7145 }
 0x21c   :  { %v7148_v28 = vpop.eup %7147 }
 0x21d   :  { %v7150_v15 = vpop.eup %7149 }
 0x21e   :  { %v7152_v35 = vpop.eup %7151 }
 0x2cb   :  { %v3003_v12 = vpop.f32.mrb[4].mxu0  ;;  %v3167_v17 = vpop.f32.mrb[4].mxu1 }
 0x2cc   :  { %v7009_v16 = vadd.f32 %v3003_v12, %v509_v13  ;;  %v3005_v18 = vpop.f32.mrb[5].mxu0  ;;  %v7011_v19 = vadd.f32 %v3167_v17, %v517_v57  ;;  %v3169_v21 = vpop.f32.mrb[5].mxu1  ;;  %v7111_v13 = vld [vmem:[#allocation8 + $0xc8] sm:$0xff]   ;;  %v7408_v57 = vmov 0.0   ;;  %v7114_v12 = vld [vmem:[#allocation8 + $0xd8] sm:$0xff]  }
 0x2cd   :  { %v7010_v20 = vadd.f32 %v3005_v18, %v513_v34  ;;  %v3007_v23 = vpop.f32.mrb[6].mxu0  ;;  %v7012_v26 = vadd.f32 %v3169_v21, %v521_v14  ;;  %v3171_v22 = vpop.f32.mrb[6].mxu1  ;;  %6947 = vmatprep.subr.bf16.mxu1 %v7408_v57  ;;  %6941 = vmatprep.subr.bf16.mxu0 %v7408_v57  ;;  %v7112_v34 = vld [vmem:[#allocation8 + $0xd0] sm:$0xff]   ;;  %v7113_v14 = vld [vmem:[#allocation8 + $0xe8] sm:$0x1f]   ;;  %v93_v17 = vld [vmem:[#allocation5] sm:$0xff] }
 0x2ce   :  { %v3198_v24 = vmax.f32 %v7009_v16, 0.0  ;;  %v3008_v27 = vpop.f32.mrb[7].mxu0  ;;  %v3200_v29 = vmax.f32 %v7011_v19, 0.0  ;;  %v3172_v31 = vpop.f32.mrb[7].mxu1  ;;  %v3536_v16 = vsel %vm3534_vm2, %v7113_v14, 0  ;;  %v7640_v19 = vpack.c.bf16 %v93_v17, %v93_v17 }
 0x2cf   :  { %v3199_v30 = vmax.f32 %v7010_v20, 0.0  ;;  %v3201_v33 = vmax.f32 %v7012_v26, 0.0  ;;  %v7115_v18 = vld [vmem:[#allocation8 + $0xe0] ss:$0 sps:$4 sm:$0x11]   ;;  %v7117_v31 = vld [vmem:[#allocation8 + $0xf8] sm:$0xff]  }
 0x2d0   :  { %v3202_v32 = vmul.f32 %v7146_v53, %v3198_v24  ;;  %v3204_v36 = vmul.f32 %v7148_v28, %v3200_v29  ;;  %v3604_v20 = vsel %vm3602_vm4, %v7115_v18, 0  ;;  %v3762_v17 = vld [vmem:[#allocation10 + $0x4] ss:$0 sm:$0xff] }
 0x2d1   :  { %v3203_v37 = vmul.f32 %v7150_v15, %v3199_v30  ;;  %v3205_v38 = vmul.f32 %v7152_v35, %v3201_v33  ;;  %v7116_v30 = vld [vmem:[#allocation8 + $0xf0] sm:$0xff]   ;;  %v7118_v15 = vld [vmem:[#allocation8 + $0x100] sm:$0xff]  }
 0x2d2   :  { %v3256_v40 = vpack.c.bf16 %v3202_v32, %v3202_v32  ;;  %v3258_v44 = vpack.c.bf16 %v3204_v36, %v3204_v36  ;;  %v7119_v32 = vld [vmem:[#allocation8 + $0x108] sm:$0x3f]   ;;  %v3646_v36 = vld [vmem:[#allocation10 + $0x2] ss:$0 sm:$0xff] }
 0x2d3   :  { %v3257_v39 = vpack.c.bf16 %v3203_v37, %v3203_v37  ;;  %v3259_v43 = vpack.c.bf16 %v3205_v38, %v3205_v38  ;;  %v3699_v33 = vsel %vm3697_vm6, %v7119_v32, 0 }
 0x2d5   :  { %3446 = vmatprep.mubr.bf16.mxu0 %v3257_v39  ;;  %6606 = vmatprep.mubr.msk.bf16.mxu1 %vm2514_vm0, %v3259_v43 }
 0x2d6   :  { %3447 = vmatmul.mubr.bf16.vlgmr.msra.gmra.mrb[8].mxu0 %v3256_v40  ;;  %3487 = vmatmul.mubr.bf16.vlgmr.msra.gmra.mrb[8].mxu1 %v3258_v44 }
 0x2d7   :  { %6948 = vmatpush3.bf16.msra.mxu1 %v7111_v13  ;;  %6942 = vmatpush3.bf16.msra.mxu0 %v3536_v16 }
 0x2d8   :  { %6949 = vmatprep.subr.bf16.mxu1 %v7408_v57  ;;  %6959 = vmatprep.subr.bf16.mxu0 %v7408_v57 }
 0x2d9   :  { %6943 = vmatprep.mubr.msk.bf16.mxu0 %vm7409_vm5, %v7408_v57  ;;  %6955 = vmatprep.mubr.msk.bf16.mxu1 %vm7409_vm5, %v7408_v57 }
 0x2db   :  { %6950 = vmatpush3.bf16.msra.mxu1 %v7112_v34 }
 0x2dc   :  { %6951 = vmatprep.subr.bf16.mxu1 %v7408_v57 }
 0x2de   :  { %6944 = vmatmul.mubr.msk.bf16.vlgmr.msra.gmra.mrb[12].mxu0 %vm3530_vm3, %v7640_v19 }
 0x2df   :  { %6952 = vmatpush3.bf16.msra.mxu1 %v7114_v12  ;;  %6967 = vmatprep.mubr.msk.bf16.mxu0 %vm7409_vm5, %v7408_v57 }
 0x2e0   :  { %6953 = vmatprep.subr.bf16.mxu1 %v7408_v57  ;;  %6960 = vmatpush3.bf16.msra.mxu0 %v7116_v30 }
 0x2e1   :  { %6961 = vmatprep.subr.bf16.mxu0 %v7408_v57 }
 0x2e3   :  { %6954 = vmatpush3.bf16.msra.mxu1 %v3604_v20 }
 0x2e4   :  { %6971 = vmatprep.subr.bf16.mxu1 %v7408_v57  ;;  %6962 = vmatpush3.bf16.msra.mxu0 %v7117_v31 }
 0x2e5   :  { %6963 = vmatprep.subr.bf16.mxu0 %v7408_v57 }
 0x2e8   :  { %6964 = vmatpush3.bf16.msra.mxu0 %v7118_v15 }
 0x2e9   :  { %6965 = vmatprep.subr.bf16.mxu0 %v7408_v57 }
 0x2ec   :  { %6966 = vmatpush3.bf16.msra.mxu0 %v3699_v33  ;;  %v3851_v33 = vld [vmem:[#allocation7 + $0xc40] sm:$0xff] }
 0x3a9   :  { %v6910_v45 = vpop.f32.mrb[8].mxu0  ;;  %v3488_v50 = vpop.f32.mrb[8].mxu1 }
 0x3aa   :  { %v6911_v52 = vpop.f32.mrb[9].mxu0  ;;  %v3490_v55 = vpop.f32.mrb[9].mxu1 }
 0x3ab   :  { %v6912_v54 = vadd.f32 %v6911_v52, %v6910_v45  ;;  %v6913_v56 = vpop.f32.mrb[10].mxu0  ;;  %v3491_v58 = vpop.f32.mrb[10].mxu1 }
 0x3ac   :  { %v6914_v59 = vpop.f32.mrb[11].mxu0  ;;  %v3492_v61 = vpop.f32.mrb[11].mxu1  ;;  %v7120_v58 = vld [vmem:[#allocation8 + $0x110] sm:$0xff]  }
 0x3ad   :  { %v3449_v60 = vadd.f32 %v6912_v54, %v3260_v51  ;;  %v7121_v59 = vld [vmem:[#allocation8 + $0x118] sm:$0xff]   ;;  %v7123_v61 = vld [vmem:[#allocation8 + $0x128] sm:$0x3f]  }
 0x3af   :  { %v3489_v62 = vadd.f32 %v3488_v50, %v3449_v60  ;;  %v7122_v60 = vld [vmem:[#allocation8 + $0x120] sm:$0xff]  }
 0x3b1   :  { %v3500_v63 = vmax.f32 %v3489_v62, 0.0  ;;  %v6607_v0 = vmul.f32 -1.442695, %v3489_v62  ;;  %v3572_v22 = vpop.f32.mrb[12].mxu0  ;;  %v3790_v62 = vsel %vm3697_vm6, %v7123_v61, 0 }
 0x3b2   :  { %v6945_v27 = vpop.f32.mrb[13].mxu0 }
 0x3b3   :  { %3502 = vrot.lane.b32.xlu0 %v3500_v63, %s7407_s4  ;;  %7153 = vpow2.f32 %v6607_v0  ;;  %v3575_v28 = vpop.f32.mrb[14].mxu0  ;;  %v3669_v63 = vld [vmem:[#allocation10 + $0x3] ss:$0 sm:$0xff] }
 0x3b4   :  { %v6946_v29 = vpop.f32.mrb[15].mxu0 }
 0x3bd   :  { %v7154_v1 = vpop.eup %7153 }
 0x3be   :  { %v3497_v2 = vadd.f32 1.0, %v7154_v1 }
 0x3c0   :  { %7155 = vrcp.f32 %v3497_v2 }
 0x3ca   :  { %v7156_v3 = vpop.eup %7155 }
 0x425   :  { %v3503_v4 = vpop.permute.xlu0 %3502 }
 0x426   :  { %v3505_v5 = vmul.f32 %v7156_v3, %v3503_v4 }
 0x428   :  { %v3506_v6 = vmul.f32 %v3505_v5, %v3505_v5 }
 0x42a   :  { %v3508_v7 = vsel %vm3507_vm1, %v3506_v6, 0.0 }
 0x42b   :  { %3509 = vadd.xlane.f32.xlu0 %v3508_v7 }
 0x4b8   :  { %v3510_v21 = vpop.xlane.xlu0 %3509 }
 0x4b9   :  { %v3511_v23 = vmax.f32 %v3510_v21, 1e-24 }
 0x4bb   :  { %7157 = vrsqrt.f32 %v3511_v23 }
 0x4c5   :  { %v7158_v53 = vpop.eup %7157 }
 0x4c6   :  { %v7653_v24 = vmul.f32 %v7158_v53, %v3505_v5 }
 0x4c8   :  { %v3521_v26 = vpack.c.bf16 %v7653_v24, %v7653_v24 }
 0x4ca   :  { %6956 = vmatmul.mubr.msk.bf16.vlgmr.msra.gmra.mrb[12].mxu1 %vm3507_vm1, %v3521_v26 }
 0x4cb   :  { %6979 = vmatprep.mubr.msk.bf16.mxu1 %vm7409_vm5, %v7408_v57  ;;  %6972 = vmatpush3.bf16.msra.mxu1 %v7120_v58  ;;  %v3867_v58 = vld [vmem:[#allocation7 + $0xcc0] sm:$0xff] }
 0x4cc   :  { %6973 = vmatprep.subr.bf16.mxu1 %v7408_v57 }
 0x4cf   :  { %6974 = vmatpush3.bf16.msra.mxu1 %v7121_v59  ;;  %v3871_v59 = vld [vmem:[#allocation7 + $0xce0] sm:$0xff] }
 0x4d0   :  { %6975 = vmatprep.subr.bf16.mxu1 %v7408_v57  ;;  %v6645_v61 = vcombine.high %v3867_v58, %v3871_v59 }
 0x4d3   :  { %6976 = vmatpush3.bf16.msra.mxu1 %v7122_v60  ;;  %v3868_v60 = vld [vmem:[#allocation7 + $0xcc8] sm:$0xff] }
 0x4d4   :  { %6977 = vmatprep.subr.bf16.mxu1 %v7408_v57 }
 0x4d7   :  { %6978 = vmatpush3.bf16.msra.mxu1 %v3790_v62  ;;  %v3872_v62 = vld [vmem:[#allocation7 + $0xce8] sm:$0xff] }
 0x59d   :  { %v3640_v35 = vpop.f32.mrb[12].mxu1 }
 0x59e   :  { %v3641_v37 = vadd.f32 %v3640_v35, %v3572_v22  ;;  %v6957_v38 = vpop.f32.mrb[13].mxu1  ;;  %v3855_v35 = vld [vmem:[#allocation7 + $0xc60] sm:$0xff] }
 0x59f   :  { %v3643_v39 = vpop.f32.mrb[14].mxu1  ;;  %v3856_v38 = vld [vmem:[#allocation7 + $0xc68] sm:$0xff] }
 0x5a0   :  { %v3647_v40 = vadd.f32 %v3646_v36, %v3641_v37  ;;  %v6958_v43 = vpop.f32.mrb[15].mxu1  ;;  %v3852_v36 = vld [vmem:[#allocation7 + $0xc48] sm:$0xff]  ;;  %v6629_v37 = vcombine.high %v3851_v33, %v3855_v35  ;;  %v6628_v39 = vcombine.low %v3851_v33, %v3855_v35 }
 0x5a1   :  { %v6631_v43 = vcombine.high %v3852_v36, %v3856_v38 }
 0x5a2   :  { %v3654_v44 = vmax.f32 %v3647_v40, 0.0  ;;  %v6615_v45 = vmul.f32 -1.442695, %v3647_v40  ;;  %v6630_v40 = vcombine.low %v3852_v36, %v3856_v38  ;;  %4092 = vmatprep.subr.bf16.mxu0 %v6629_v37  ;;  %v3869_v36 = vld [vmem:[#allocation7 + $0xcd0] sm:$0xff]  ;;  %v3870_v38 = vld [vmem:[#allocation7 + $0xcd8] sm:$0xff] }
 0x5a3   :  { %4133 = vmatprep.subr.bf16.mxu1 %v6631_v43  ;;  %v3873_v37 = vld [vmem:[#allocation7 + $0xcf0] sm:$0xff] }
 0x5a4   :  { %3656 = vrot.lane.b32.xlu1 %v3654_v44, %s7410_s1  ;;  %7159 = vpow2.f32 %v6615_v45  ;;  %v3859_v44 = vld [vmem:[#allocation7 + $0xc80] sm:$0xff] }
 0x5a5   :  { %v3863_v45 = vld [vmem:[#allocation7 + $0xca0] sm:$0xff] }
 0x5ae   :  { %v7160_v50 = vpop.eup %7159 }
 0x5af   :  { %v3651_v51 = vadd.f32 1.0, %v7160_v50  ;;  %v3860_v50 = vld [vmem:[#allocation7 + $0xc88] sm:$0xff] }
 0x5b1   :  { %7161 = vrcp.f32 %v3651_v51  ;;  %v6637_v51 = vcombine.high %v3859_v44, %v3863_v45 }
 0x5bb   :  { %v7162_v52 = vpop.eup %7161 }
 0x616   :  { %v3657_v54 = vpop.permute.xlu1 %3656 }
 0x617   :  { %v3659_v55 = vmul.f32 %v7162_v52, %v3657_v54  ;;  %v3864_v52 = vld [vmem:[#allocation7 + $0xca8] sm:$0xff]  ;;  %v6636_v54 = vcombine.low %v3859_v44, %v3863_v45  ;;  %v3877_v45 = vld [vmem:[#allocation7 + $0xd10] sm:$0x11] }
 0x619   :  { %v3668_v56 = vpack.c.bf16 %v3659_v55, %v3659_v55  ;;  %v6638_v55 = vcombine.low %v3860_v50, %v3864_v52 }
 0x61b   :  { %6968 = vmatmul.mubr.msk.bf16.vlgmr.msra.gmra.mrb[16].mxu0 %vm3693_vm7, %v3668_v56  ;;  %v6639_v56 = vcombine.high %v3860_v50, %v3864_v52  ;;  %v3878_v50 = vld [vmem:[#allocation7 + $0xd18] sm:$0x11] }
 0x61c   :  { %4124 = vmatprep.mubr.bf16.mxu0 %v7406_v25  ;;  %4093 = vmatpush1.bf16.msra.mxu0 %v6628_v39  ;;  %v3874_v39 = vld [vmem:[#allocation7 + $0xcf8] sm:$0xff] }
 0x61d   :  { %4094 = vmatprep.subr.bf16.mxu0 %v6637_v51  ;;  %v6651_v44 = vcombine.high %v3870_v38, %v3874_v39  ;;  %v6648_v51 = vcombine.low %v3869_v36, %v3873_v37  ;;  %v6650_v52 = vcombine.low %v3870_v38, %v3874_v39 }
 0x620   :  { %4095 = vmatpush1.bf16.msra.mxu0 %v6636_v54  ;;  %v6657_v54 = vcombine.high %v3877_v45, %v3877_v45 }
 0x621   :  { %4096 = vmatprep.subr.bf16.mxu0 %v6645_v61  ;;  %v4416_v61 = vld [vmem:[#allocation7 + $0x1140] sm:$0xff] }
 0x6ee   :  { %v3735_v0 = vpop.f32.mrb[16].mxu0 }
 0x6ef   :  { %v3736_v1 = vadd.f32 %v3735_v0, %v3669_v63  ;;  %v6969_v2 = vpop.f32.mrb[17].mxu0  ;;  %v6644_v63 = vcombine.low %v3867_v58, %v3871_v59  ;;  %v6646_v0 = vcombine.low %v3868_v60, %v3872_v62  ;;  %v6658_v58 = vcombine.low %v3878_v50, %v3878_v50  ;;  %v4288_v59 = vld [vmem:[#allocation7 + $0xd40] sm:$0xff] }
 0x6f0   :  { %v3738_v3 = vpop.f32.mrb[18].mxu0  ;;  %v3875_v2 = vld [vmem:[#allocation7 + $0xd00] sm:$0x11] }
 0x6f1   :  { %v3747_v4 = vmax.f32 %v3736_v1, 0.0  ;;  %v6970_v5 = vpop.f32.mrb[19].mxu0  ;;  %v6621_v6 = vmul.f32 -1.442695, %v3736_v1  ;;  %v6647_v1 = vcombine.high %v3868_v60, %v3872_v62  ;;  %4097 = vmatpush1.bf16.msra.mxu0 %v6644_v63  ;;  %v3876_v3 = vld [vmem:[#allocation7 + $0xd08] sm:$0x11] }
 0x6f2   :  { %v6655_v5 = vcombine.high %v3876_v3, %v3876_v3  ;;  %v4292_v60 = vld [vmem:[#allocation7 + $0xd60] sm:$0xff]  ;;  %v4087_v63 = vsel %vm3602_vm4, %v6658_v58, 0 }
 0x6f3   :  { %3749 = vrot.lane.b32.xlu1 %v3747_v4, %s7410_s1  ;;  %7163 = vpow2.f32 %v6621_v6  ;;  %v6653_v4 = vcombine.high %v3875_v2, %v3875_v2  ;;  %v6652_v6 = vcombine.low %v3875_v2, %v3875_v2  ;;  %v4420_v62 = vld [vmem:[#allocation7 + $0x1160] sm:$0xff] }
 0x6f4   :  { %v4296_v2 = vld [vmem:[#allocation7 + $0xd80] sm:$0xff] }
 0x6f5   :  { %6660 = vmatprep.subr.msk.bf16.mxu0 %vm3602_vm4, %v6653_v4  ;;  %v6672_v4 = vcombine.low %v4288_v59, %v4292_v60 }
 0x6fd   :  { %v7164_v7 = vpop.eup %7163 }
 0x6fe   :  { %v3744_v13 = vadd.f32 1.0, %v7164_v7  ;;  %v6654_v7 = vcombine.low %v3876_v3, %v3876_v3  ;;  %v4300_v3 = vld [vmem:[#allocation7 + $0xda0] sm:$0xff] }
 0x700   :  { %7165 = vrcp.f32 %v3744_v13  ;;  %v4069_v13 = vsel %vm3602_vm4, %v6652_v6, 0  ;;  %v6681_v6 = vcombine.high %v4296_v2, %v4300_v3 }
 0x701   :  { %4099 = vmatpush1.bf16.msra.mxu0 %v4069_v13  ;;  %v4308_v13 = vld [vmem:[#allocation7 + $0xde0] sm:$0xff] }
 0x70a   :  { %v7166_v34 = vpop.eup %7165 }
 0x765   :  { %v3750_v14 = vpop.permute.xlu1 %3749 }
 0x766   :  { %v3752_v12 = vmul.f32 %v7166_v34, %v3750_v14  ;;  %v4075_v34 = vsel %vm3602_vm4, %v6654_v7, 0  ;;  %v3853_v14 = vld [vmem:[#allocation7 + $0xc50] sm:$0xff]  ;;  %v4304_v7 = vld [vmem:[#allocation7 + $0xdc0] sm:$0xff] }
 0x768   :  { %v3761_v16 = vpack.c.bf16 %v3752_v12, %v3752_v12  ;;  %v3857_v12 = vld [vmem:[#allocation7 + $0xc70] sm:$0xff] }
 0x76a   :  { %6980 = vmatmul.mubr.msk.bf16.vlgmr.msra.gmra.mrb[16].mxu1 %vm3693_vm7, %v3761_v16  ;;  %v3854_v16 = vld [vmem:[#allocation7 + $0xc58] sm:$0xff] }
 0x76b   :  { %4165 = vmatprep.mubr.bf16.mxu1 %v7406_v25  ;;  %4134 = vmatpush1.bf16.msra.mxu1 %v6630_v40 }
 0x76c   :  { %4135 = vmatprep.subr.bf16.mxu1 %v6639_v56  ;;  %v6656_v56 = vcombine.low %v3877_v45, %v3877_v45  ;;  %v4428_v45 = vld [vmem:[#allocation7 + $0x11a0] sm:$0xff] }
 0x76f   :  { %4136 = vmatpush1.bf16.msra.mxu1 %v6638_v55  ;;  %v6659_v55 = vcombine.high %v3878_v50, %v3878_v50 }
 0x770   :  { %4137 = vmatprep.subr.bf16.mxu1 %v6647_v1  ;;  %v6801_v1 = vcombine.high %v4416_v61, %v4420_v62 }
 0x773   :  { %4138 = vmatpush1.bf16.msra.mxu1 %v6646_v0  ;;  %v6673_v0 = vcombine.high %v4288_v59, %v4292_v60  ;;  %v4436_v59 = vld [vmem:[#allocation7 + $0x11e0] sm:$0xff] }
 0x774   :  { %6662 = vmatprep.subr.msk.bf16.mxu1 %vm3602_vm4, %v6655_v5  ;;  %v6800_v5 = vcombine.low %v4416_v61, %v4420_v62 }
 0x777   :  { %4140 = vmatpush1.bf16.msra.mxu1 %v4075_v34  ;;  %v6680_v34 = vcombine.low %v4296_v2, %v4300_v3  ;;  %v4444_v2 = vld [vmem:[#allocation7 + $0x1220] sm:$0xff] }
 0x83d   :  { %v3826_v18 = vpop.f32.mrb[16].mxu1 }
 0x83e   :  { %v3827_v20 = vadd.f32 %v3826_v18, %v3762_v17  ;;  %v6981_v21 = vpop.f32.mrb[17].mxu1  ;;  %v6632_v17 = vcombine.low %v3853_v14, %v3857_v12  ;;  %v6633_v18 = vcombine.high %v3853_v14, %v3857_v12  ;;  %v6689_v14 = vcombine.high %v4304_v7, %v4308_v13  ;;  %v4312_v12 = vld [vmem:[#allocation7 + $0xe00] sm:$0xff] }
 0x83f   :  { %v3829_v23 = vpop.f32.mrb[18].mxu1 }
 0x840   :  { %v3838_v53 = vmax.f32 %v3827_v20, 0.0  ;;  %v6982_v26 = vpop.f32.mrb[19].mxu1  ;;  %v6627_v22 = vmul.f32 -1.442695, %v3827_v20  ;;  %v3858_v20 = vld [vmem:[#allocation7 + $0xc78] sm:$0xff]  ;;  %4174 = vmatprep.subr.bf16.mxu0 %v6633_v18 }
 0x841   :  { %v6634_v21 = vcombine.low %v3854_v16, %v3858_v20  ;;  %v6635_v23 = vcombine.high %v3854_v16, %v3858_v20  ;;  %v4316_v16 = vld [vmem:[#allocation7 + $0xe20] sm:$0xff] }
 0x842   :  { %3840 = vrot.lane.b32.xlu1 %v3838_v53, %s7407_s4  ;;  %7167 = vpow2.f32 %v6627_v22  ;;  %v3861_v22 = vld [vmem:[#allocation7 + $0xc90] sm:$0xff]  ;;  %v6697_v18 = vcombine.high %v4312_v12, %v4316_v16  ;;  %v4320_v20 = vld [vmem:[#allocation7 + $0xe40] sm:$0xff] }
 0x843   :  { %4215 = vmatprep.subr.bf16.mxu1 %v6635_v23  ;;  %v6696_v23 = vcombine.low %v4312_v12, %v4316_v16 }
 0x84c   :  { %v7168_v27 = vpop.eup %7167 }
 0x84d   :  { %v3835_v28 = vadd.f32 1.0, %v7168_v27 }
 0x84f   :  { %7169 = vrcp.f32 %v3835_v28  ;;  %v3865_v28 = vld [vmem:[#allocation7 + $0xcb0] sm:$0xff] }
 0x850   :  { %v6641_v33 = vcombine.high %v3861_v22, %v3865_v28  ;;  %v6640_v40 = vcombine.low %v3861_v22, %v3865_v28  ;;  %v4332_v22 = vld [vmem:[#allocation7 + $0xea0] sm:$0xff] }
 0x859   :  { %v7170_v29 = vpop.eup %7169 }
 0x8b4   :  { %v3841_v30 = vpop.permute.xlu1 %3840 }
 0x8b5   :  { %v7675_v31 = vmul.f32 %v7170_v29, %v3841_v30  ;;  %v3862_v29 = vld [vmem:[#allocation7 + $0xc98] sm:$0xff] }
 0x8b6   :  { %v3866_v30 = vld [vmem:[#allocation7 + $0xcb8] sm:$0xff] }
 0x8b7   :  { %v3844_v15 = vmul.f32 %v7675_v31, %v7675_v31  ;;  %v6643_v35 = vcombine.high %v3862_v29, %v3866_v30  ;;  %v6642_v43 = vcombine.low %v3862_v29, %v3866_v30  ;;  %v4336_v29 = vld [vmem:[#allocation7 + $0xec0] sm:$0xff] }
 0x8b8   :  { %v4340_v30 = vld [vmem:[#allocation7 + $0xee0] sm:$0xff] }
 0x8b9   :  { %v3845_v32 = vsel %vm3507_vm1, %v3844_v15, 0.0 }
 0x8ba   :  { %3846 = vadd.xlane.f32.xlu1 %v3845_v32 }
 0x947   :  { %v3847_v53 = vpop.xlane.xlu1 %3846 }
 0x948   :  { %v3848_v26 = vmax.f32 %v3847_v53, 1e-24 }
 0x94a   :  { %7171 = vrsqrt.f32 %v3848_v26  ;;  %v4328_v26 = vld [vmem:[#allocation7 + $0xe80] sm:$0xff] }
 0x94b   :  { %v6713_v28 = vcombine.high %v4328_v26, %v4332_v22 }
 0x954   :  { %v7172_v27 = vpop.eup %7171 }
 0x955   :  { %v7685_v15 = vmul.f32 %v7172_v27, %v7675_v31  ;;  %v6649_v31 = vcombine.high %v3869_v36, %v3873_v37  ;;  %v4348_v36 = vld [vmem:[#allocation7 + $0xf20] sm:$0xff]  ;;  %v6720_v37 = vcombine.low %v4336_v29, %v4340_v30 }
 0x957   :  { %v3879_v32 = vpack.c.bf16 %v7685_v15, %v7685_v15 }
 0x959   :  { %6661 = vmatmul.mubr.msk.bf16.vlgmr.msra.gmra.mrb[20].mxu0 %vm3507_vm1, %v3879_v32  ;;  %6663 = vmatmul.mubr.msk.bf16.vlgmr.msra.gmra.mrb[20].mxu1 %vm3507_vm1, %v3879_v32 }
 0x95a   :  { %4175 = vmatpush1.bf16.msra.mxu0 %v6632_v17  ;;  %4216 = vmatpush1.bf16.msra.mxu1 %v6634_v21  ;;  %v6688_v17 = vcombine.low %v4304_v7, %v4308_v13  ;;  %v4324_v21 = vld [vmem:[#allocation7 + $0xe60] sm:$0xff] }
 0x95b   :  { %4176 = vmatprep.subr.bf16.mxu0 %v6641_v33  ;;  %4217 = vmatprep.subr.bf16.mxu1 %v6643_v35  ;;  %v6705_v53 = vcombine.high %v4320_v20, %v4324_v21  ;;  %v6704_v27 = vcombine.low %v4320_v20, %v4324_v21  ;;  %v6721_v33 = vcombine.high %v4336_v29, %v4340_v30  ;;  %v4344_v35 = vld [vmem:[#allocation7 + $0xf00] sm:$0xff] }
 0x95c   :  { %4206 = vmatprep.mubr.bf16.mxu0 %v7406_v25  ;;  %4247 = vmatprep.mubr.bf16.mxu1 %v7406_v25  ;;  %v4081_v25 = vsel %vm3602_vm4, %v6656_v56, 0  ;;  %v6729_v38 = vcombine.high %v4344_v35, %v4348_v36  ;;  %v6728_v39 = vcombine.low %v4344_v35, %v4348_v36  ;;  %v4432_v56 = vld [vmem:[#allocation7 + $0x11c0] sm:$0xff] }
 0x95d   :  { %v6816_v61 = vcombine.low %v4432_v56, %v4436_v59  ;;  %v6817_v62 = vcombine.high %v4432_v56, %v4436_v59  ;;  %v4380_v7 = vld [vmem:[#allocation7 + $0x1020] sm:$0xff] }
 0x95e   :  { %4177 = vmatpush1.bf16.msra.mxu0 %v6640_v40  ;;  %4218 = vmatpush1.bf16.msra.mxu1 %v6642_v43  ;;  %v4352_v40 = vld [vmem:[#allocation7 + $0xf40] sm:$0xff] }
 0x95f   :  { %4178 = vmatprep.subr.bf16.mxu0 %v6649_v31  ;;  %4219 = vmatprep.subr.bf16.mxu1 %v6651_v44  ;;  %v4356_v43 = vld [vmem:[#allocation7 + $0xf60] sm:$0xff] }
 0x960   :  { %v4424_v31 = vld [vmem:[#allocation7 + $0x1180] sm:$0xff]  ;;  %v6737_v44 = vcombine.high %v4352_v40, %v4356_v43  ;;  %v6736_v50 = vcombine.low %v4352_v40, %v4356_v43 }
 0x961   :  { %v4448_v13 = vld [vmem:[#allocation7 + $0x1240] sm:$0xff] }
 0x962   :  { %4179 = vmatpush1.bf16.msra.mxu0 %v6648_v51  ;;  %4220 = vmatpush1.bf16.msra.mxu1 %v6650_v52  ;;  %v6808_v51 = vcombine.low %v4424_v31, %v4428_v45  ;;  %v6809_v52 = vcombine.high %v4424_v31, %v4428_v45  ;;  %v4388_v20 = vld [vmem:[#allocation7 + $0x1060] sm:$0xff] }
 0x963   :  { %6664 = vmatprep.subr.msk.bf16.mxu0 %vm3602_vm4, %v6657_v54  ;;  %6666 = vmatprep.subr.msk.bf16.mxu1 %vm3602_vm4, %v6659_v55  ;;  %v4360_v54 = vld [vmem:[#allocation7 + $0xf80] sm:$0xff] }
 0x964   :  { %v4364_v55 = vld [vmem:[#allocation7 + $0xfa0] sm:$0xff] }
 0x965   :  { %v6745_v58 = vcombine.high %v4360_v54, %v4364_v55  ;;  %v6744_v60 = vcombine.low %v4360_v54, %v4364_v55  ;;  %v4456_v21 = vld [vmem:[#allocation7 + $0x1280] sm:$0xff] }
 0x966   :  { %4181 = vmatpush1.bf16.msra.mxu0 %v4081_v25  ;;  %4222 = vmatpush1.bf16.msra.mxu1 %v4087_v63  ;;  %v4368_v25 = vld [vmem:[#allocation7 + $0xfc0] sm:$0xff] }
 0x967   :  { %5495 = vmatprep.subr.bf16.mxu0 %v6673_v0  ;;  %5536 = vmatprep.subr.bf16.mxu1 %v6801_v1  ;;  %v4372_v63 = vld [vmem:[#allocation7 + $0xfe0] sm:$0xff] }
 0x968   :  { %v4440_v0 = vld [vmem:[#allocation7 + $0x1200] sm:$0xff]  ;;  %v6753_v1 = vcombine.high %v4368_v25, %v4372_v63  ;;  %v6752_v3 = vcombine.low %v4368_v25, %v4372_v63  ;;  %v7703_v25 = vld [vmem:[#allocation7 + $0x1148] sm:$0xff] }
 0x969   :  { %6665 = vmatmul.mubr.msk.bf16.vlgmr.msra.gmra.mrb[24].mxu0 %vm3507_vm1, %v3879_v32  ;;  %6667 = vmatmul.mubr.msk.bf16.vlgmr.msra.gmra.mrb[24].mxu1 %vm3507_vm1, %v3879_v32  ;;  %v6712_v32 = vcombine.low %v4328_v26, %v4332_v22  ;;  %v4396_v29 = vld [vmem:[#allocation7 + $0x10a0] sm:$0xff] }
 0x96a   :  { %5496 = vmatpush1.bf16.msra.mxu0 %v6672_v4  ;;  %5537 = vmatpush1.bf16.msra.mxu1 %v6800_v5  ;;  %v6824_v4 = vcombine.low %v4440_v0, %v4444_v2  ;;  %v6825_v5 = vcombine.high %v4440_v0, %v4444_v2  ;;  %v4464_v30 = vld [vmem:[#allocation7 + $0x12c0] sm:$0xff]  ;;  %v7707_v0 = vld [vmem:[#allocation7 + $0x1168] sm:$0xff] }
 0x96b   :  { %5497 = vmatprep.subr.bf16.mxu0 %v6681_v6  ;;  %5538 = vmatprep.subr.bf16.mxu1 %v6809_v52  ;;  %v4376_v6 = vld [vmem:[#allocation7 + $0x1000] sm:$0xff]  ;;  %v6802_v2 = vcombine.low %v7703_v25, %v7707_v0 }
 0x96c   :  { %v6760_v12 = vcombine.low %v4376_v6, %v4380_v7  ;;  %v4472_v40 = vld [vmem:[#allocation7 + $0x1300] sm:$0xff] }
 0x96d   :  { %v4476_v31 = vld [vmem:[#allocation7 + $0x1320] sm:$0xff] }
 0x96e   :  { %5498 = vmatpush1.bf16.msra.mxu0 %v6680_v34  ;;  %5539 = vmatpush1.bf16.msra.mxu1 %v6808_v51  ;;  %v6761_v34 = vcombine.high %v4376_v6, %v4380_v7  ;;  %v6856_v45 = vcombine.low %v4472_v40, %v4476_v31  ;;  %v4408_v51 = vld [vmem:[#allocation7 + $0x1100] sm:$0xff] }
 0x96f   :  { %5499 = vmatprep.subr.bf16.mxu0 %v6689_v14  ;;  %5540 = vmatprep.subr.bf16.mxu1 %v6817_v62  ;;  %v4452_v14 = vld [vmem:[#allocation7 + $0x1260] sm:$0xff]  ;;  %v7701_v62 = vld [vmem:[#allocation7 + $0xd68] sm:$0xff] }
 0x970   :  { %v6832_v16 = vcombine.low %v4448_v13, %v4452_v14  ;;  %v4412_v52 = vld [vmem:[#allocation7 + $0x1120] sm:$0xff] }
 0x971   :  { %v4480_v54 = vld [vmem:[#allocation7 + $0x1340] sm:$0xff]  ;;  %v6793_v55 = vcombine.high %v4408_v51, %v4412_v52 }
 0x972   :  { %5500 = vmatpush1.bf16.msra.mxu0 %v6688_v17  ;;  %5541 = vmatpush1.bf16.msra.mxu1 %v6816_v61  ;;  %v6833_v17 = vcombine.high %v4448_v13, %v4452_v14  ;;  %v4484_v56 = vld [vmem:[#allocation7 + $0x1360] sm:$0xff]  ;;  %v7699_v61 = vld [vmem:[#allocation7 + $0xd48] sm:$0xff] }
 0x973   :  { %5501 = vmatprep.subr.bf16.mxu0 %v6697_v18  ;;  %5542 = vmatprep.subr.bf16.mxu1 %v6825_v5  ;;  %v4384_v18 = vld [vmem:[#allocation7 + $0x1040] sm:$0xff]  ;;  %v6864_v59 = vcombine.low %v4480_v54, %v4484_v56  ;;  %v6675_v63 = vcombine.high %v7699_v61, %v7701_v62 }
 0x974   :  { %v6768_v26 = vcombine.low %v4384_v18, %v4388_v20  ;;  %v3882_v5 = vld [vmem:[#allocation10 + $0x5] ss:$8 sm:$0xf0] }
 0x976   :  { %5502 = vmatpush1.bf16.msra.mxu0 %v6696_v23  ;;  %5543 = vmatpush1.bf16.msra.mxu1 %v6824_v4  ;;  %v6769_v23 = vcombine.high %v4384_v18, %v4388_v20  ;;  %v3881_v4 = vld [vmem:[#allocation10 + $0x5] ss:$8 sm:$0xf] }
 0x977   :  { %5503 = vmatprep.subr.bf16.mxu0 %v6705_v53  ;;  %5544 = vmatprep.subr.bf16.mxu1 %v6833_v17  ;;  %v4460_v53 = vld [vmem:[#allocation7 + $0x12a0] sm:$0xff]  ;;  %v3883_v6 = vor.u32 %v3882_v5, %v3881_v4 }
 0x978   :  { %v6840_v22 = vcombine.low %v4456_v21, %v4460_v53 }
 0x979   :  { %v3888_v7 = vrot.slane %v3883_v6, %v7601_v46  ;;  %v3896_v13 = vrot.slane %v3883_v6, %v7604_v47  ;;  %v3900_v14 = vrot.slane %v3883_v6, %v7610_v49 }
 0x97a   :  { %5504 = vmatpush1.bf16.msra.mxu0 %v6704_v27  ;;  %5545 = vmatpush1.bf16.msra.mxu1 %v6832_v16  ;;  %v6841_v27 = vcombine.high %v4456_v21, %v4460_v53 }
 0x97b   :  { %5505 = vmatprep.subr.bf16.mxu0 %v6713_v28  ;;  %v4392_v28 = vld [vmem:[#allocation7 + $0x1080] sm:$0xff] }
 0x97c   :  { %5546 = vmatprep.subr.bf16.mxu1 %v6841_v27  ;;  %v6776_v35 = vcombine.low %v4392_v28, %v4396_v29 }
 0x97e   :  { %5506 = vmatpush1.bf16.msra.mxu0 %v6712_v32  ;;  %5547 = vmatpush1.bf16.msra.mxu1 %v6840_v22  ;;  %v6777_v32 = vcombine.high %v4392_v28, %v4396_v29 }
 0x97f   :  { %5507 = vmatprep.subr.bf16.mxu0 %v6721_v33  ;;  %v4468_v33 = vld [vmem:[#allocation7 + $0x12e0] sm:$0xff] }
 0x980   :  { %v6848_v36 = vcombine.low %v4464_v30, %v4468_v33 }
 0x982   :  { %5508 = vmatpush1.bf16.msra.mxu0 %v6720_v37  ;;  %v6849_v37 = vcombine.high %v4464_v30, %v4468_v33 }
 0x983   :  { %5509 = vmatprep.subr.bf16.mxu0 %v6729_v38  ;;  %v4400_v38 = vld [vmem:[#allocation7 + $0x10c0] sm:$0xff] }
 0x984   :  { %5548 = vmatprep.subr.bf16.mxu1 %v6849_v37 }
 0x985   :  { %5549 = vmatpush1.bf16.msra.mxu1 %v6848_v36 }
 0x986   :  { %5510 = vmatpush1.bf16.msra.mxu0 %v6728_v39  ;;  %v4404_v39 = vld [vmem:[#allocation7 + $0x10e0] sm:$0xff] }
 0x987   :  { %5511 = vmatprep.subr.bf16.mxu0 %v6737_v44  ;;  %v6785_v43 = vcombine.high %v4400_v38, %v4404_v39  ;;  %v6784_v44 = vcombine.low %v4400_v38, %v4404_v39 }
 0x98a   :  { %5512 = vmatpush1.bf16.msra.mxu0 %v6736_v50  ;;  %v6857_v50 = vcombine.high %v4472_v40, %v4476_v31 }
 0x98b   :  { %5513 = vmatprep.subr.bf16.mxu0 %v6745_v58  ;;  %v6792_v58 = vcombine.low %v4408_v51, %v4412_v52 }
 0x98c   :  { %5550 = vmatprep.subr.bf16.mxu1 %v6857_v50 }
 0x98d   :  { %5551 = vmatpush1.bf16.msra.mxu1 %v6856_v45 }
 0x98e   :  { %5514 = vmatpush1.bf16.msra.mxu0 %v6744_v60  ;;  %v6865_v60 = vcombine.high %v4480_v54, %v4484_v56 }
 0x98f   :  { %5515 = vmatprep.subr.bf16.mxu0 %v6753_v1  ;;  %v6674_v1 = vcombine.low %v7699_v61, %v7701_v62 }
 0x990   :  { %5552 = vmatprep.subr.bf16.mxu1 %v6865_v60  ;;  %v3908_v60 = vrot.slane %v3883_v6, %v7623_v10 }
 0x991   :  { %5553 = vmatpush1.bf16.msra.mxu1 %v6864_v59  ;;  %v3912_v59 = vrot.slane %v3883_v6, %v7620_v9 }
 0x992   :  { %5516 = vmatpush1.bf16.msra.mxu0 %v6752_v3  ;;  %v6803_v3 = vcombine.high %v7703_v25, %v7707_v0  ;;  %5577 = vmatprep.subr.bf16.mxu1 %v6675_v63  ;;  %v3916_v63 = vrot.slane %v3883_v6, %v520_v11  ;;  %v4425_v11 = vld [vmem:[#allocation7 + $0x1188] sm:$0xff] }
 0x993   :  { %5517 = vmatprep.subr.bf16.mxu0 %v6761_v34  ;;  %v3892_v34 = vrot.slane %v3883_v6, %v7607_v48  ;;  %v4317_v25 = vld [vmem:[#allocation7 + $0xe28] sm:$0xff] }
 0x996   :  { %5518 = vmatpush1.bf16.msra.mxu0 %v6760_v12 }
 0x997   :  { %5519 = vmatprep.subr.bf16.mxu0 %v6769_v23 }
 0x99a   :  { %5520 = vmatpush1.bf16.msra.mxu0 %v6768_v26 }
 0x99b   :  { %5521 = vmatprep.subr.bf16.mxu0 %v6777_v32 }
 0x99e   :  { %5522 = vmatpush1.bf16.msra.mxu0 %v6776_v35 }
 0x99f   :  { %5523 = vmatprep.subr.bf16.mxu0 %v6785_v43 }
 0x9a2   :  { %5524 = vmatpush1.bf16.msra.mxu0 %v6784_v44 }
 0x9a3   :  { %5525 = vmatprep.subr.bf16.mxu0 %v6793_v55  ;;  %v3904_v55 = vrot.slane %v3883_v6, %v7617_v8  ;;  %v4429_v6 = vld [vmem:[#allocation7 + $0x11a8] sm:$0xff] }
 0x9a6   :  { %5526 = vmatpush1.bf16.msra.mxu0 %v6792_v58 }
 0x9a7   :  { %5618 = vmatprep.subr.bf16.mxu0 %v6803_v3 }
 0xa2c   :  { %v4126_v12 = vpop.f32.mrb[20].mxu0  ;;  %v4167_v16 = vpop.f32.mrb[20].mxu1 }
 0xa2d   :  { %v4127_v17 = vadd.f32 %v4126_v12, %v3888_v7  ;;  %v4168_v18 = vadd.f32 %v4167_v16, %v3896_v13  ;;  %v4128_v20 = vpop.f32.mrb[21].mxu0  ;;  %v4169_v21 = vpop.f32.mrb[21].mxu1 }
 0xa2e   :  { %v4129_v23 = vadd.f32 %v4128_v20, %v3892_v34  ;;  %v4170_v53 = vadd.f32 %v4169_v21, %v3900_v14  ;;  %v4130_v26 = vpop.f32.mrb[22].mxu0  ;;  %v4171_v22 = vpop.f32.mrb[22].mxu1 }
 0xa2f   :  { %v6668_v27 = vmul.f32 -1.442695, %v4127_v17  ;;  %v6670_v28 = vmul.f32 -1.442695, %v4168_v18  ;;  %v4131_v29 = vpop.f32.mrb[23].mxu0  ;;  %v4172_v30 = vpop.f32.mrb[23].mxu1 }
 0xa30   :  { %v6669_v32 = vmul.f32 -1.442695, %v4129_v23  ;;  %v6671_v33 = vmul.f32 -1.442695, %v4170_v53  ;;  %v4297_v22 = vld [vmem:[#allocation7 + $0xd88] sm:$0xff] }
 0xa31   :  { %7173 = vpow2.f32 %v6668_v27  ;;  %v4301_v27 = vld [vmem:[#allocation7 + $0xda8] sm:$0xff] }
 0xa32   :  { %7175 = vpow2.f32 %v6670_v28 }
 0xa33   :  { %7177 = vpow2.f32 %v6669_v32  ;;  %v6683_v32 = vcombine.high %v4297_v22, %v4301_v27 }
 0xa34   :  { %7179 = vpow2.f32 %v6671_v33  ;;  %v4433_v33 = vld [vmem:[#allocation7 + $0x11c8] sm:$0xff] }
 0xa3b   :  { %v7174_v35 = vpop.eup %7173 }
 0xa3c   :  { %v7176_v36 = vpop.eup %7175  ;;  %v4268_v37 = vadd.f32 1.0, %v7174_v35  ;;  %v4208_v38 = vpop.f32.mrb[24].mxu0  ;;  %v4437_v35 = vld [vmem:[#allocation7 + $0x11e8] sm:$0xff] }
 0xa3d   :  { %v4249_v39 = vpop.f32.mrb[24].mxu1  ;;  %v7178_v40 = vpop.eup %7177  ;;  %v4270_v43 = vadd.f32 1.0, %v7176_v36  ;;  %v4209_v3 = vadd.f32 %v4208_v38, %v3904_v55  ;;  %v6811_v36 = vcombine.high %v4425_v11, %v4429_v6  ;;  %v4309_v38 = vld [vmem:[#allocation7 + $0xde8] sm:$0xff]  ;;  %v6818_v0 = vcombine.low %v4433_v33, %v4437_v35 }
 0xa3e   :  { %v4210_v31 = vpop.f32.mrb[25].mxu0  ;;  %v4251_v44 = vpop.f32.mrb[25].mxu1  ;;  %7181 = vrcp.f32 %v4268_v37  ;;  %v4269_v50 = vadd.f32 1.0, %v7178_v40  ;;  %v4250_v4 = vadd.f32 %v4249_v39, %v3912_v59  ;;  %v4305_v37 = vld [vmem:[#allocation7 + $0xdc8] sm:$0xff]  ;;  %v6810_v39 = vcombine.low %v4425_v11, %v4429_v6 }
 0xa3f   :  { %v7180_v45 = vpop.eup %7179  ;;  %v4212_v51 = vpop.f32.mrb[26].mxu0  ;;  %7183 = vrcp.f32 %v4270_v43  ;;  %v4211_v5 = vadd.f32 %v4210_v31, %v3908_v60  ;;  %v4252_v7 = vadd.f32 %v4251_v44, %v3916_v63  ;;  %v4280_v13 = vmax.f32 %v4209_v3, 0.0  ;;  %v4441_v44 = vld [vmem:[#allocation7 + $0x1208] sm:$0xff] }
 0xa40   :  { %v4253_v52 = vpop.f32.mrb[26].mxu1  ;;  %v4271_v54 = vadd.f32 1.0, %v7180_v45  ;;  %v4213_v56 = vpop.f32.mrb[27].mxu0  ;;  %7185 = vrcp.f32 %v4269_v50  ;;  %v4282_v14 = vmax.f32 %v4250_v4, 0.0  ;;  %v6682_v40 = vcombine.low %v4297_v22, %v4301_v27  ;;  %v4445_v45 = vld [vmem:[#allocation7 + $0x1228] sm:$0xff] }
 0xa41   :  { %v4254_v58 = vpop.f32.mrb[27].mxu1  ;;  %v4281_v17 = vmax.f32 %v4211_v5, 0.0  ;;  %v4283_v21 = vmax.f32 %v4252_v7, 0.0  ;;  %v6819_v43 = vcombine.high %v4433_v33, %v4437_v35  ;;  %v6691_v31 = vcombine.high %v4305_v37, %v4309_v38  ;;  %v4313_v50 = vld [vmem:[#allocation7 + $0xe08] sm:$0xff] }
 0xa42   :  { %7187 = vrcp.f32 %v4271_v54  ;;  %v6827_v61 = vcombine.high %v4441_v44, %v4445_v45  ;;  %v6699_v62 = vcombine.high %v4313_v50, %v4317_v25  ;;  %v4453_v51 = vld [vmem:[#allocation7 + $0x1268] sm:$0xff]  ;;  %v6826_v55 = vcombine.low %v4441_v44, %v4445_v45  ;;  %v4290_v44 = vld [vmem:[#allocation7 + $0xd50] sm:$0xff] }
 0xa43   :  { %v4321_v52 = vld [vmem:[#allocation7 + $0xe48] sm:$0xff]  ;;  %v6698_v56 = vcombine.low %v4313_v50, %v4317_v25  ;;  %v4294_v45 = vld [vmem:[#allocation7 + $0xd70] sm:$0xff] }
 0xa44   :  { %v4325_v54 = vld [vmem:[#allocation7 + $0xe68] sm:$0xff] }
 0xa45   :  { %v6707_v59 = vcombine.high %v4321_v52, %v4325_v54  ;;  %v4457_v60 = vld [vmem:[#allocation7 + $0x1288] sm:$0xff]  ;;  %v6706_v7 = vcombine.low %v4321_v52, %v4325_v54 }
 0xa46   :  { %v4461_v63 = vld [vmem:[#allocation7 + $0x12a8] sm:$0xff] }
 0xa47   :  { %v4329_v3 = vld [vmem:[#allocation7 + $0xe88] sm:$0xff] }
 0xa48   :  { %v7182_v34 = vpop.eup %7181  ;;  %v4333_v4 = vld [vmem:[#allocation7 + $0xea8] sm:$0xff] }
 0xa49   :  { %v7184_v12 = vpop.eup %7183  ;;  %v4284_v16 = vmul.f32 %v7182_v34, %v4280_v13  ;;  %v6843_v13 = vcombine.high %v4457_v60, %v4461_v63  ;;  %v6715_v34 = vcombine.high %v4329_v3, %v4333_v4  ;;  %v4345_v22 = vld [vmem:[#allocation7 + $0xf08] sm:$0xff] }
 0xa4a   :  { %v7186_v18 = vpop.eup %7185  ;;  %v4286_v20 = vmul.f32 %v7184_v12, %v4282_v14  ;;  %v4465_v14 = vld [vmem:[#allocation7 + $0x12c8] sm:$0xff] }
 0xa4b   :  { %v4285_v53 = vmul.f32 %v7186_v18, %v4281_v17  ;;  %v7726_v28 = vpack.c.bf16 %v4284_v16, %v4284_v16  ;;  %v4469_v12 = vld [vmem:[#allocation7 + $0x12e8] sm:$0xff]  ;;  %v6842_v18 = vcombine.low %v4457_v60, %v4461_v63  ;;  %v4306_v60 = vld [vmem:[#allocation7 + $0xdd0] sm:$0xff] }
 0xa4c   :  { %v7188_v23 = vpop.eup %7187  ;;  %v7730_v30 = vpack.c.bf16 %v4286_v20, %v4286_v20  ;;  %v4337_v16 = vld [vmem:[#allocation7 + $0xec8] sm:$0xff]  ;;  %v6714_v20 = vcombine.low %v4329_v3, %v4333_v4  ;;  %v6850_v11 = vcombine.low %v4465_v14, %v4469_v12  ;;  %v4310_v63 = vld [vmem:[#allocation7 + $0xdf0] sm:$0xff] }
 0xa4d   :  { %v4287_v26 = vmul.f32 %v7188_v23, %v4283_v21  ;;  %v7724_v42 = vpack.c.bf16 %v4285_v53, %v4285_v53  ;;  %v4341_v17 = vld [vmem:[#allocation7 + $0xee8] sm:$0xff]  ;;  %v6851_v21 = vcombine.high %v4465_v14, %v4469_v12  ;;  %v4314_v14 = vld [vmem:[#allocation7 + $0xe10] sm:$0xff] }
 0xa4e   :  { %v6723_v23 = vcombine.high %v4337_v16, %v4341_v17  ;;  %v4473_v53 = vld [vmem:[#allocation7 + $0x1308] sm:$0xff]  ;;  %v6722_v6 = vcombine.low %v4337_v16, %v4341_v17  ;;  %v4318_v12 = vld [vmem:[#allocation7 + $0xe30] sm:$0xff] }
 0xa4f   :  { %v7728_v29 = vpack.c.bf16 %v4287_v26, %v4287_v26  ;;  %5527 = vmatprep.mubr.bf16.mxu0 %v7724_v42  ;;  %v4477_v26 = vld [vmem:[#allocation7 + $0x1328] sm:$0xff] }
 0xa50   :  { %5528 = vmatmul.mubr.bf16.vlgmr.msra.gmra.mrb[28].mxu0 %v7726_v28  ;;  %v4349_v27 = vld [vmem:[#allocation7 + $0xf28] sm:$0xff] }
 0xa51   :  { %6872 = vmatprep.mubr.msk.bf16.mxu1 %vm2514_vm0, %v7728_v29  ;;  %5619 = vmatpush1.bf16.msra.mxu0 %v6802_v2  ;;  %v6690_v2 = vcombine.low %v4305_v37, %v4309_v38  ;;  %v6731_v33 = vcombine.high %v4345_v22, %v4349_v27  ;;  %v4481_v35 = vld [vmem:[#allocation7 + $0x1348] sm:$0xff] }
 0xa52   :  { %5569 = vmatmul.mubr.bf16.vlgmr.msra.gmra.mrb[28].mxu1 %v7730_v30  ;;  %6873 = vmatprep.mubr.msk.bf16.mxu0 %vm2514_vm0, %v7728_v29  ;;  %v4353_v37 = vld [vmem:[#allocation7 + $0xf48] sm:$0xff] }
 0xa53   :  { %5578 = vmatpush1.bf16.msra.mxu1 %v6674_v1  ;;  %5609 = vmatprep.mubr.bf16.mxu1 %v7724_v42  ;;  %v4449_v1 = vld [vmem:[#allocation7 + $0x1248] sm:$0xff] }
 0xa54   :  { %5579 = vmatprep.subr.bf16.mxu1 %v6683_v32  ;;  %5620 = vmatprep.subr.bf16.mxu0 %v6811_v36  ;;  %v6835_v58 = vcombine.high %v4449_v1, %v4453_v51  ;;  %v6834_v5 = vcombine.low %v4449_v1, %v4453_v51  ;;  %v6859_v32 = vcombine.high %v4473_v53, %v4477_v26  ;;  %v4485_v36 = vld [vmem:[#allocation7 + $0x1368] sm:$0xff]  ;;  %v4298_v1 = vld [vmem:[#allocation7 + $0xd90] sm:$0xff] }
 0xa55   :  { %5621 = vmatpush1.bf16.msra.mxu0 %v6810_v39  ;;  %v4357_v38 = vld [vmem:[#allocation7 + $0xf68] sm:$0xff]  ;;  %v6858_v39 = vcombine.low %v4473_v53, %v4477_v26  ;;  %v4302_v51 = vld [vmem:[#allocation7 + $0xdb0] sm:$0xff] }
 0xa56   :  { %5622 = vmatprep.subr.bf16.mxu0 %v6819_v43  ;;  %v6867_v43 = vcombine.high %v4481_v35, %v4485_v36  ;;  %v4361_v50 = vld [vmem:[#allocation7 + $0xf88] sm:$0xff]  ;;  %v4322_v53 = vld [vmem:[#allocation7 + $0xe50] sm:$0xff] }
 0xa57   :  { %5580 = vmatpush1.bf16.msra.mxu1 %v6682_v40  ;;  %v6730_v40 = vcombine.low %v4345_v22, %v4349_v27  ;;  %v4365_v25 = vld [vmem:[#allocation7 + $0xfa8] sm:$0xff]  ;;  %v4326_v26 = vld [vmem:[#allocation7 + $0xe70] sm:$0xff] }
 0xa58   :  { %5581 = vmatprep.subr.bf16.mxu1 %v6691_v31  ;;  %v6739_v31 = vcombine.high %v4353_v37, %v4357_v38  ;;  %v4369_v52 = vld [vmem:[#allocation7 + $0xfc8] sm:$0xff] }
 0xa59   :  { %5623 = vmatpush1.bf16.msra.mxu0 %v6818_v0  ;;  %v6866_v0 = vcombine.low %v4481_v35, %v4485_v36  ;;  %v4373_v54 = vld [vmem:[#allocation7 + $0xfe8] sm:$0xff]  ;;  %v4330_v35 = vld [vmem:[#allocation7 + $0xe90] sm:$0xff] }
 0xa5a   :  { %5624 = vmatprep.subr.bf16.mxu0 %v6827_v61  ;;  %v6677_v61 = vcombine.high %v4290_v44, %v4294_v45  ;;  %v4377_v3 = vld [vmem:[#allocation7 + $0x1008] sm:$0xff]  ;;  %v4334_v36 = vld [vmem:[#allocation7 + $0xeb0] sm:$0xff] }
 0xa5b   :  { %5582 = vmatpush1.bf16.msra.mxu1 %v6690_v2  ;;  %v6738_v2 = vcombine.low %v4353_v37, %v4357_v38  ;;  %v4381_v4 = vld [vmem:[#allocation7 + $0x1028] sm:$0xff] }
 0xa5c   :  { %5583 = vmatprep.subr.bf16.mxu1 %v6699_v62  ;;  %v6747_v62 = vcombine.high %v4361_v50, %v4365_v25  ;;  %v4385_v16 = vld [vmem:[#allocation7 + $0x1048] sm:$0xff] }
 0xa5d   :  { %5625 = vmatpush1.bf16.msra.mxu0 %v6826_v55  ;;  %v6676_v55 = vcombine.low %v4290_v44, %v4294_v45  ;;  %v4389_v17 = vld [vmem:[#allocation7 + $0x1068] sm:$0xff]  ;;  %v4338_v44 = vld [vmem:[#allocation7 + $0xed0] sm:$0xff] }
 0xa5e   :  { %5626 = vmatprep.subr.bf16.mxu0 %v6835_v58  ;;  %v6685_v58 = vcombine.high %v4298_v1, %v4302_v51  ;;  %v4393_v22 = vld [vmem:[#allocation7 + $0x1088] sm:$0xff]  ;;  %v4342_v45 = vld [vmem:[#allocation7 + $0xef0] sm:$0xff] }
 0xa5f   :  { %5584 = vmatpush1.bf16.msra.mxu1 %v6698_v56  ;;  %v6746_v56 = vcombine.low %v4361_v50, %v4365_v25  ;;  %v4397_v27 = vld [vmem:[#allocation7 + $0x10a8] sm:$0xff] }
 0xa60   :  { %5585 = vmatprep.subr.bf16.mxu1 %v6707_v59  ;;  %v6755_v59 = vcombine.high %v4369_v52, %v4373_v54  ;;  %v4401_v37 = vld [vmem:[#allocation7 + $0x10c8] sm:$0xff] }
 0xa61   :  { %5627 = vmatpush1.bf16.msra.mxu0 %v6834_v5  ;;  %v6684_v5 = vcombine.low %v4298_v1, %v4302_v51  ;;  %v4405_v38 = vld [vmem:[#allocation7 + $0x10e8] sm:$0xff]  ;;  %v4346_v1 = vld [vmem:[#allocation7 + $0xf10] sm:$0xff] }
 0xa62   :  { %5628 = vmatprep.subr.bf16.mxu0 %v6843_v13  ;;  %v6693_v13 = vcombine.high %v4306_v60, %v4310_v63  ;;  %v4409_v50 = vld [vmem:[#allocation7 + $0x1108] sm:$0xff]  ;;  %v4350_v51 = vld [vmem:[#allocation7 + $0xf30] sm:$0xff] }
 0xa63   :  { %5586 = vmatpush1.bf16.msra.mxu1 %v6706_v7  ;;  %v6754_v7 = vcombine.low %v4369_v52, %v4373_v54  ;;  %v4413_v25 = vld [vmem:[#allocation7 + $0x1128] sm:$0xff]  ;;  %v4418_v52 = vld [vmem:[#allocation7 + $0x1150] sm:$0xff] }
 0xa64   :  { %5587 = vmatprep.subr.bf16.mxu1 %v6715_v34  ;;  %v6763_v34 = vcombine.high %v4377_v3, %v4381_v4  ;;  %v4422_v54 = vld [vmem:[#allocation7 + $0x1170] sm:$0xff] }
 0xa65   :  { %5629 = vmatpush1.bf16.msra.mxu0 %v6842_v18  ;;  %v6692_v18 = vcombine.low %v4306_v60, %v4310_v63  ;;  %v4354_v60 = vld [vmem:[#allocation7 + $0xf50] sm:$0xff] }
 0xa66   :  { %5630 = vmatprep.subr.bf16.mxu0 %v6851_v21  ;;  %v6701_v21 = vcombine.high %v4314_v14, %v4318_v12  ;;  %v4358_v63 = vld [vmem:[#allocation7 + $0xf70] sm:$0xff] }
 0xa67   :  { %5588 = vmatpush1.bf16.msra.mxu1 %v6714_v20  ;;  %v6762_v20 = vcombine.low %v4377_v3, %v4381_v4  ;;  %v4426_v3 = vld [vmem:[#allocation7 + $0x1190] sm:$0xff] }
 0xa68   :  { %5589 = vmatprep.subr.bf16.mxu1 %v6723_v23  ;;  %v6771_v23 = vcombine.high %v4385_v16, %v4389_v17  ;;  %v4430_v4 = vld [vmem:[#allocation7 + $0x11b0] sm:$0xff] }
 0xa69   :  { %5631 = vmatpush1.bf16.msra.mxu0 %v6850_v11  ;;  %v6700_v11 = vcombine.low %v4314_v14, %v4318_v12  ;;  %v4362_v14 = vld [vmem:[#allocation7 + $0xf90] sm:$0xff] }
 0xa6a   :  { %5632 = vmatprep.subr.bf16.mxu0 %v6859_v32  ;;  %v6709_v32 = vcombine.high %v4322_v53, %v4326_v26  ;;  %v4366_v12 = vld [vmem:[#allocation7 + $0xfb0] sm:$0xff] }
 0xa6b   :  { %5590 = vmatpush1.bf16.msra.mxu1 %v6722_v6  ;;  %v6770_v6 = vcombine.low %v4385_v16, %v4389_v17  ;;  %v4434_v16 = vld [vmem:[#allocation7 + $0x11d0] sm:$0xff] }
 0xa6c   :  { %5591 = vmatprep.subr.bf16.mxu1 %v6731_v33  ;;  %v6779_v33 = vcombine.high %v4393_v22, %v4397_v27  ;;  %v4438_v17 = vld [vmem:[#allocation7 + $0x11f0] sm:$0xff] }
 0xa6d   :  { %5633 = vmatpush1.bf16.msra.mxu0 %v6858_v39  ;;  %v6708_v39 = vcombine.low %v4322_v53, %v4326_v26  ;;  %v4370_v53 = vld [vmem:[#allocation7 + $0xfd0] sm:$0xff] }
 0xa6e   :  { %5634 = vmatprep.subr.bf16.mxu0 %v6867_v43  ;;  %v6717_v43 = vcombine.high %v4330_v35, %v4334_v36  ;;  %v4374_v26 = vld [vmem:[#allocation7 + $0xff0] sm:$0xff] }
 0xa6f   :  { %5592 = vmatpush1.bf16.msra.mxu1 %v6730_v40  ;;  %v6778_v40 = vcombine.low %v4393_v22, %v4397_v27  ;;  %v4442_v22 = vld [vmem:[#allocation7 + $0x1210] sm:$0xff] }
 0xa70   :  { %5593 = vmatprep.subr.bf16.mxu1 %v6739_v31  ;;  %v6787_v31 = vcombine.high %v4401_v37, %v4405_v38  ;;  %v4446_v27 = vld [vmem:[#allocation7 + $0x1230] sm:$0xff] }
 0xa71   :  { %5635 = vmatpush1.bf16.msra.mxu0 %v6866_v0  ;;  %v6716_v0 = vcombine.low %v4330_v35, %v4334_v36  ;;  %v4378_v35 = vld [vmem:[#allocation7 + $0x1010] sm:$0xff] }
 0xa72   :  { %5659 = vmatprep.subr.bf16.mxu0 %v6677_v61  ;;  %v6725_v61 = vcombine.high %v4338_v44, %v4342_v45  ;;  %v4382_v36 = vld [vmem:[#allocation7 + $0x1030] sm:$0xff] }
 0xa73   :  { %5594 = vmatpush1.bf16.msra.mxu1 %v6738_v2  ;;  %v6786_v2 = vcombine.low %v4401_v37, %v4405_v38  ;;  %v4450_v37 = vld [vmem:[#allocation7 + $0x1250] sm:$0xff] }
 0xa74   :  { %5595 = vmatprep.subr.bf16.mxu1 %v6747_v62  ;;  %5651 = vmatmul.mubr.bf16.vlgmr.msra.gmra.mrb[32].mxu0 %v7730_v30  ;;  %v6795_v62 = vcombine.high %v4409_v50, %v4413_v25  ;;  %v4454_v38 = vld [vmem:[#allocation7 + $0x1270] sm:$0xff] }
 0xa75   :  { %5660 = vmatpush1.bf16.msra.mxu0 %v6676_v55  ;;  %5691 = vmatprep.mubr.bf16.mxu0 %v7724_v42  ;;  %v6724_v55 = vcombine.low %v4338_v44, %v4342_v45  ;;  %v4386_v44 = vld [vmem:[#allocation7 + $0x1050] sm:$0xff] }
 0xa76   :  { %5661 = vmatprep.subr.bf16.mxu0 %v6685_v58  ;;  %v6733_v58 = vcombine.high %v4346_v1, %v4350_v51  ;;  %v4390_v45 = vld [vmem:[#allocation7 + $0x1070] sm:$0xff] }
 0xa77   :  { %5596 = vmatpush1.bf16.msra.mxu1 %v6746_v56  ;;  %v6794_v56 = vcombine.low %v4409_v50, %v4413_v25  ;;  %v4458_v50 = vld [vmem:[#allocation7 + $0x1290] sm:$0xff] }
 0xa78   :  { %5597 = vmatprep.subr.bf16.mxu1 %v6755_v59  ;;  %v6805_v59 = vcombine.high %v4418_v52, %v4422_v54  ;;  %v4462_v25 = vld [vmem:[#allocation7 + $0x12b0] sm:$0xff] }
 0xa79   :  { %5662 = vmatpush1.bf16.msra.mxu0 %v6684_v5  ;;  %v6732_v5 = vcombine.low %v4346_v1, %v4350_v51  ;;  %v4394_v1 = vld [vmem:[#allocation7 + $0x1090] sm:$0xff] }
 0xa7a   :  { %5663 = vmatprep.subr.bf16.mxu0 %v6693_v13  ;;  %v6741_v13 = vcombine.high %v4354_v60, %v4358_v63  ;;  %v4398_v51 = vld [vmem:[#allocation7 + $0x10b0] sm:$0xff] }
 0xa7b   :  { %5598 = vmatpush1.bf16.msra.mxu1 %v6754_v7  ;;  %v6804_v7 = vcombine.low %v4418_v52, %v4422_v54  ;;  %v4466_v52 = vld [vmem:[#allocation7 + $0x12d0] sm:$0xff] }
 0xa7c   :  { %5599 = vmatprep.subr.bf16.mxu1 %v6763_v34  ;;  %v6813_v34 = vcombine.high %v4426_v3, %v4430_v4  ;;  %v4470_v54 = vld [vmem:[#allocation7 + $0x12f0] sm:$0xff] }
 0xa7d   :  { %5664 = vmatpush1.bf16.msra.mxu0 %v6692_v18  ;;  %v6740_v18 = vcombine.low %v4354_v60, %v4358_v63  ;;  %v4402_v60 = vld [vmem:[#allocation7 + $0x10d0] sm:$0xff] }
 0xa7e   :  { %5665 = vmatprep.subr.bf16.mxu0 %v6701_v21  ;;  %v6749_v21 = vcombine.high %v4362_v14, %v4366_v12  ;;  %v4406_v63 = vld [vmem:[#allocation7 + $0x10f0] sm:$0xff] }
 0xa7f   :  { %5600 = vmatpush1.bf16.msra.mxu1 %v6762_v20  ;;  %v6812_v20 = vcombine.low %v4426_v3, %v4430_v4  ;;  %v4474_v3 = vld [vmem:[#allocation7 + $0x1310] sm:$0xff] }
 0xa80   :  { %5601 = vmatprep.subr.bf16.mxu1 %v6771_v23  ;;  %v6821_v23 = vcombine.high %v4434_v16, %v4438_v17  ;;  %v4478_v4 = vld [vmem:[#allocation7 + $0x1330] sm:$0xff] }
 0xa81   :  { %5666 = vmatpush1.bf16.msra.mxu0 %v6700_v11  ;;  %v6748_v11 = vcombine.low %v4362_v14, %v4366_v12  ;;  %v4410_v14 = vld [vmem:[#allocation7 + $0x1110] sm:$0xff] }
 0xa82   :  { %5667 = vmatprep.subr.bf16.mxu0 %v6709_v32  ;;  %v6757_v32 = vcombine.high %v4370_v53, %v4374_v26  ;;  %v4414_v12 = vld [vmem:[#allocation7 + $0x1130] sm:$0xff] }
 0xa83   :  { %5602 = vmatpush1.bf16.msra.mxu1 %v6770_v6  ;;  %v6820_v6 = vcombine.low %v4434_v16, %v4438_v17  ;;  %v4482_v16 = vld [vmem:[#allocation7 + $0x1350] sm:$0xff] }
 0xa84   :  { %5603 = vmatprep.subr.bf16.mxu1 %v6779_v33  ;;  %v6829_v33 = vcombine.high %v4442_v22, %v4446_v27  ;;  %v4486_v17 = vld [vmem:[#allocation7 + $0x1370] sm:$0xff] }
 0xa85   :  { %5668 = vmatpush1.bf16.msra.mxu0 %v6708_v39  ;;  %v6756_v39 = vcombine.low %v4370_v53, %v4374_v26  ;;  %v4419_v53 = vld [vmem:[#allocation7 + $0x1158] sm:$0xff] }
 0xa86   :  { %5669 = vmatprep.subr.bf16.mxu0 %v6717_v43  ;;  %v6765_v43 = vcombine.high %v4378_v35, %v4382_v36  ;;  %v4423_v26 = vld [vmem:[#allocation7 + $0x1178] sm:$0xff] }
 0xa87   :  { %5604 = vmatpush1.bf16.msra.mxu1 %v6778_v40  ;;  %v6828_v40 = vcombine.low %v4442_v22, %v4446_v27  ;;  %v4291_v22 = vld [vmem:[#allocation7 + $0xd58] sm:$0xff] }
 0xa88   :  { %5605 = vmatprep.subr.bf16.mxu1 %v6787_v31  ;;  %v6837_v31 = vcombine.high %v4450_v37, %v4454_v38  ;;  %v4295_v27 = vld [vmem:[#allocation7 + $0xd78] sm:$0xff] }
 0xa89   :  { %5670 = vmatpush1.bf16.msra.mxu0 %v6716_v0  ;;  %v6764_v0 = vcombine.low %v4378_v35, %v4382_v36  ;;  %v4299_v35 = vld [vmem:[#allocation7 + $0xd98] sm:$0xff] }
 0xa8a   :  { %5671 = vmatprep.subr.bf16.mxu0 %v6725_v61  ;;  %v6773_v61 = vcombine.high %v4386_v44, %v4390_v45  ;;  %v4303_v36 = vld [vmem:[#allocation7 + $0xdb8] sm:$0xff] }
 0xa8b   :  { %5606 = vmatpush1.bf16.msra.mxu1 %v6786_v2  ;;  %v6836_v2 = vcombine.low %v4450_v37, %v4454_v38  ;;  %v6806_v37 = vcombine.low %v4419_v53, %v4423_v26  ;;  %v4427_v38 = vld [vmem:[#allocation7 + $0x1198] sm:$0xff] }
 0xa8c   :  { %5607 = vmatprep.subr.bf16.mxu1 %v6795_v62  ;;  %v6845_v62 = vcombine.high %v4458_v50, %v4462_v25 }
 0xa8d   :  { %5672 = vmatpush1.bf16.msra.mxu0 %v6724_v55  ;;  %v6772_v55 = vcombine.low %v4386_v44, %v4390_v45  ;;  %v4439_v44 = vld [vmem:[#allocation7 + $0x11f8] sm:$0xff] }
 0xa8e   :  { %5673 = vmatprep.subr.bf16.mxu0 %v6733_v58  ;;  %v6781_v58 = vcombine.high %v4394_v1, %v4398_v51 }
 0xa8f   :  { %5608 = vmatpush1.bf16.msra.mxu1 %v6794_v56  ;;  %v6844_v56 = vcombine.low %v4458_v50, %v4462_v25  ;;  %v4307_v50 = vld [vmem:[#allocation7 + $0xdd8] sm:$0xff] }
 0xa90   :  { %5700 = vmatprep.subr.bf16.mxu1 %v6805_v59  ;;  %v6853_v59 = vcombine.high %v4466_v52, %v4470_v54  ;;  %v4311_v25 = vld [vmem:[#allocation7 + $0xdf8] sm:$0xff] }
 0xa91   :  { %5674 = vmatpush1.bf16.msra.mxu0 %v6732_v5  ;;  %v6780_v5 = vcombine.low %v4394_v1, %v4398_v51  ;;  %v4443_v1 = vld [vmem:[#allocation7 + $0x1218] sm:$0xff] }
 0xa92   :  { %5610 = vmatmul.mubr.bf16.vlgmr.msra.gmra.mrb[32].mxu1 %v7726_v28  ;;  %5675 = vmatprep.subr.bf16.mxu0 %v6741_v13  ;;  %v6789_v13 = vcombine.high %v4402_v60, %v4406_v63  ;;  %v4447_v51 = vld [vmem:[#allocation7 + $0x1238] sm:$0xff] }
 0xa93   :  { %5701 = vmatpush1.bf16.msra.mxu1 %v6804_v7  ;;  %6874 = vmatprep.mubr.msk.bf16.mxu1 %vm2514_vm0, %v7728_v29  ;;  %v6852_v7 = vcombine.low %v4466_v52, %v4470_v54  ;;  %v4315_v52 = vld [vmem:[#allocation7 + $0xe18] sm:$0xff] }
 0xa94   :  { %5702 = vmatprep.subr.bf16.mxu1 %v6813_v34  ;;  %v6861_v34 = vcombine.high %v4474_v3, %v4478_v4  ;;  %v4319_v54 = vld [vmem:[#allocation7 + $0xe38] sm:$0xff] }
 0xa95   :  { %5676 = vmatpush1.bf16.msra.mxu0 %v6740_v18  ;;  %v6788_v18 = vcombine.low %v4402_v60, %v4406_v63  ;;  %v4455_v60 = vld [vmem:[#allocation7 + $0x1278] sm:$0xff] }
 0xa96   :  { %5677 = vmatprep.subr.bf16.mxu0 %v6749_v21  ;;  %v6797_v21 = vcombine.high %v4410_v14, %v4414_v12  ;;  %v4323_v63 = vld [vmem:[#allocation7 + $0xe58] sm:$0xff] }
 0xa97   :  { %5703 = vmatpush1.bf16.msra.mxu1 %v6812_v20  ;;  %v6860_v20 = vcombine.low %v4474_v3, %v4478_v4  ;;  %v4327_v3 = vld [vmem:[#allocation7 + $0xe78] sm:$0xff]  ;;  %v6702_v4 = vcombine.low %v4315_v52, %v4319_v54 }
 0xa98   :  { %5704 = vmatprep.subr.bf16.mxu1 %v6821_v23  ;;  %v6869_v23 = vcombine.high %v4482_v16, %v4486_v17 }
 0xa99   :  { %5678 = vmatpush1.bf16.msra.mxu0 %v6748_v11  ;;  %v6796_v11 = vcombine.low %v4410_v14, %v4414_v12  ;;  %v4331_v14 = vld [vmem:[#allocation7 + $0xe98] sm:$0xff] }
 0xa9a   :  { %5679 = vmatprep.subr.bf16.mxu0 %v6757_v32  ;;  %v6807_v32 = vcombine.high %v4419_v53, %v4423_v26  ;;  %v4335_v12 = vld [vmem:[#allocation7 + $0xeb8] sm:$0xff] }
 0xa9b   :  { %5705 = vmatpush1.bf16.msra.mxu1 %v6820_v6  ;;  %v6868_v6 = vcombine.low %v4482_v16, %v4486_v17  ;;  %v6710_v17 = vcombine.low %v4323_v63, %v4327_v3  ;;  %v4339_v53 = vld [vmem:[#allocation7 + $0xed8] sm:$0xff] }
 0xa9c   :  { %5706 = vmatprep.subr.bf16.mxu1 %v6829_v33  ;;  %v6679_v33 = vcombine.high %v4291_v22, %v4295_v27  ;;  %v4343_v26 = vld [vmem:[#allocation7 + $0xef8] sm:$0xff] }
 0xa9d   :  { %5680 = vmatpush1.bf16.msra.mxu0 %v6756_v39  ;;  %v4431_v39 = vld [vmem:[#allocation7 + $0x11b8] sm:$0xff] }
 0xa9e   :  { %5681 = vmatprep.subr.bf16.mxu0 %v6765_v43  ;;  %v6687_v43 = vcombine.high %v4299_v35, %v4303_v36  ;;  %v6815_v45 = vcombine.high %v4427_v38, %v4431_v39 }
 0xa9f   :  { %5707 = vmatpush1.bf16.msra.mxu1 %v6828_v40  ;;  %v6678_v40 = vcombine.low %v4291_v22, %v4295_v27  ;;  %v6718_v27 = vcombine.low %v4331_v14, %v4335_v12 }
 0xaa0   :  { %5708 = vmatprep.subr.bf16.mxu1 %v6837_v31  ;;  %v4435_v31 = vld [vmem:[#allocation7 + $0x11d8] sm:$0xff] }
 0xaa1   :  { %5682 = vmatpush1.bf16.msra.mxu0 %v6764_v0  ;;  %v6814_v0 = vcombine.low %v4427_v38, %v4431_v39  ;;  %v6726_v38 = vcombine.low %v4339_v53, %v4343_v26 }
 0xaa2   :  { %5683 = vmatprep.subr.bf16.mxu0 %v6773_v61  ;;  %v6823_v61 = vcombine.high %v4435_v31, %v4439_v44 }
 0xaa3   :  { %5709 = vmatpush1.bf16.msra.mxu1 %v6836_v2  ;;  %v6686_v2 = vcombine.low %v4299_v35, %v4303_v36  ;;  %v4347_v35 = vld [vmem:[#allocation7 + $0xf18] sm:$0xff] }
 0xaa4   :  { %5710 = vmatprep.subr.bf16.mxu1 %v6845_v62  ;;  %v6695_v62 = vcombine.high %v4307_v50, %v4311_v25  ;;  %v4351_v36 = vld [vmem:[#allocation7 + $0xf38] sm:$0xff] }
 0xaa5   :  { %5684 = vmatpush1.bf16.msra.mxu0 %v6772_v55  ;;  %v6822_v55 = vcombine.low %v4435_v31, %v4439_v44  ;;  %v4487_v31 = vld [vmem:[#allocation7 + $0x1378] sm:$0xff] }
 0xaa6   :  { %5685 = vmatprep.subr.bf16.mxu0 %v6781_v58  ;;  %v6831_v58 = vcombine.high %v4443_v1, %v4447_v51  ;;  %v4355_v44 = vld [vmem:[#allocation7 + $0xf58] sm:$0xff] }
 0xaa7   :  { %5711 = vmatpush1.bf16.msra.mxu1 %v6844_v56  ;;  %v6694_v56 = vcombine.low %v4307_v50, %v4311_v25  ;;  %v6734_v25 = vcombine.low %v4347_v35, %v4351_v36 }
 0xaa8   :  { %5712 = vmatprep.subr.bf16.mxu1 %v6853_v59  ;;  %v4451_v59 = vld [vmem:[#allocation7 + $0x1258] sm:$0xff] }
 0xaa9   :  { %5686 = vmatpush1.bf16.msra.mxu0 %v6780_v5  ;;  %v6839_v5 = vcombine.high %v4451_v59, %v4455_v60  ;;  %v6838_v16 = vcombine.low %v4451_v59, %v4455_v60  ;;  %v4379_v60 = vld [vmem:[#allocation7 + $0x1018] sm:$0xff] }
 0xaaa   :  { %5687 = vmatprep.subr.bf16.mxu0 %v6789_v13  ;;  %v4459_v13 = vld [vmem:[#allocation7 + $0x1298] sm:$0xff] }
 0xaab   :  { %5713 = vmatpush1.bf16.msra.mxu1 %v6852_v7  ;;  %v6711_v7 = vcombine.high %v4323_v63, %v4327_v3  ;;  %v4383_v63 = vld [vmem:[#allocation7 + $0x1038] sm:$0xff] }
 0xaac   :  { %5714 = vmatprep.subr.bf16.mxu1 %v6861_v34  ;;  %v4463_v34 = vld [vmem:[#allocation7 + $0x12b8] sm:$0xff] }
 0xaad   :  { %5688 = vmatpush1.bf16.msra.mxu0 %v6788_v18  ;;  %v6847_v18 = vcombine.high %v4459_v13, %v4463_v34  ;;  %v6846_v22 = vcombine.low %v4459_v13, %v4463_v34  ;;  %v4399_v34 = vld [vmem:[#allocation7 + $0x10b8] sm:$0xff] }
 0xaae   :  { %5689 = vmatprep.subr.bf16.mxu0 %v6797_v21  ;;  %v4467_v21 = vld [vmem:[#allocation7 + $0x12d8] sm:$0xff] }
 0xaaf   :  { %5715 = vmatpush1.bf16.msra.mxu1 %v6860_v20  ;;  %v6719_v20 = vcombine.high %v4331_v14, %v4335_v12 }
 0xab0   :  { %5716 = vmatprep.subr.bf16.mxu1 %v6869_v23  ;;  %v4471_v23 = vld [vmem:[#allocation7 + $0x12f8] sm:$0xff] }
 0xab1   :  { %5690 = vmatpush1.bf16.msra.mxu0 %v6796_v11  ;;  %v6855_v11 = vcombine.high %v4467_v21, %v4471_v23 }
 0xab2   :  { %5781 = vmatprep.subr.bf16.mxu0 %v6807_v32  ;;  %v4475_v32 = vld [vmem:[#allocation7 + $0x1318] sm:$0xff] }
 0xab3   :  { %5717 = vmatpush1.bf16.msra.mxu1 %v6868_v6  ;;  %v6727_v6 = vcombine.high %v4339_v53, %v4343_v26 }
 0xab4   :  { %5741 = vmatprep.subr.bf16.mxu1 %v6679_v33  ;;  %5692 = vmatmul.mubr.bf16.vlgmr.msra.gmra.mrb[36].mxu0 %v7726_v28  ;;  %v4479_v33 = vld [vmem:[#allocation7 + $0x1338] sm:$0xff] }
 0xab5   :  { %5782 = vmatpush1.bf16.msra.mxu0 %v6806_v37  ;;  %6875 = vmatprep.mubr.msk.bf16.mxu0 %vm2514_vm0, %v7728_v29  ;;  %v6830_v29 = vcombine.low %v4443_v1, %v4447_v51  ;;  %v6854_v37 = vcombine.low %v4467_v21, %v4471_v23  ;;  %v6863_v39 = vcombine.high %v4475_v32, %v4479_v33  ;;  %v4411_v21 = vld [vmem:[#allocation7 + $0x1118] sm:$0xff] }
 0xab6   :  { %5733 = vmatmul.mubr.bf16.vlgmr.msra.gmra.mrb[36].mxu1 %v7730_v30  ;;  %5783 = vmatprep.subr.bf16.mxu0 %v6815_v45  ;;  %v4359_v45 = vld [vmem:[#allocation7 + $0xf78] sm:$0xff]  ;;  %v6862_v50 = vcombine.low %v4475_v32, %v4479_v33 }
 0xab7   :  { %5742 = vmatpush1.bf16.msra.mxu1 %v6678_v40  ;;  %5773 = vmatprep.mubr.bf16.mxu1 %v7724_v42  ;;  %v6703_v42 = vcombine.high %v4315_v52, %v4319_v54  ;;  %v6735_v40 = vcombine.high %v4347_v35, %v4351_v36  ;;  %v6742_v51 = vcombine.low %v4355_v44, %v4359_v45  ;;  %v7132_v52 = vld [vmem:[#allocation8 + $0x130] sm:$0x1f]   ;;  %v4415_v23 = vld [vmem:[#allocation7 + $0x1138] sm:$0xff] }
 0xab8   :  { %5743 = vmatprep.subr.bf16.mxu1 %v6687_v43  ;;  %v4483_v43 = vld [vmem:[#allocation7 + $0x1358] sm:$0xff]  ;;  %v6798_v26 = vcombine.low %v4411_v21, %v4415_v23 }
 0xab9   :  { %5784 = vmatpush1.bf16.msra.mxu0 %v6814_v0  ;;  %v6871_v0 = vcombine.high %v4483_v43, %v4487_v31  ;;  %v6870_v1 = vcombine.low %v4483_v43, %v4487_v31 }
 0xaba   :  { %5785 = vmatprep.subr.bf16.mxu0 %v6823_v61  ;;  %v4363_v61 = vld [vmem:[#allocation7 + $0xf98] sm:$0xff] }
 0xabb   :  { %5744 = vmatpush1.bf16.msra.mxu1 %v6686_v2  ;;  %v6743_v2 = vcombine.high %v4355_v44, %v4359_v45 }
 0xabc   :  { %5745 = vmatprep.subr.bf16.mxu1 %v6695_v62  ;;  %v4367_v62 = vld [vmem:[#allocation7 + $0xfb8] sm:$0xff] }
 0xabd   :  { %5786 = vmatpush1.bf16.msra.mxu0 %v6822_v55  ;;  %v6751_v54 = vcombine.high %v4363_v61, %v4367_v62  ;;  %v4371_v55 = vld [vmem:[#allocation7 + $0xfd8] sm:$0xff] }
 0xabe   :  { %5787 = vmatprep.subr.bf16.mxu0 %v6831_v58  ;;  %v6750_v58 = vcombine.low %v4363_v61, %v4367_v62 }
 0xabf   :  { %5746 = vmatpush1.bf16.msra.mxu1 %v6694_v56  ;;  %v4375_v56 = vld [vmem:[#allocation7 + $0xff8] sm:$0xff] }
 0xac0   :  { %5747 = vmatprep.subr.bf16.mxu1 %v6703_v42  ;;  %v5926_v42 = vsel %vm3534_vm2, %v7132_v52, 0  ;;  %v6759_v59 = vcombine.high %v4371_v55, %v4375_v56  ;;  %v6758_v3 = vcombine.low %v4371_v55, %v4375_v56 }
 0xac1   :  { %5788 = vmatpush1.bf16.msra.mxu0 %v6830_v29  ;;  %v6767_v29 = vcombine.high %v4379_v60, %v4383_v63 }
 0xac2   :  { %5789 = vmatprep.subr.bf16.mxu0 %v6839_v5  ;;  %v4391_v5 = vld [vmem:[#allocation7 + $0x1078] sm:$0xff] }
 0xac3   :  { %5748 = vmatpush1.bf16.msra.mxu1 %v6702_v4  ;;  %v4387_v4 = vld [vmem:[#allocation7 + $0x1058] sm:$0xff] }
 0xac4   :  { %5749 = vmatprep.subr.bf16.mxu1 %v6711_v7  ;;  %v6766_v7 = vcombine.low %v4379_v60, %v4383_v63  ;;  %v6775_v13 = vcombine.high %v4387_v4, %v4391_v5  ;;  %v6774_v14 = vcombine.low %v4387_v4, %v4391_v5  ;;  %v7133_v4 = vld [vmem:[#allocation8 + $0x138] sm:$0xff]  }
 0xac5   :  { %5790 = vmatpush1.bf16.msra.mxu0 %v6838_v16  ;;  %v4403_v16 = vld [vmem:[#allocation7 + $0x10d8] sm:$0xff] }
 0xac6   :  { %5791 = vmatprep.subr.bf16.mxu0 %v6847_v18 }
 0xac7   :  { %5750 = vmatpush1.bf16.msra.mxu1 %v6710_v17  ;;  %v4407_v17 = vld [vmem:[#allocation7 + $0x10f8] sm:$0xff] }
 0xac8   :  { %5751 = vmatprep.subr.bf16.mxu1 %v6719_v20  ;;  %v6791_v20 = vcombine.high %v4403_v16, %v4407_v17  ;;  %v6790_v53 = vcombine.low %v4403_v16, %v4407_v17 }
 0xac9   :  { %5792 = vmatpush1.bf16.msra.mxu0 %v6846_v22  ;;  %v5822_v22 = vld [vmem:[#allocation10 + $0x6] ss:$8 sm:$0xf] }
 0xaca   :  { %5793 = vmatprep.subr.bf16.mxu0 %v6855_v11 }
 0xacb   :  { %5752 = vmatpush1.bf16.msra.mxu1 %v6718_v27  ;;  %v5823_v27 = vld [vmem:[#allocation10 + $0x6] ss:$8 sm:$0x70] }
 0xacc   :  { %5753 = vmatprep.subr.bf16.mxu1 %v6727_v6  ;;  %v7770_v11 = vor.u32 %v5823_v27, %v5822_v22 }
 0xacd   :  { %5794 = vmatpush1.bf16.msra.mxu0 %v6854_v37 }
 0xace   :  { %5795 = vmatprep.subr.bf16.mxu0 %v6863_v39  ;;  %v5829_v32 = vrot.slane %v7770_v11, %v7601_v46  ;;  %v5833_v36 = vrot.slane %v7770_v11, %v7607_v48  ;;  %v5837_v55 = vrot.slane %v7770_v11, %v7604_v47  ;;  %v5845_v17 = vrot.slane %v7770_v11, %v7617_v8 }
 0xacf   :  { %5754 = vmatpush1.bf16.msra.mxu1 %v6726_v38 }
 0xad0   :  { %5755 = vmatprep.subr.bf16.mxu1 %v6735_v40 }
 0xad1   :  { %5796 = vmatpush1.bf16.msra.mxu0 %v6862_v50 }
 0xad2   :  { %5797 = vmatprep.subr.bf16.mxu0 %v6871_v0 }
 0xad3   :  { %5756 = vmatpush1.bf16.msra.mxu1 %v6734_v25 }
 0xad4   :  { %5757 = vmatprep.subr.bf16.mxu1 %v6743_v2 }
 0xad5   :  { %5798 = vmatpush1.bf16.msra.mxu0 %v6870_v1 }
 0xad6   :  { %6983 = vmatprep.subr.bf16.mxu0 %v7408_v57 }
 0xad7   :  { %5758 = vmatpush1.bf16.msra.mxu1 %v6742_v51 }
 0xad8   :  { %5759 = vmatprep.subr.bf16.mxu1 %v6751_v54  ;;  %5814 = vmatmul.mubr.bf16.vlgmr.msra.gmra.mrb[40].mxu0 %v7730_v30  ;;  %v4395_v30 = vld [vmem:[#allocation7 + $0x1098] sm:$0xff] }
 0xad9   :  { %6984 = vmatpush3.bf16.msra.mxu0 %v5926_v42  ;;  %6985 = vmatprep.mubr.msk.bf16.mxu0 %vm7409_vm5, %v7408_v57  ;;  %v6783_v12 = vcombine.high %v4395_v30, %v4399_v34  ;;  %v6782_v18 = vcombine.low %v4395_v30, %v4399_v34 }
 0xada   :  { %6989 = vmatprep.subr.bf16.mxu0 %v7408_v57 }
 0xadb   :  { %5760 = vmatpush1.bf16.msra.mxu1 %v6750_v58  ;;  %v5841_v58 = vrot.slane %v7770_v11, %v7610_v49 }
 0xadc   :  { %5761 = vmatprep.subr.bf16.mxu1 %v6759_v59 }
 0xadf   :  { %5762 = vmatpush1.bf16.msra.mxu1 %v6758_v3 }
 0xae0   :  { %5763 = vmatprep.subr.bf16.mxu1 %v6767_v29  ;;  %6986 = vmatmul.mubr.msk.bf16.vlgmr.msra.gmra.mrb[44].mxu0 %vm3530_vm3, %v7640_v19  ;;  %v6799_v19 = vcombine.high %v4411_v21, %v4415_v23  ;;  %v5849_v21 = vrot.slane %v7770_v11, %v7623_v10 }
 0xae1   :  { %6993 = vmatprep.mubr.msk.bf16.mxu0 %vm7409_vm5, %v7408_v57  ;;  %6990 = vmatpush3.bf16.msra.mxu0 %v7133_v4 }
 0xae2   :  { %6991 = vmatprep.subr.bf16.mxu0 %v7408_v57 }
 0xae3   :  { %5764 = vmatpush1.bf16.msra.mxu1 %v6766_v7 }
 0xae4   :  { %5765 = vmatprep.subr.bf16.mxu1 %v6775_v13 }
 0xae7   :  { %5766 = vmatpush1.bf16.msra.mxu1 %v6774_v14 }
 0xae8   :  { %5767 = vmatprep.subr.bf16.mxu1 %v6783_v12 }
 0xaeb   :  { %5768 = vmatpush1.bf16.msra.mxu1 %v6782_v18 }
 0xaec   :  { %5769 = vmatprep.subr.bf16.mxu1 %v6791_v20 }
 0xaef   :  { %5770 = vmatpush1.bf16.msra.mxu1 %v6790_v53 }
 0xaf0   :  { %5771 = vmatprep.subr.bf16.mxu1 %v6799_v19 }
 0xaf3   :  { %5772 = vmatpush1.bf16.msra.mxu1 %v6798_v26 }
 0xaf4   :  { %6997 = vmatprep.subr.bf16.mxu1 %v7408_v57 }
 0xaf6   :  { %5774 = vmatmul.mubr.bf16.vlgmr.msra.gmra.mrb[40].mxu1 %v7726_v28 }
 0xaf7   :  { %7001 = vmatprep.mubr.msk.bf16.mxu1 %vm7409_vm5, %v7408_v57 }
 0xb23   :  { %v5529_v6 = vpop.f32.mrb[28].mxu0 }
 0xb24   :  { %v5531_v35 = vpop.f32.mrb[29].mxu0 }
 0xb25   :  { %v5570_v33 = vpop.f32.mrb[28].mxu1  ;;  %v5533_v39 = vpop.f32.mrb[30].mxu0 }
 0xb26   :  { %v5571_v37 = vadd.f32 %v5570_v33, %v5529_v6  ;;  %v5572_v38 = vpop.f32.mrb[29].mxu1  ;;  %v5534_v43 = vpop.f32.mrb[31].mxu0 }
 0xb27   :  { %v5573_v28 = vadd.f32 %v5572_v38, %v5531_v35  ;;  %v5574_v40 = vpop.f32.mrb[30].mxu1  ;;  %v7134_v43 = vld [vmem:[#allocation8 + $0x140] ss:$0 sps:$4 sm:$0x33]  }
 0xb28   :  { %v5861_v31 = vadd.f32 %v5829_v32, %v5571_v37  ;;  %v5575_v44 = vpop.f32.mrb[31].mxu1 }
 0xb29   :  { %v5862_v45 = vadd.f32 %v5833_v36, %v5573_v28 }
 0xb2a   :  { %v6876_v50 = vmul.f32 -1.442695, %v5861_v31 }
 0xb2b   :  { %v6877_v25 = vmul.f32 -1.442695, %v5862_v45  ;;  %v6000_v45 = vsel %vm5998_vm8, %v7134_v43, 0 }
 0xb2c   :  { %7189 = vpow2.f32 %v6876_v50  ;;  %6992 = vmatpush3.bf16.msra.mxu0 %v6000_v45 }
 0xb2d   :  { %7191 = vpow2.f32 %v6877_v25  ;;  %v5919_v25 = vld [vmem:[#allocation10 + $0x7] ss:$0 sm:$0xff] }
 0xb36   :  { %v7190_v0 = vpop.eup %7189 }
 0xb37   :  { %v7192_v46 = vpop.eup %7191  ;;  %v5889_v2 = vadd.f32 1.0, %v7190_v0 }
 0xb38   :  { %v5890_v61 = vadd.f32 1.0, %v7192_v46 }
 0xb39   :  { %7193 = vrcp.f32 %v5889_v2 }
 0xb3a   :  { %7195 = vrcp.f32 %v5890_v61 }
 0xb43   :  { %v7194_v48 = vpop.eup %7193 }
 0xb44   :  { %v7196_v62 = vpop.eup %7195  ;;  %5910 = vst [vmem:[#allocation11] sm:$0xff] %v7194_v48 }
 0xb45   :  { %5911 = vst [vmem:[#allocation11 + $0x8] sm:$0xff] %v7196_v62 }
 0xb47   :  { %v5652_v1 = vpop.f32.mrb[32].mxu0 }
 0xb48   :  { %v5654_v51 = vpop.f32.mrb[33].mxu0 }
 0xb49   :  { %v5656_v52 = vpop.f32.mrb[34].mxu0 }
 0xb4a   :  { %v5657_v54 = vpop.f32.mrb[35].mxu0 }
 0xb65   :  { %v5611_v56 = vpop.f32.mrb[32].mxu1 }
 0xb66   :  { %v5653_v42 = vadd.f32 %v5652_v1, %v5611_v56  ;;  %v5613_v59 = vpop.f32.mrb[33].mxu1  ;;  %v5853_v1 = vrot.slane %v7770_v11, %v7620_v9 }
 0xb67   :  { %v5655_v60 = vadd.f32 %v5654_v51, %v5613_v59  ;;  %v5615_v63 = vpop.f32.mrb[34].mxu1 }
 0xb68   :  { %v5863_v3 = vadd.f32 %v5837_v55, %v5653_v42  ;;  %v5616_v29 = vpop.f32.mrb[35].mxu1 }
 0xb69   :  { %v5864_v5 = vadd.f32 %v5841_v58, %v5655_v60 }
 0xb6a   :  { %v6878_v7 = vmul.f32 -1.442695, %v5863_v3 }
 0xb6b   :  { %v6879_v13 = vmul.f32 -1.442695, %v5864_v5 }
 0xb6c   :  { %7197 = vpow2.f32 %v6878_v7 }
 0xb6d   :  { %7199 = vpow2.f32 %v6879_v13  ;;  %v7135_v13 = vld [vmem:[#allocation8 + $0x148] sm:$0xff]  }
 0xb6e   :  { %6998 = vmatpush3.bf16.msra.mxu1 %v7135_v13 }
 0xb6f   :  { %6999 = vmatprep.subr.bf16.mxu1 %v7408_v57 }
 0xb76   :  { %v7198_v47 = vpop.eup %7197 }
 0xb77   :  { %v7200_v30 = vpop.eup %7199  ;;  %v5891_v34 = vadd.f32 1.0, %v7198_v47  ;;  %v7136_v47 = vld [vmem:[#allocation8 + $0x150] ss:$0 sps:$4 sm:$0x33]  }
 0xb78   :  { %v5892_v14 = vadd.f32 1.0, %v7200_v30  ;;  %v6072_v30 = vsel %vm5998_vm8, %v7136_v47, 0 }
 0xb79   :  { %7201 = vrcp.f32 %v5891_v34  ;;  %7000 = vmatpush3.bf16.msra.mxu1 %v6072_v30  ;;  %v5984_v34 = vld [vmem:[#allocation10 + $0x40] ss:$0 sm:$0xff] }
 0xb7a   :  { %7203 = vrcp.f32 %v5892_v14 }
 0xb83   :  { %v7202_v49 = vpop.eup %7201 }
 0xb84   :  { %v7204_v12 = vpop.eup %7203  ;;  %5912 = vst [vmem:[#allocation11 + $0x10] sm:$0xff] %v7202_v49 }
 0xb85   :  { %5913 = vst [vmem:[#allocation11 + $0x18] sm:$0xff] %v7204_v12 }
 0xb87   :  { %v5693_v16 = vpop.f32.mrb[36].mxu0 }
 0xb88   :  { %v5695_v20 = vpop.f32.mrb[37].mxu0 }
 0xb89   :  { %v5734_v18 = vpop.f32.mrb[36].mxu1  ;;  %v5697_v19 = vpop.f32.mrb[38].mxu0 }
 0xb8a   :  { %v5735_v23 = vadd.f32 %v5734_v18, %v5693_v16  ;;  %v5736_v53 = vpop.f32.mrb[37].mxu1  ;;  %v5698_v27 = vpop.f32.mrb[39].mxu0 }
 0xb8b   :  { %v5737_v26 = vadd.f32 %v5736_v53, %v5695_v20  ;;  %v5738_v22 = vpop.f32.mrb[38].mxu1 }
 0xb8c   :  { %v5865_v6 = vadd.f32 %v5845_v17, %v5735_v23  ;;  %v5739_v32 = vpop.f32.mrb[39].mxu1  ;;  %v6058_v22 = vld [vmem:[#allocation10 + $0x41] ss:$0 sm:$0xff] }
 0xb8d   :  { %v5866_v33 = vadd.f32 %v5849_v21, %v5737_v26 }
 0xb8e   :  { %v6880_v35 = vmul.f32 -1.442695, %v5865_v6 }
 0xb8f   :  { %v6881_v36 = vmul.f32 -1.442695, %v5866_v33 }
 0xb90   :  { %7205 = vpow2.f32 %v6880_v35 }
 0xb91   :  { %7207 = vpow2.f32 %v6881_v36 }
 0xb9a   :  { %v7206_v37 = vpop.eup %7205 }
 0xb9b   :  { %v7208_v8 = vpop.eup %7207  ;;  %v5893_v38 = vadd.f32 1.0, %v7206_v37 }
 0xb9c   :  { %v5894_v39 = vadd.f32 1.0, %v7208_v8 }
 0xb9d   :  { %7209 = vrcp.f32 %v5893_v38 }
 0xb9e   :  { %7211 = vrcp.f32 %v5894_v39 }
 0xba7   :  { %v7210_v10 = vpop.eup %7209 }
 0xba8   :  { %v7212_v28 = vpop.eup %7211  ;;  %5914 = vst [vmem:[#allocation11 + $0x20] sm:$0xff] %v7210_v10 }
 0xba9   :  { %5915 = vst [vmem:[#allocation11 + $0x28] sm:$0xff] %v7212_v28 }
 0xbab   :  { %v5815_v40 = vpop.f32.mrb[40].mxu0 }
 0xbac   :  { %v5817_v31 = vpop.f32.mrb[41].mxu0 }
 0xbad   :  { %v5818_v44 = vpop.f32.mrb[42].mxu0 }
 0xbae   :  { %v5819_v50 = vpop.f32.mrb[43].mxu0 }
 0xbb3   :  { %v5962_v0 = vpop.f32.mrb[44].mxu0 }
 0xbb4   :  { %v5963_v46 = vadd.f32 %v5962_v0, %v5919_v25  ;;  %v6987_v2 = vpop.f32.mrb[45].mxu0 }
 0xbb5   :  { %v5965_v61 = vpop.f32.mrb[46].mxu0 }
 0xbb6   :  { %v5974_v48 = vmax.f32 %v5963_v46, 0.0  ;;  %v6988_v62 = vpop.f32.mrb[47].mxu0  ;;  %v6885_v3 = vmul.f32 -1.442695, %v5963_v46 }
 0xbb8   :  { %5976 = vrot.lane.b32.xlu0 %v5974_v48, %s7411_s24 }
 0xbc9   :  { %v5775_v51 = vpop.f32.mrb[40].mxu1 }
 0xbca   :  { %v5816_v52 = vadd.f32 %v5815_v40, %v5775_v51  ;;  %v5777_v54 = vpop.f32.mrb[41].mxu1 }
 0xbcb   :  { %v5778_v55 = vpop.f32.mrb[42].mxu1 }
 0xbcc   :  { %v5867_v56 = vadd.f32 %v5853_v1, %v5816_v52  ;;  %v5779_v58 = vpop.f32.mrb[43].mxu1 }
 0xbce   :  { %v6882_v42 = vmul.f32 -1.442695, %v5867_v56 }
 0xbd0   :  { %7213 = vpow2.f32 %v6882_v42 }
 0xbda   :  { %v7214_v59 = vpop.eup %7213 }
 0xbdb   :  { %v5895_v60 = vadd.f32 1.0, %v7214_v59 }
 0xbdd   :  { %7215 = vrcp.f32 %v5895_v60 }
 0xbde   :  { %7217 = vpow2.f32 %v6885_v3 }
 0xbe7   :  { %v7216_v63 = vpop.eup %7215 }
 0xbe8   :  { %5916 = vst.msk [vmem:[#allocation11 + $0x30] sm:$0xff] %vm2514_vm0, %v7216_v63  ;;  %v7218_v29 = vpop.eup %7217 }
 0xbe9   :  { %v5971_v4 = vadd.f32 1.0, %v7218_v29 }
 0xbeb   :  { %7219 = vrcp.f32 %v5971_v4 }
 0xbf5   :  { %v7220_v9 = vpop.eup %7219 }
 0xc2a   :  { %v5977_v11 = vpop.permute.xlu0 %5976 }
 0xc2b   :  { %v5979_v5 = vmul.f32 %v7220_v9, %v5977_v11 }
 0xc2d   :  { %v5983_v7 = vpack.c.bf16 %v5979_v5, %v5979_v5 }
 0xc2f   :  { %6994 = vmatmul.mubr.msk.bf16.vlgmr.msra.gmra.mrb[48].mxu0 %vm5994_vm9, %v5983_v7 }
 0xd02   :  { %v6036_v14 = vpop.f32.mrb[48].mxu0 }
 0xd03   :  { %v6037_v49 = vadd.f32 %v6036_v14, %v5984_v34  ;;  %v6995_v12 = vpop.f32.mrb[49].mxu0 }
 0xd04   :  { %v6039_v16 = vpop.f32.mrb[50].mxu0 }
 0xd05   :  { %v6048_v17 = vmax.f32 %v6037_v49, 0.0  ;;  %v6996_v18 = vpop.f32.mrb[51].mxu0  ;;  %v6889_v20 = vmul.f32 -1.442695, %v6037_v49 }
 0xd07   :  { %6050 = vrot.lane.b32.xlu1 %v6048_v17, %s7411_s24  ;;  %7221 = vpow2.f32 %v6889_v20 }
 0xd11   :  { %v7222_v21 = vpop.eup %7221 }
 0xd12   :  { %v6045_v23 = vadd.f32 1.0, %v7222_v21 }
 0xd14   :  { %7223 = vrcp.f32 %v6045_v23 }
 0xd1e   :  { %v7224_v53 = vpop.eup %7223 }
 0xd79   :  { %v6051_v57 = vpop.permute.xlu1 %6050 }
 0xd7a   :  { %v6053_v19 = vmul.f32 %v7224_v53, %v6051_v57 }
 0xd7c   :  { %v6057_v26 = vpack.c.bf16 %v6053_v19, %v6053_v19 }
 0xd7e   :  { %7002 = vmatmul.mubr.msk.bf16.vlgmr.msra.gmra.mrb[44].mxu1 %vm5994_vm9, %v6057_v26 }
 0xe51   :  { %v6108_v27 = vpop.f32.mrb[44].mxu1 }
 0xe52   :  { %v6109_v6 = vadd.f32 %v6108_v27, %v6058_v22  ;;  %v7003_v32 = vpop.f32.mrb[45].mxu1 }
 0xe53   :  { %v6111_v33 = vpop.f32.mrb[46].mxu1 }
 0xe54   :  { %v6120_v35 = vmax.f32 %v6109_v6, 0.0  ;;  %v7004_v36 = vpop.f32.mrb[47].mxu1  ;;  %v6893_v37 = vmul.f32 -1.442695, %v6109_v6 }
 0xe56   :  { %6122 = vrot.lane.b32.xlu0 %v6120_v35, %s7407_s4  ;;  %7225 = vpow2.f32 %v6893_v37 }
 0xe60   :  { %v7226_v8 = vpop.eup %7225 }
 0xe61   :  { %v6117_v38 = vadd.f32 1.0, %v7226_v8 }
 0xe63   :  { %7227 = vrcp.f32 %v6117_v38 }
 0xe6d   :  { %v7228_v39 = vpop.eup %7227 }
 0xec8   :  { %v6123_v10 = vpop.permute.xlu0 %6122 }
 0xec9   :  { %v6125_v28 = vmul.f32 %v7228_v39, %v6123_v10 }
 0xecb   :  { %v6126_v40 = vmul.f32 %v6125_v28, %v6125_v28 }
 0xecd   :  { %v6127_v43 = vsel %vm3507_vm1, %v6126_v40, 0.0 }
 0xece   :  { %6128 = vadd.xlane.f32.xlu0 %v6127_v43 }
 0xf5b   :  { %v6129_v31 = vpop.xlane.xlu0 %6128 }
 0xf5c   :  { %v6130_v44 = vmax.f32 %v6129_v31, 1e-24 }
 0xf5e   :  { %7229 = vrsqrt.f32 %v6130_v44 }
 0xf68   :  { %v7230_v45 = vpop.eup %7229 }
 0xf69   :  { %v6132_v50 = vmul.f32 %v7230_v45, %v6125_v28 }
 0xf6b   :  { %v6133_v25 = vmul.f32 %v6132_v50, %v7685_v15 }
 0xf6d   :  { %v6134_v0 = vsel %vm3507_vm1, %v6133_v25, 0.0 }
 0xf6e   :  { %6135 = vadd.xlane.f32.xlu1 %v6134_v0 }
 0xf6f   :  { %7353 = shalt.err (!%p7350_p2)
}
 0xf70   :  { %s7354_s15 = scalar_lea.hbm %s7831_s5, 896 }
 0xf71   :  { %p7355_p3 = scmp.ne.s32.totalorder %s7831_s5, %s7354_s15  ;;  %p7358_p4 = scmp.lt.u32.totalorder %s7354_s15, %s7831_s5 }
 0xf73   :  { %p7360_p5 = pnand %p7358_p4, %p7355_p3 }
 0xf75   :  { %7363 = shalt.err (!%p7360_p5)
}
 0xf76   :  { %6152 = dma.vmem_to_hbm [thread:$0]  %s6150_s11, 896, %s7831_s5, [#allocation4]   ;;  %v6139_v15 = vand.u32 127, %v490_v41  ;;  %v6137_v46 = vsel %vm3507_vm1, %v7653_v24, 0.0 }
 0xf77   :  { %s7413_s21 = smov [#allocation12]  }
 0xf78   :  { %s6159_s22 = sshll.u32 %s7413_s21, 4  ;;  %vm6140_vm10 = vcmp.eq.s32.totalorder %v6139_v15, 64  ;;  %s6160_s22 = int_to_ptr.vmem [resolvable:$true] %s6159_s22 }
 0xf79   :  { %s7364_s23 = scalar_lea.vmem %s6160_s22, 128  ;;  %p7369_p7 = scmp.lt.s32.totalorder %s6160_s22, %s6160_s22 }
 0xf7a   :  { %p7365_p6 = scmp.ne.s32.totalorder %s6160_s22, %s7364_s23  ;;  %p7370_p8 = scmp.lt.s32.totalorder %s7364_s23, %s7364_s23 }
 0xf7c   :  { %p7371_p9 = por %p7370_p8, %p7369_p7 }
 0xf7e   :  { %p7372_p10 = pnand %p7371_p9, %p7365_p6 }
 0xffb   :  { %v6136_v2 = vpop.xlane.xlu1 %6135 }
 0xffc   :  { %v6141_v61 = vsel %vm6140_vm10, %v6136_v2, %v6137_v46 }
 0xffd   :  { %6142 = vst [vmem:[#allocation12] sm:$0xff] %v6141_v61 }
 0xffe   :  { %7375 = shalt.err (!%p7372_p10)
}
 0xfff   :  { %s7376_s27 = scalar_lea.hbm %s7832_s6, 128 }
0x1000   :  { %p7377_p11 = scmp.ne.s32.totalorder %s7832_s6, %s7376_s27  ;;  %p7380_p12 = scmp.lt.u32.totalorder %s7376_s27, %s7832_s6 }
0x1002   :  { %p7382_p13 = pnand %p7380_p12, %p7377_p11 }
0x1004   :  { %7385 = shalt.err (!%p7382_p13)
}
0x1005   :  { %6162 = dma.vmem_to_hbm [thread:$0]  %s6160_s22, 128, %s7832_s6, [#allocation13]  }
0x1006   :  { %7392 = dma.done.wait [#allocation4], 896  }
0x1007   :  { %7393 = vsyncadd [#allocation4], 4294966400 }
0x1008   :  { %7394 = dma.done.wait [#allocation13], 128  }
0x1009   :  { %7395 = vsyncadd [#allocation13], 4294967168 }
0x100a   :  { %6169 = vsyncpa [#allocation3], 1 }
0x100b   :  { %6170 = vsyncpa [#allocation6], 1 }
0x100c   :  { %6171 = vsyncpa [#allocation9], 1 }
0x100d   :  { %6172 = vsyncpa [#allocation4], 1 }
0x100e   :  { %6173 = vsyncpa [#allocation13], 1 }

</bundles_post_ra>
